<compile_context>
chip_gen: v6e
topology: v6e:2x2x1
jax: 0.10.0
libtpu: 0.0.40
codegen_flags: <defaults>
</compile_context>

<pallas_src>
import functools
import math

import jax
import jax.numpy as jnp
from jax.experimental import pallas as pl
from jax.experimental.pallas import tpu as pltpu


# ----------------------------------------------------------------------------
# Helpers: row tiling + compiler params.
# ----------------------------------------------------------------------------
def _pick_row_tile(H, W, Cin, pool, target_bytes=2 << 20):
    """Largest row tile that divides H (even rows if pooling), leaves >=2 tiles
    when possible, and keeps one bf16 input tile under `target_bytes`."""
    divs = [d for d in range(1, H + 1)
            if H % d == 0 and (not pool or d % 2 == 0)]
    if not divs:
        return H          # TODO(synk): odd H with MaxPool2d(2) not supported (same as original).

    def fits(d):
        return (d + 2) * (W + 2) * max(Cin, 1) * 2 <= target_bytes

    best = [d for d in divs if H // d >= 2 and fits(d)]
    if best:
        return max(best)
    best = [d for d in divs if fits(d)]
    return max(best) if best else min(divs)


def _row_tiles(xpad, th, halo):
    """(N, Hp, Wp, C) -> (N*T, th+halo, Wp, C) overlapping (halo'd) row tiles."""
    N, Hp, Wp, C = xpad.shape
    T = (Hp - halo) // th
    if T <= 1:
        return xpad, 1
    tiles = jnp.stack([xpad[:, i * th:i * th + th + halo] for i in range(T)],
                      axis=1)
    return tiles.reshape(N * T, th + halo, Wp, C), T


def _mosaic_params(working_set_bytes):
    # Size scoped VMEM to the chosen tiles; stay under v7x's 64 MiB physical.
    vmem = int(min(max(2 * working_set_bytes + (16 << 20), 32 << 20), 60 << 20))
    return pltpu.CompilerParams(dimension_semantics=("parallel",),
                                vmem_limit_bytes=vmem)


# ----------------------------------------------------------------------------
# 3x3 "same" convolution: in-kernel im2col -> single bf16 matmul (K = 9*Cin)
# -> f32 bias / activation -> optional fused 2x2 max pool.
# ----------------------------------------------------------------------------
def _conv3x3_kernel(x_ref, w_ref, b_ref, o_ref, *,
                    TH, W, Cin, Cout, act, pool, chw_out):
    xp = x_ref[0]                                            # (TH+2, W+2, Cin) bf16
    cols = [xp[kh:kh + TH, kw:kw + W, :].reshape(TH * W, Cin)
            for kh in range(3) for kw in range(3)]
    patches = jnp.concatenate(cols, axis=-1)                 # (TH*W, 9*Cin) bf16
    acc = jnp.dot(patches, w_ref[...],
                  preferred_element_type=jnp.float32)        # (TH*W, Cout) f32
    acc = acc + b_ref[0]                                     # bias / act in f32 (v5e)
    if act == "relu":
        acc = jnp.maximum(acc, 0.0)
    elif act == "sigmoid":
        acc = jax.nn.sigmoid(acc)

    if pool:                                                 # fused MaxPool2d(2)
        a = acc.reshape(TH // 2, 2, W // 2, 2, Cout)
        acc = jnp.maximum(jnp.maximum(a[:, 0, :, 0, :], a[:, 0, :, 1, :]),
                          jnp.maximum(a[:, 1, :, 0, :], a[:, 1, :, 1, :]))
        o_ref[0] = acc.astype(o_ref.dtype)                   # (TH/2, W/2, Cout)
    elif chw_out:
        o_ref[0] = acc.T.astype(o_ref.dtype)                 # lane-dense (Cout, TH*W)
    else:
        o_ref[0] = acc.reshape(TH, W, Cout).astype(o_ref.dtype)


def conv2d_3x3(x, w_torch, b, *, act=None, pool=False, chw_out=False,
               out_dtype=jnp.bfloat16):
    """nn.Conv2d(Cin, Cout, 3, padding=1) [+ ReLU/Sigmoid] [+ MaxPool2d(2)].

    x: (N, H, W, Cin) bf16.  w_torch: (Cout, Cin, 3, 3).  b: (Cout,).
    Returns NHWC, or NCHW (N, Cout, H, W) when chw_out=True (transpose folded in).
    """
    N, H, W, Cin = x.shape
    Cout = w_torch.shape[0]
    # hoisted matmul-ready weights: (KH, KW, Cin, Cout) -> (9*Cin, Cout) bf16
    w = jnp.transpose(w_torch, (2, 3, 1, 0)).reshape(9 * Cin, Cout)
    w = w.astype(jnp.bfloat16)
    b2 = b.reshape(1, Cout).astype(jnp.float32)

    th = _pick_row_tile(H, W, Cin, pool)
    xpad = jnp.pad(x.astype(jnp.bfloat16), ((0, 0), (1, 1), (1, 1), (0, 0)))
    tiles, T = _row_tiles(xpad, th, halo=2)
    G = N * T

    if pool:
        blk_out = (1, th // 2, W // 2, Cout)
        out_shape = (G, th // 2, W // 2, Cout)
        out_idx = lambda t: (t, 0, 0, 0)
    elif chw_out:
        blk_out = (1, Cout, th * W)
        out_shape = (G, Cout, th * W)
        out_idx = lambda t: (t, 0, 0)
    else:
        blk_out = (1, th, W, Cout)
        out_shape = (G, th, W, Cout)
        out_idx = lambda t: (t, 0, 0, 0)

    out_bytes = math.prod(out_shape) * jnp.dtype(out_dtype).itemsize
    in_tile_bytes = (th + 2) * (W + 2) * Cin * 2
    out_tile_bytes = out_bytes // G
    w_bytes = w.size * 2
    cost = pl.CostEstimate(
        flops=2 * N * H * W * 9 * Cin * Cout,
        transcendentals=(N * H * W * Cout) if act == "sigmoid" else 0,
        bytes_accessed=int(tiles.size * 2 + w_bytes + b2.size * 4 + out_bytes))

    kern = functools.partial(_conv3x3_kernel, TH=th, W=W, Cin=Cin, Cout=Cout,
                             act=act, pool=pool, chw_out=chw_out)
    out = pl.pallas_call(
        kern,
        out_shape=jax.ShapeDtypeStruct(out_shape, out_dtype),
        grid=(G,),
        in_specs=[
            pl.BlockSpec((1, th + 2, W + 2, Cin), lambda t: (t, 0, 0, 0)),
            pl.BlockSpec((9 * Cin, Cout), lambda t: (0, 0)),
            pl.BlockSpec((1, Cout), lambda t: (0, 0)),
        ],
        out_specs=pl.BlockSpec(blk_out, out_idx),
        compiler_params=_mosaic_params(2 * (in_tile_bytes + out_tile_bytes)
                                       + w_bytes),
        cost_estimate=cost,
    )(tiles, w, b2)

    if pool:
        return out.reshape(N, H // 2, W // 2, Cout)
    if chw_out:
        out = out.reshape(N, T, Cout, th, W)
        return jnp.transpose(out, (0, 2, 1, 3, 4)).reshape(N, Cout, H, W)
    return out.reshape(N, H, W, Cout)


# ----------------------------------------------------------------------------
# ConvTranspose2d(k=3, stride=2, padding=1, output_padding=1) decomposed into
# its 4 output phases over the UNDILATED input:
#   y[2m,   2n  ] = x[m,n]   w[1,1]
#   y[2m,   2n+1] = x[m,n]   w[1,2] + x[m,n+1]   w[1,0]
#   y[2m+1, 2n  ] = x[m,n]   w[2,1] + x[m+1,n]   w[0,1]
#   y[2m+1, 2n+1] = x[m,n]   w[2,2] + x[m,n+1]   w[2,0]
#                 + x[m+1,n] w[0,2] + x[m+1,n+1] w[0,0]
# (w indexed as torch weight[Cin, Cout, kh, kw]; bias added to every phase.)
# ----------------------------------------------------------------------------
def _convt3x3_s2_kernel(x_ref, w_ref, b_ref, o_ref, *, TH, W, Cin, Cout, act):
    xp = x_ref[0]                                            # (TH+1, W+1, Cin) bf16
    x00 = xp[0:TH, 0:W, :].reshape(TH * W, Cin)              # x[m,   n  ]
    x01 = xp[0:TH, 1:W + 1, :].reshape(TH * W, Cin)          # x[m,   n+1]
    x10 = xp[1:TH + 1, 0:W, :].reshape(TH * W, Cin)          # x[m+1, n  ]
    x11 = xp[1:TH + 1, 1:W + 1, :].reshape(TH * W, Cin)      # x[m+1, n+1]
    bias = b_ref[0]

    def mm(lhs, lo, hi):
        return jnp.dot(lhs, w_ref[lo:hi, :], preferred_element_type=jnp.float32)

    p_ee = mm(x00, 0, Cin) + bias
    p_eo = mm(jnp.concatenate([x00, x01], axis=-1), Cin, 3 * Cin) + bias
    p_oe = mm(jnp.concatenate([x00, x10], axis=-1), 3 * Cin, 5 * Cin) + bias
    p_oo = mm(jnp.concatenate([x00, x01, x10, x11], axis=-1),
              5 * Cin, 9 * Cin) + bias
    if act == "relu":
        p_ee = jnp.maximum(p_ee, 0.0)
        p_eo = jnp.maximum(p_eo, 0.0)
        p_oe = jnp.maximum(p_oe, 0.0)
        p_oo = jnp.maximum(p_oo, 0.0)

    out = jnp.concatenate([p_ee, p_eo, p_oe, p_oo], axis=-1)  # (TH*W, 4*Cout)
    o_ref[0] = out.reshape(TH, W, 4 * Cout).astype(o_ref.dtype)


def conv_transpose2d_3x3_s2(x, w_torch, b, *, act=None, out_dtype=jnp.bfloat16):
    """x: (N, H, W, Cin) bf16, w_torch: (Cin, Cout, 3, 3) -> (N, 2H, 2W, Cout)."""
    N, H, W, Cin = x.shape
    Cout = w_torch.shape[1]
    wt = w_torch.astype(jnp.bfloat16)
    tap = lambda kh, kw: wt[:, :, kh, kw]                      # (Cin, Cout)
    # Packed weight rows match each phase's LHS concatenation order.
    w = jnp.concatenate([
        tap(1, 1),                                             # ee: [x00]
        tap(1, 2), tap(1, 0),                                  # eo: [x00; x01]
        tap(2, 1), tap(0, 1),                                  # oe: [x00; x10]
        tap(2, 2), tap(2, 0), tap(0, 2), tap(0, 0),            # oo: [x00; x01; x10; x11]
    ], axis=0)                                                 # (9*Cin, Cout) bf16
    b2 = b.reshape(1, Cout).astype(jnp.float32)

    th = _pick_row_tile(H, W, Cin, pool=False)
    xpad = jnp.pad(x.astype(jnp.bfloat16), ((0, 0), (0, 1), (0, 1), (0, 0)))
    tiles, T = _row_tiles(xpad, th, halo=1)
    G = N * T

    in_tile_bytes = (th + 1) * (W + 1) * Cin * 2
    out_tile_bytes = th * W * 4 * Cout * jnp.dtype(out_dtype).itemsize
    cost = pl.CostEstimate(
        flops=2 * N * H * W * 9 * Cin * Cout, transcendentals=0,
        bytes_accessed=int(tiles.size * 2 + w.size * 2 + b2.size * 4
                           + G * out_tile_bytes))

    kern = functools.partial(_convt3x3_s2_kernel, TH=th, W=W, Cin=Cin,
                             Cout=Cout, act=act)
    out = pl.pallas_call(
        kern,
        out_shape=jax.ShapeDtypeStruct((G, th, W, 4 * Cout), out_dtype),
        grid=(G,),
        in_specs=[
            pl.BlockSpec((1, th + 1, W + 1, Cin), lambda t: (t, 0, 0, 0)),
            pl.BlockSpec((9 * Cin, Cout), lambda t: (0, 0)),
            pl.BlockSpec((1, Cout), lambda t: (0, 0)),
        ],
        out_specs=pl.BlockSpec((1, th, W, 4 * Cout), lambda t: (t, 0, 0, 0)),
        compiler_params=_mosaic_params(2 * (in_tile_bytes + out_tile_bytes)
                                       + w.size * 2),
        cost_estimate=cost,
    )(tiles, w, b2)

    # Interleave the 4 phases: (N, H, W, 2, 2, C) -> (N, 2H, 2W, C). Plain-JAX glue.
    out = out.reshape(N, H, W, 2, 2, Cout)
    return jnp.transpose(out, (0, 1, 3, 2, 4, 5)).reshape(N, 2 * H, 2 * W, Cout)


# ----------------------------------------------------------------------------
# Parameters (PyTorch-layout shapes) and the full forward pass.
# ----------------------------------------------------------------------------
def init_params(key):
    def conv_w(k, cout, cin):
        return 0.05 * jax.random.normal(k, (cout, cin, 3, 3), jnp.float32)

    def convT_w(k, cin, cout):
        return 0.05 * jax.random.normal(k, (cin, cout, 3, 3), jnp.float32)

    ks = jax.random.split(key, 12)
    return {
        # encoder
        "e0_w": conv_w(ks[0], 64, 6),    "e0_b": 0.01 * jax.random.normal(ks[1], (64,)),
        "e1_w": conv_w(ks[2], 128, 64),  "e1_b": 0.01 * jax.random.normal(ks[3], (128,)),
        "e2_w": conv_w(ks[4], 256, 128), "e2_b": 0.01 * jax.random.normal(ks[5], (256,)),
        # decoder
        "d0_w": convT_w(ks[6], 256, 128), "d0_b": 0.01 * jax.random.normal(ks[7], (128,)),
        "d1_w": convT_w(ks[8], 128, 64),  "d1_b": 0.01 * jax.random.normal(ks[9], (64,)),
        "d2_w": conv_w(ks[10], 3, 64),    "d2_b": 0.01 * jax.random.normal(ks[11], (3,)),
    }


def interpolation_model(params, frame1, frame2):
    """frame1, frame2: NCHW (N, 3, H, W) f32 -> NCHW (N, 3, H, W) f32."""
    x = jnp.concatenate([frame1, frame2], axis=1)                # (N, 6, H, W)
    # Cin=6 first layer: lane-sparse by nature; the K=54 im2col matmul absorbs it.
    x = jnp.transpose(x, (0, 2, 3, 1)).astype(jnp.bfloat16)      # NHWC bf16

    # encoder (ReLU + 2x2 max-pool fused into the conv epilogues)
    x = conv2d_3x3(x, params["e0_w"], params["e0_b"], act="relu", pool=True)   # 6 -> 64,  H/2
    x = conv2d_3x3(x, params["e1_w"], params["e1_b"], act="relu", pool=True)   # 64 -> 128, H/4
    x = conv2d_3x3(x, params["e2_w"], params["e2_b"])                          # 128 -> 256

    # decoder (phase-decomposed transposed convolutions)
    x = conv_transpose2d_3x3_s2(x, params["d0_w"], params["d0_b"], act="relu")  # -> H/2
    x = conv_transpose2d_3x3_s2(x, params["d1_w"], params["d1_b"], act="relu")  # -> H
    # final conv: sigmoid in f32, lane-dense NCHW output (transpose folded into kernel)
    return conv2d_3x3(x, params["d2_w"], params["d2_b"], act="sigmoid",
                      chw_out=True, out_dtype=jnp.float32)                      # 64 -> 3


if __name__ == "__main__":
    key = jax.random.PRNGKey(0)
    kp, k1, k2 = jax.random.split(key, 3)
    params = init_params(kp)

    N, C, H, W = 2, 3, 16, 16
    frame1 = jax.random.uniform(k1, (N, C, H, W), jnp.float32)
    frame2 = jax.random.uniform(k2, (N, C, H, W), jnp.float32)

    out = jax.jit(interpolation_model)(params, frame1, frame2)
    out = jax.block_until_ready(out)

    assert out.shape == (N, 3, H, W), out.shape
    assert out.dtype == jnp.float32, out.dtype
    assert bool(jnp.all(jnp.isfinite(out)))
    assert bool(jnp.all((out >= 0.0) & (out <= 1.0)))   # sigmoid output range
    print("KERNEL_OK")
</pallas_src>

<mosaic_0001>
module attributes {stable_mosaic.version = 11 : i64} {
  func.func @_conv3x3_kernel(%arg0: i32, %arg1: memref<1x10x18x6xbf16, #tpu.memory_space<vmem>>, %arg2: memref<54x64xbf16, #tpu.memory_space<vmem>>, %arg3: memref<1x64xf32, #tpu.memory_space<vmem>>, %arg4: memref<1x4x8x64xbf16, #tpu.memory_space<vmem>>) attributes {dimension_semantics = [#tpu.dimension_semantics<parallel>], iteration_bounds = array<i64: 4>, scalar_prefetch = 0 : i64, scratch_operands = 0 : i64, tpu.core_type = #tpu.core_type<tc>, window_params = [{transform_indices = @transform_0, window_bounds = array<i64: 1, 10, 18, 6>}, {pipeline_mode = #tpu.pipeline_mode<synchronous>, transform_indices = @transform_1, window_bounds = array<i64: 54, 64>}, {pipeline_mode = #tpu.pipeline_mode<synchronous>, transform_indices = @transform_2, window_bounds = array<i64: 1, 64>}, {transform_indices = @transform_3, window_bounds = array<i64: 1, 4, 8, 64>}]} {
    %c0 = arith.constant 0 : index
    %c0_0 = arith.constant 0 : index
    %c0_1 = arith.constant 0 : index
    %c0_2 = arith.constant 0 : index
    %0 = vector.load %arg1[%c0, %c0_0, %c0_1, %c0_2] : memref<1x10x18x6xbf16, #tpu.memory_space<vmem>>, vector<1x10x18x6xbf16>
    %1 = vector.shape_cast %0 : vector<1x10x18x6xbf16> to vector<10x18x6xbf16>
    %2 = vector.extract_strided_slice %1 {offsets = [0, 0, 0], sizes = [8, 16, 6], strides = [1, 1, 1]} : vector<10x18x6xbf16> to vector<8x16x6xbf16>
    %3 = vector.shape_cast %2 : vector<8x16x6xbf16> to vector<128x6xbf16>
    %4 = vector.extract_strided_slice %1 {offsets = [0, 1, 0], sizes = [8, 16, 6], strides = [1, 1, 1]} : vector<10x18x6xbf16> to vector<8x16x6xbf16>
    %5 = vector.shape_cast %4 : vector<8x16x6xbf16> to vector<128x6xbf16>
    %6 = vector.extract_strided_slice %1 {offsets = [0, 2, 0], sizes = [8, 16, 6], strides = [1, 1, 1]} : vector<10x18x6xbf16> to vector<8x16x6xbf16>
    %7 = vector.shape_cast %6 : vector<8x16x6xbf16> to vector<128x6xbf16>
    %8 = vector.extract_strided_slice %1 {offsets = [1, 0, 0], sizes = [8, 16, 6], strides = [1, 1, 1]} : vector<10x18x6xbf16> to vector<8x16x6xbf16>
    %9 = vector.shape_cast %8 : vector<8x16x6xbf16> to vector<128x6xbf16>
    %10 = vector.extract_strided_slice %1 {offsets = [1, 1, 0], sizes = [8, 16, 6], strides = [1, 1, 1]} : vector<10x18x6xbf16> to vector<8x16x6xbf16>
    %11 = vector.shape_cast %10 : vector<8x16x6xbf16> to vector<128x6xbf16>
    %12 = vector.extract_strided_slice %1 {offsets = [1, 2, 0], sizes = [8, 16, 6], strides = [1, 1, 1]} : vector<10x18x6xbf16> to vector<8x16x6xbf16>
    %13 = vector.shape_cast %12 : vector<8x16x6xbf16> to vector<128x6xbf16>
    %14 = vector.extract_strided_slice %1 {offsets = [2, 0, 0], sizes = [8, 16, 6], strides = [1, 1, 1]} : vector<10x18x6xbf16> to vector<8x16x6xbf16>
    %15 = vector.shape_cast %14 : vector<8x16x6xbf16> to vector<128x6xbf16>
    %16 = vector.extract_strided_slice %1 {offsets = [2, 1, 0], sizes = [8, 16, 6], strides = [1, 1, 1]} : vector<10x18x6xbf16> to vector<8x16x6xbf16>
    %17 = vector.shape_cast %16 : vector<8x16x6xbf16> to vector<128x6xbf16>
    %18 = vector.extract_strided_slice %1 {offsets = [2, 2, 0], sizes = [8, 16, 6], strides = [1, 1, 1]} : vector<10x18x6xbf16> to vector<8x16x6xbf16>
    %19 = vector.shape_cast %18 : vector<8x16x6xbf16> to vector<128x6xbf16>
    %20 = tpu.concatenate %3, %5, %7, %9, %11, %13, %15, %17, %19 in 1 : vector<128x6xbf16>, vector<128x6xbf16>, vector<128x6xbf16>, vector<128x6xbf16>, vector<128x6xbf16>, vector<128x6xbf16>, vector<128x6xbf16>, vector<128x6xbf16>, vector<128x6xbf16> -> vector<128x54xbf16>
    %c0_3 = arith.constant 0 : index
    %c0_4 = arith.constant 0 : index
    %21 = vector.load %arg2[%c0_3, %c0_4] : memref<54x64xbf16, #tpu.memory_space<vmem>>, vector<54x64xbf16>
    %cst = arith.constant dense<0.000000e+00> : vector<128x64xf32>
    %22 = tpu.matmul %20, %21, %cst {dimension_numbers = #tpu.dot_dimension_numbers<[1], [0], [0], [1], [0, 0, 1, 1], [], []>} : vector<128x54xbf16>, vector<54x64xbf16>, vector<128x64xf32> -> vector<128x64xf32>
    %c0_5 = arith.constant 0 : index
    %c0_6 = arith.constant 0 : index
    %23 = vector.load %arg3[%c0_5, %c0_6] : memref<1x64xf32, #tpu.memory_space<vmem>>, vector<1x64xf32>
    %24 = vector.shape_cast %23 : vector<1x64xf32> to vector<64xf32>
    %25 = vector.shape_cast %24 : vector<64xf32> to vector<1x64xf32>
    %26 = vector.broadcast %25 : vector<1x64xf32> to vector<128x64xf32>
    %27 = arith.addf %22, %26 : vector<128x64xf32>
    %cst_7 = arith.constant 0.000000e+00 : f32
    %28 = vector.broadcast %cst_7 : f32 to vector<128x64xf32>
    %29 = arith.maximumf %27, %28 : vector<128x64xf32>
    %30 = vector.shape_cast %29 : vector<128x64xf32> to vector<4x2x8x2x64xf32>
    %31 = vector.extract_strided_slice %30 {offsets = [0, 0, 0, 0, 0], sizes = [4, 1, 8, 1, 64], strides = [1, 1, 1, 1, 1]} : vector<4x2x8x2x64xf32> to vector<4x1x8x1x64xf32>
    %32 = vector.shape_cast %31 : vector<4x1x8x1x64xf32> to vector<4x8x64xf32>
    %33 = vector.extract_strided_slice %30 {offsets = [0, 0, 0, 1, 0], sizes = [4, 1, 8, 1, 64], strides = [1, 1, 1, 1, 1]} : vector<4x2x8x2x64xf32> to vector<4x1x8x1x64xf32>
    %34 = vector.shape_cast %33 : vector<4x1x8x1x64xf32> to vector<4x8x64xf32>
    %35 = arith.maximumf %32, %34 : vector<4x8x64xf32>
    %36 = vector.extract_strided_slice %30 {offsets = [0, 1, 0, 0, 0], sizes = [4, 1, 8, 1, 64], strides = [1, 1, 1, 1, 1]} : vector<4x2x8x2x64xf32> to vector<4x1x8x1x64xf32>
    %37 = vector.shape_cast %36 : vector<4x1x8x1x64xf32> to vector<4x8x64xf32>
    %38 = vector.extract_strided_slice %30 {offsets = [0, 1, 0, 1, 0], sizes = [4, 1, 8, 1, 64], strides = [1, 1, 1, 1, 1]} : vector<4x2x8x2x64xf32> to vector<4x1x8x1x64xf32>
    %39 = vector.shape_cast %38 : vector<4x1x8x1x64xf32> to vector<4x8x64xf32>
    %40 = arith.maximumf %37, %39 : vector<4x8x64xf32>
    %41 = arith.maximumf %35, %40 : vector<4x8x64xf32>
    %42 = arith.truncf %41 : vector<4x8x64xf32> to vector<4x8x64xbf16>
    %c0_8 = arith.constant 0 : index
    %c0_9 = arith.constant 0 : index
    %c0_10 = arith.constant 0 : index
    %c0_11 = arith.constant 0 : index
    %43 = vector.load %arg4[%c0_8, %c0_9, %c0_10, %c0_11] : memref<1x4x8x64xbf16, #tpu.memory_space<vmem>>, vector<1x4x8x64xbf16>
    %44 = vector.shape_cast %43 : vector<1x4x8x64xbf16> to vector<4x8x64xbf16>
    %45 = vector.shape_cast %42 : vector<4x8x64xbf16> to vector<1x4x8x64xbf16>
    tpu.vector_store %arg4[%c0_8, %c0_9, %c0_10, %c0_11], %45 {strides = array<i32>} : memref<1x4x8x64xbf16, #tpu.memory_space<vmem>>, vector<1x4x8x64xbf16>,
    return
  }
  func.func @transform_0(%arg0: i32) -> (i32, i32, i32, i32) {
    %c0_i32 = arith.constant 0 : i32
    %c0_i32_0 = arith.constant 0 : i32
    %c0_i32_1 = arith.constant 0 : i32
    %c0_i32_2 = arith.constant 0 : i32
    return %arg0, %c0_i32, %c0_i32_0, %c0_i32_1 : i32, i32, i32, i32
  }
  func.func @transform_1(%arg0: i32) -> (i32, i32) {
    %c0_i32 = arith.constant 0 : i32
    %c0_i32_0 = arith.constant 0 : i32
    %c0_i32_1 = arith.constant 0 : i32
    return %c0_i32, %c0_i32_0 : i32, i32
  }
  func.func @transform_2(%arg0: i32) -> (i32, i32) {
    %c0_i32 = arith.constant 0 : i32
    %c0_i32_0 = arith.constant 0 : i32
    %c0_i32_1 = arith.constant 0 : i32
    return %c0_i32, %c0_i32_0 : i32, i32
  }
  func.func @transform_3(%arg0: i32) -> (i32, i32, i32, i32) {
    %c0_i32 = arith.constant 0 : i32
    %c0_i32_0 = arith.constant 0 : i32
    %c0_i32_1 = arith.constant 0 : i32
    %c0_i32_2 = arith.constant 0 : i32
    return %arg0, %c0_i32, %c0_i32_0, %c0_i32_1 : i32, i32, i32, i32
  }
}

module attributes {stable_mosaic.version = 11 : i64} {
  func.func @_conv3x3_kernel(%arg0: i32, %arg1: memref<1x6x10x64xbf16, #tpu.memory_space<vmem>>, %arg2: memref<576x128xbf16, #tpu.memory_space<vmem>>, %arg3: memref<1x128xf32, #tpu.memory_space<vmem>>, %arg4: memref<1x2x4x128xbf16, #tpu.memory_space<vmem>>) attributes {dimension_semantics = [#tpu.dimension_semantics<parallel>], iteration_bounds = array<i64: 4>, scalar_prefetch = 0 : i64, scratch_operands = 0 : i64, tpu.core_type = #tpu.core_type<tc>, window_params = [{transform_indices = @transform_0, window_bounds = array<i64: 1, 6, 10, 64>}, {pipeline_mode = #tpu.pipeline_mode<synchronous>, transform_indices = @transform_1, window_bounds = array<i64: 576, 128>}, {pipeline_mode = #tpu.pipeline_mode<synchronous>, transform_indices = @transform_2, window_bounds = array<i64: 1, 128>}, {transform_indices = @transform_3, window_bounds = array<i64: 1, 2, 4, 128>}]} {
    %c0 = arith.constant 0 : index
    %c0_0 = arith.constant 0 : index
    %c0_1 = arith.constant 0 : index
    %c0_2 = arith.constant 0 : index
    %0 = vector.load %arg1[%c0, %c0_0, %c0_1, %c0_2] : memref<1x6x10x64xbf16, #tpu.memory_space<vmem>>, vector<1x6x10x64xbf16>
    %1 = vector.shape_cast %0 : vector<1x6x10x64xbf16> to vector<6x10x64xbf16>
    %2 = vector.extract_strided_slice %1 {offsets = [0, 0, 0], sizes = [4, 8, 64], strides = [1, 1, 1]} : vector<6x10x64xbf16> to vector<4x8x64xbf16>
    %3 = vector.shape_cast %2 : vector<4x8x64xbf16> to vector<32x64xbf16>
    %4 = vector.extract_strided_slice %1 {offsets = [0, 1, 0], sizes = [4, 8, 64], strides = [1, 1, 1]} : vector<6x10x64xbf16> to vector<4x8x64xbf16>
    %5 = vector.shape_cast %4 : vector<4x8x64xbf16> to vector<32x64xbf16>
    %6 = vector.extract_strided_slice %1 {offsets = [0, 2, 0], sizes = [4, 8, 64], strides = [1, 1, 1]} : vector<6x10x64xbf16> to vector<4x8x64xbf16>
    %7 = vector.shape_cast %6 : vector<4x8x64xbf16> to vector<32x64xbf16>
    %8 = vector.extract_strided_slice %1 {offsets = [1, 0, 0], sizes = [4, 8, 64], strides = [1, 1, 1]} : vector<6x10x64xbf16> to vector<4x8x64xbf16>
    %9 = vector.shape_cast %8 : vector<4x8x64xbf16> to vector<32x64xbf16>
    %10 = vector.extract_strided_slice %1 {offsets = [1, 1, 0], sizes = [4, 8, 64], strides = [1, 1, 1]} : vector<6x10x64xbf16> to vector<4x8x64xbf16>
    %11 = vector.shape_cast %10 : vector<4x8x64xbf16> to vector<32x64xbf16>
    %12 = vector.extract_strided_slice %1 {offsets = [1, 2, 0], sizes = [4, 8, 64], strides = [1, 1, 1]} : vector<6x10x64xbf16> to vector<4x8x64xbf16>
    %13 = vector.shape_cast %12 : vector<4x8x64xbf16> to vector<32x64xbf16>
    %14 = vector.extract_strided_slice %1 {offsets = [2, 0, 0], sizes = [4, 8, 64], strides = [1, 1, 1]} : vector<6x10x64xbf16> to vector<4x8x64xbf16>
    %15 = vector.shape_cast %14 : vector<4x8x64xbf16> to vector<32x64xbf16>
    %16 = vector.extract_strided_slice %1 {offsets = [2, 1, 0], sizes = [4, 8, 64], strides = [1, 1, 1]} : vector<6x10x64xbf16> to vector<4x8x64xbf16>
    %17 = vector.shape_cast %16 : vector<4x8x64xbf16> to vector<32x64xbf16>
    %18 = vector.extract_strided_slice %1 {offsets = [2, 2, 0], sizes = [4, 8, 64], strides = [1, 1, 1]} : vector<6x10x64xbf16> to vector<4x8x64xbf16>
    %19 = vector.shape_cast %18 : vector<4x8x64xbf16> to vector<32x64xbf16>
    %20 = tpu.concatenate %3, %5, %7, %9, %11, %13, %15, %17, %19 in 1 : vector<32x64xbf16>, vector<32x64xbf16>, vector<32x64xbf16>, vector<32x64xbf16>, vector<32x64xbf16>, vector<32x64xbf16>, vector<32x64xbf16>, vector<32x64xbf16>, vector<32x64xbf16> -> vector<32x576xbf16>
    %c0_3 = arith.constant 0 : index
    %c0_4 = arith.constant 0 : index
    %21 = vector.load %arg2[%c0_3, %c0_4] : memref<576x128xbf16, #tpu.memory_space<vmem>>, vector<576x128xbf16>
    %cst = arith.constant dense<0.000000e+00> : vector<32x128xf32>
    %22 = tpu.matmul %20, %21, %cst {dimension_numbers = #tpu.dot_dimension_numbers<[1], [0], [0], [1], [0, 0, 1, 1], [], []>} : vector<32x576xbf16>, vector<576x128xbf16>, vector<32x128xf32> -> vector<32x128xf32>
    %c0_5 = arith.constant 0 : index
    %c0_6 = arith.constant 0 : index
    %23 = vector.load %arg3[%c0_5, %c0_6] : memref<1x128xf32, #tpu.memory_space<vmem>>, vector<1x128xf32>
    %24 = vector.shape_cast %23 : vector<1x128xf32> to vector<128xf32>
    %25 = vector.shape_cast %24 : vector<128xf32> to vector<1x128xf32>
    %26 = vector.broadcast %25 : vector<1x128xf32> to vector<32x128xf32>
    %27 = arith.addf %22, %26 : vector<32x128xf32>
    %cst_7 = arith.constant 0.000000e+00 : f32
    %28 = vector.broadcast %cst_7 : f32 to vector<32x128xf32>
    %29 = arith.maximumf %27, %28 : vector<32x128xf32>
    %30 = vector.shape_cast %29 : vector<32x128xf32> to vector<2x2x4x2x128xf32>
    %31 = vector.extract_strided_slice %30 {offsets = [0, 0, 0, 0, 0], sizes = [2, 1, 4, 1, 128], strides = [1, 1, 1, 1, 1]} : vector<2x2x4x2x128xf32> to vector<2x1x4x1x128xf32>
    %32 = vector.shape_cast %31 : vector<2x1x4x1x128xf32> to vector<2x4x128xf32>
    %33 = vector.extract_strided_slice %30 {offsets = [0, 0, 0, 1, 0], sizes = [2, 1, 4, 1, 128], strides = [1, 1, 1, 1, 1]} : vector<2x2x4x2x128xf32> to vector<2x1x4x1x128xf32>
    %34 = vector.shape_cast %33 : vector<2x1x4x1x128xf32> to vector<2x4x128xf32>
    %35 = arith.maximumf %32, %34 : vector<2x4x128xf32>
    %36 = vector.extract_strided_slice %30 {offsets = [0, 1, 0, 0, 0], sizes = [2, 1, 4, 1, 128], strides = [1, 1, 1, 1, 1]} : vector<2x2x4x2x128xf32> to vector<2x1x4x1x128xf32>
    %37 = vector.shape_cast %36 : vector<2x1x4x1x128xf32> to vector<2x4x128xf32>
    %38 = vector.extract_strided_slice %30 {offsets = [0, 1, 0, 1, 0], sizes = [2, 1, 4, 1, 128], strides = [1, 1, 1, 1, 1]} : vector<2x2x4x2x128xf32> to vector<2x1x4x1x128xf32>
    %39 = vector.shape_cast %38 : vector<2x1x4x1x128xf32> to vector<2x4x128xf32>
    %40 = arith.maximumf %37, %39 : vector<2x4x128xf32>
    %41 = arith.maximumf %35, %40 : vector<2x4x128xf32>
    %42 = arith.truncf %41 : vector<2x4x128xf32> to vector<2x4x128xbf16>
    %c0_8 = arith.constant 0 : index
    %c0_9 = arith.constant 0 : index
    %c0_10 = arith.constant 0 : index
    %c0_11 = arith.constant 0 : index
    %43 = vector.load %arg4[%c0_8, %c0_9, %c0_10, %c0_11] : memref<1x2x4x128xbf16, #tpu.memory_space<vmem>>, vector<1x2x4x128xbf16>
    %44 = vector.shape_cast %43 : vector<1x2x4x128xbf16> to vector<2x4x128xbf16>
    %45 = vector.shape_cast %42 : vector<2x4x128xbf16> to vector<1x2x4x128xbf16>
    tpu.vector_store %arg4[%c0_8, %c0_9, %c0_10, %c0_11], %45 {strides = array<i32>} : memref<1x2x4x128xbf16, #tpu.memory_space<vmem>>, vector<1x2x4x128xbf16>,
    return
  }
  func.func @transform_0(%arg0: i32) -> (i32, i32, i32, i32) {
    %c0_i32 = arith.constant 0 : i32
    %c0_i32_0 = arith.constant 0 : i32
    %c0_i32_1 = arith.constant 0 : i32
    %c0_i32_2 = arith.constant 0 : i32
    return %arg0, %c0_i32, %c0_i32_0, %c0_i32_1 : i32, i32, i32, i32
  }
  func.func @transform_1(%arg0: i32) -> (i32, i32) {
    %c0_i32 = arith.constant 0 : i32
    %c0_i32_0 = arith.constant 0 : i32
    %c0_i32_1 = arith.constant 0 : i32
    return %c0_i32, %c0_i32_0 : i32, i32
  }
  func.func @transform_2(%arg0: i32) -> (i32, i32) {
    %c0_i32 = arith.constant 0 : i32
    %c0_i32_0 = arith.constant 0 : i32
    %c0_i32_1 = arith.constant 0 : i32
    return %c0_i32, %c0_i32_0 : i32, i32
  }
  func.func @transform_3(%arg0: i32) -> (i32, i32, i32, i32) {
    %c0_i32 = arith.constant 0 : i32
    %c0_i32_0 = arith.constant 0 : i32
    %c0_i32_1 = arith.constant 0 : i32
    %c0_i32_2 = arith.constant 0 : i32
    return %arg0, %c0_i32, %c0_i32_0, %c0_i32_1 : i32, i32, i32, i32
  }
}

module attributes {stable_mosaic.version = 11 : i64} {
  func.func @_conv3x3_kernel(%arg0: i32, %arg1: memref<1x4x6x128xbf16, #tpu.memory_space<vmem>>, %arg2: memref<1152x256xbf16, #tpu.memory_space<vmem>>, %arg3: memref<1x256xf32, #tpu.memory_space<vmem>>, %arg4: memref<1x2x4x256xbf16, #tpu.memory_space<vmem>>) attributes {dimension_semantics = [#tpu.dimension_semantics<parallel>], iteration_bounds = array<i64: 4>, scalar_prefetch = 0 : i64, scratch_operands = 0 : i64, tpu.core_type = #tpu.core_type<tc>, window_params = [{transform_indices = @transform_0, window_bounds = array<i64: 1, 4, 6, 128>}, {pipeline_mode = #tpu.pipeline_mode<synchronous>, transform_indices = @transform_1, window_bounds = array<i64: 1152, 256>}, {pipeline_mode = #tpu.pipeline_mode<synchronous>, transform_indices = @transform_2, window_bounds = array<i64: 1, 256>}, {transform_indices = @transform_3, window_bounds = array<i64: 1, 2, 4, 256>}]} {
    %c0 = arith.constant 0 : index
    %c0_0 = arith.constant 0 : index
    %c0_1 = arith.constant 0 : index
    %c0_2 = arith.constant 0 : index
    %0 = vector.load %arg1[%c0, %c0_0, %c0_1, %c0_2] : memref<1x4x6x128xbf16, #tpu.memory_space<vmem>>, vector<1x4x6x128xbf16>
    %1 = vector.shape_cast %0 : vector<1x4x6x128xbf16> to vector<4x6x128xbf16>
    %2 = vector.extract_strided_slice %1 {offsets = [0, 0, 0], sizes = [2, 4, 128], strides = [1, 1, 1]} : vector<4x6x128xbf16> to vector<2x4x128xbf16>
    %3 = vector.shape_cast %2 : vector<2x4x128xbf16> to vector<8x128xbf16>
    %4 = vector.extract_strided_slice %1 {offsets = [0, 1, 0], sizes = [2, 4, 128], strides = [1, 1, 1]} : vector<4x6x128xbf16> to vector<2x4x128xbf16>
    %5 = vector.shape_cast %4 : vector<2x4x128xbf16> to vector<8x128xbf16>
    %6 = vector.extract_strided_slice %1 {offsets = [0, 2, 0], sizes = [2, 4, 128], strides = [1, 1, 1]} : vector<4x6x128xbf16> to vector<2x4x128xbf16>
    %7 = vector.shape_cast %6 : vector<2x4x128xbf16> to vector<8x128xbf16>
    %8 = vector.extract_strided_slice %1 {offsets = [1, 0, 0], sizes = [2, 4, 128], strides = [1, 1, 1]} : vector<4x6x128xbf16> to vector<2x4x128xbf16>
    %9 = vector.shape_cast %8 : vector<2x4x128xbf16> to vector<8x128xbf16>
    %10 = vector.extract_strided_slice %1 {offsets = [1, 1, 0], sizes = [2, 4, 128], strides = [1, 1, 1]} : vector<4x6x128xbf16> to vector<2x4x128xbf16>
    %11 = vector.shape_cast %10 : vector<2x4x128xbf16> to vector<8x128xbf16>
    %12 = vector.extract_strided_slice %1 {offsets = [1, 2, 0], sizes = [2, 4, 128], strides = [1, 1, 1]} : vector<4x6x128xbf16> to vector<2x4x128xbf16>
    %13 = vector.shape_cast %12 : vector<2x4x128xbf16> to vector<8x128xbf16>
    %14 = vector.extract_strided_slice %1 {offsets = [2, 0, 0], sizes = [2, 4, 128], strides = [1, 1, 1]} : vector<4x6x128xbf16> to vector<2x4x128xbf16>
    %15 = vector.shape_cast %14 : vector<2x4x128xbf16> to vector<8x128xbf16>
    %16 = vector.extract_strided_slice %1 {offsets = [2, 1, 0], sizes = [2, 4, 128], strides = [1, 1, 1]} : vector<4x6x128xbf16> to vector<2x4x128xbf16>
    %17 = vector.shape_cast %16 : vector<2x4x128xbf16> to vector<8x128xbf16>
    %18 = vector.extract_strided_slice %1 {offsets = [2, 2, 0], sizes = [2, 4, 128], strides = [1, 1, 1]} : vector<4x6x128xbf16> to vector<2x4x128xbf16>
    %19 = vector.shape_cast %18 : vector<2x4x128xbf16> to vector<8x128xbf16>
    %20 = tpu.concatenate %3, %5, %7, %9, %11, %13, %15, %17, %19 in 1 : vector<8x128xbf16>, vector<8x128xbf16>, vector<8x128xbf16>, vector<8x128xbf16>, vector<8x128xbf16>, vector<8x128xbf16>, vector<8x128xbf16>, vector<8x128xbf16>, vector<8x128xbf16> -> vector<8x1152xbf16>
    %c0_3 = arith.constant 0 : index
    %c0_4 = arith.constant 0 : index
    %21 = vector.load %arg2[%c0_3, %c0_4] : memref<1152x256xbf16, #tpu.memory_space<vmem>>, vector<1152x256xbf16>
    %cst = arith.constant dense<0.000000e+00> : vector<8x256xf32>
    %22 = tpu.matmul %20, %21, %cst {dimension_numbers = #tpu.dot_dimension_numbers<[1], [0], [0], [1], [0, 0, 1, 1], [], []>} : vector<8x1152xbf16>, vector<1152x256xbf16>, vector<8x256xf32> -> vector<8x256xf32>
    %c0_5 = arith.constant 0 : index
    %c0_6 = arith.constant 0 : index
    %23 = vector.load %arg3[%c0_5, %c0_6] : memref<1x256xf32, #tpu.memory_space<vmem>>, vector<1x256xf32>
    %24 = vector.shape_cast %23 : vector<1x256xf32> to vector<256xf32>
    %25 = vector.shape_cast %24 : vector<256xf32> to vector<1x256xf32>
    %26 = vector.broadcast %25 : vector<1x256xf32> to vector<8x256xf32>
    %27 = arith.addf %22, %26 : vector<8x256xf32>
    %28 = vector.shape_cast %27 : vector<8x256xf32> to vector<2x4x256xf32>
    %29 = arith.truncf %28 : vector<2x4x256xf32> to vector<2x4x256xbf16>
    %c0_7 = arith.constant 0 : index
    %c0_8 = arith.constant 0 : index
    %c0_9 = arith.constant 0 : index
    %c0_10 = arith.constant 0 : index
    %30 = vector.load %arg4[%c0_7, %c0_8, %c0_9, %c0_10] : memref<1x2x4x256xbf16, #tpu.memory_space<vmem>>, vector<1x2x4x256xbf16>
    %31 = vector.shape_cast %30 : vector<1x2x4x256xbf16> to vector<2x4x256xbf16>
    %32 = vector.shape_cast %29 : vector<2x4x256xbf16> to vector<1x2x4x256xbf16>
    tpu.vector_store %arg4[%c0_7, %c0_8, %c0_9, %c0_10], %32 {strides = array<i32>} : memref<1x2x4x256xbf16, #tpu.memory_space<vmem>>, vector<1x2x4x256xbf16>,
    return
  }
  func.func @transform_0(%arg0: i32) -> (i32, i32, i32, i32) {
    %c0_i32 = arith.constant 0 : i32
    %c0_i32_0 = arith.constant 0 : i32
    %c0_i32_1 = arith.constant 0 : i32
    %c0_i32_2 = arith.constant 0 : i32
    return %arg0, %c0_i32, %c0_i32_0, %c0_i32_1 : i32, i32, i32, i32
  }
  func.func @transform_1(%arg0: i32) -> (i32, i32) {
    %c0_i32 = arith.constant 0 : i32
    %c0_i32_0 = arith.constant 0 : i32
    %c0_i32_1 = arith.constant 0 : i32
    return %c0_i32, %c0_i32_0 : i32, i32
  }
  func.func @transform_2(%arg0: i32) -> (i32, i32) {
    %c0_i32 = arith.constant 0 : i32
    %c0_i32_0 = arith.constant 0 : i32
    %c0_i32_1 = arith.constant 0 : i32
    return %c0_i32, %c0_i32_0 : i32, i32
  }
  func.func @transform_3(%arg0: i32) -> (i32, i32, i32, i32) {
    %c0_i32 = arith.constant 0 : i32
    %c0_i32_0 = arith.constant 0 : i32
    %c0_i32_1 = arith.constant 0 : i32
    %c0_i32_2 = arith.constant 0 : i32
    return %arg0, %c0_i32, %c0_i32_0, %c0_i32_1 : i32, i32, i32, i32
  }
}

module attributes {stable_mosaic.version = 11 : i64} {
  func.func @_convt3x3_s2_kernel(%arg0: i32, %arg1: memref<1x3x5x256xbf16, #tpu.memory_space<vmem>>, %arg2: memref<2304x128xbf16, #tpu.memory_space<vmem>>, %arg3: memref<1x128xf32, #tpu.memory_space<vmem>>, %arg4: memref<1x2x4x512xbf16, #tpu.memory_space<vmem>>) attributes {dimension_semantics = [#tpu.dimension_semantics<parallel>], iteration_bounds = array<i64: 4>, scalar_prefetch = 0 : i64, scratch_operands = 0 : i64, tpu.core_type = #tpu.core_type<tc>, window_params = [{transform_indices = @transform_0, window_bounds = array<i64: 1, 3, 5, 256>}, {pipeline_mode = #tpu.pipeline_mode<synchronous>, transform_indices = @transform_1, window_bounds = array<i64: 2304, 128>}, {pipeline_mode = #tpu.pipeline_mode<synchronous>, transform_indices = @transform_2, window_bounds = array<i64: 1, 128>}, {transform_indices = @transform_3, window_bounds = array<i64: 1, 2, 4, 512>}]} {
    %c0 = arith.constant 0 : index
    %c0_0 = arith.constant 0 : index
    %c0_1 = arith.constant 0 : index
    %c0_2 = arith.constant 0 : index
    %0 = vector.load %arg1[%c0, %c0_0, %c0_1, %c0_2] : memref<1x3x5x256xbf16, #tpu.memory_space<vmem>>, vector<1x3x5x256xbf16>
    %1 = vector.shape_cast %0 : vector<1x3x5x256xbf16> to vector<3x5x256xbf16>
    %2 = vector.extract_strided_slice %1 {offsets = [0, 0, 0], sizes = [2, 4, 256], strides = [1, 1, 1]} : vector<3x5x256xbf16> to vector<2x4x256xbf16>
    %3 = vector.shape_cast %2 : vector<2x4x256xbf16> to vector<8x256xbf16>
    %4 = vector.extract_strided_slice %1 {offsets = [0, 1, 0], sizes = [2, 4, 256], strides = [1, 1, 1]} : vector<3x5x256xbf16> to vector<2x4x256xbf16>
    %5 = vector.shape_cast %4 : vector<2x4x256xbf16> to vector<8x256xbf16>
    %6 = vector.extract_strided_slice %1 {offsets = [1, 0, 0], sizes = [2, 4, 256], strides = [1, 1, 1]} : vector<3x5x256xbf16> to vector<2x4x256xbf16>
    %7 = vector.shape_cast %6 : vector<2x4x256xbf16> to vector<8x256xbf16>
    %8 = vector.extract_strided_slice %1 {offsets = [1, 1, 0], sizes = [2, 4, 256], strides = [1, 1, 1]} : vector<3x5x256xbf16> to vector<2x4x256xbf16>
    %9 = vector.shape_cast %8 : vector<2x4x256xbf16> to vector<8x256xbf16>
    %c0_3 = arith.constant 0 : index
    %c0_4 = arith.constant 0 : index
    %10 = vector.load %arg3[%c0_3, %c0_4] : memref<1x128xf32, #tpu.memory_space<vmem>>, vector<1x128xf32>
    %11 = vector.shape_cast %10 : vector<1x128xf32> to vector<128xf32>
    %c0_5 = arith.constant 0 : index
    %c0_6 = arith.constant 0 : index
    %12 = vector.load %arg2[%c0_5, %c0_6] : memref<2304x128xbf16, #tpu.memory_space<vmem>>, vector<256x128xbf16>
    %cst = arith.constant dense<0.000000e+00> : vector<8x128xf32>
    %13 = tpu.matmul %3, %12, %cst {dimension_numbers = #tpu.dot_dimension_numbers<[1], [0], [0], [1], [0, 0, 1, 1], [], []>} : vector<8x256xbf16>, vector<256x128xbf16>, vector<8x128xf32> -> vector<8x128xf32>
    %14 = vector.shape_cast %11 : vector<128xf32> to vector<1x128xf32>
    %15 = vector.broadcast %14 : vector<1x128xf32> to vector<8x128xf32>
    %16 = arith.addf %13, %15 : vector<8x128xf32>
    %17 = tpu.concatenate %3, %5 in 1 : vector<8x256xbf16>, vector<8x256xbf16> -> vector<8x512xbf16>
    %c256 = arith.constant 256 : index
    %c0_7 = arith.constant 0 : index
    %18 = vector.load %arg2[%c256, %c0_7] : memref<2304x128xbf16, #tpu.memory_space<vmem>>, vector<512x128xbf16>
    %cst_8 = arith.constant dense<0.000000e+00> : vector<8x128xf32>
    %19 = tpu.matmul %17, %18, %cst_8 {dimension_numbers = #tpu.dot_dimension_numbers<[1], [0], [0], [1], [0, 0, 1, 1], [], []>} : vector<8x512xbf16>, vector<512x128xbf16>, vector<8x128xf32> -> vector<8x128xf32>
    %20 = vector.shape_cast %11 : vector<128xf32> to vector<1x128xf32>
    %21 = vector.broadcast %20 : vector<1x128xf32> to vector<8x128xf32>
    %22 = arith.addf %19, %21 : vector<8x128xf32>
    %23 = tpu.concatenate %3, %7 in 1 : vector<8x256xbf16>, vector<8x256xbf16> -> vector<8x512xbf16>
    %c768 = arith.constant 768 : index
    %c0_9 = arith.constant 0 : index
    %24 = vector.load %arg2[%c768, %c0_9] : memref<2304x128xbf16, #tpu.memory_space<vmem>>, vector<512x128xbf16>
    %cst_10 = arith.constant dense<0.000000e+00> : vector<8x128xf32>
    %25 = tpu.matmul %23, %24, %cst_10 {dimension_numbers = #tpu.dot_dimension_numbers<[1], [0], [0], [1], [0, 0, 1, 1], [], []>} : vector<8x512xbf16>, vector<512x128xbf16>, vector<8x128xf32> -> vector<8x128xf32>
    %26 = vector.shape_cast %11 : vector<128xf32> to vector<1x128xf32>
    %27 = vector.broadcast %26 : vector<1x128xf32> to vector<8x128xf32>
    %28 = arith.addf %25, %27 : vector<8x128xf32>
    %29 = tpu.concatenate %3, %5, %7, %9 in 1 : vector<8x256xbf16>, vector<8x256xbf16>, vector<8x256xbf16>, vector<8x256xbf16> -> vector<8x1024xbf16>
    %c1280 = arith.constant 1280 : index
    %c0_11 = arith.constant 0 : index
    %30 = vector.load %arg2[%c1280, %c0_11] : memref<2304x128xbf16, #tpu.memory_space<vmem>>, vector<1024x128xbf16>
    %cst_12 = arith.constant dense<0.000000e+00> : vector<8x128xf32>
    %31 = tpu.matmul %29, %30, %cst_12 {dimension_numbers = #tpu.dot_dimension_numbers<[1], [0], [0], [1], [0, 0, 1, 1], [], []>} : vector<8x1024xbf16>, vector<1024x128xbf16>, vector<8x128xf32> -> vector<8x128xf32>
    %32 = vector.shape_cast %11 : vector<128xf32> to vector<1x128xf32>
    %33 = vector.broadcast %32 : vector<1x128xf32> to vector<8x128xf32>
    %34 = arith.addf %31, %33 : vector<8x128xf32>
    %cst_13 = arith.constant 0.000000e+00 : f32
    %35 = vector.broadcast %cst_13 : f32 to vector<8x128xf32>
    %36 = arith.maximumf %16, %35 : vector<8x128xf32>
    %cst_14 = arith.constant 0.000000e+00 : f32
    %37 = vector.broadcast %cst_14 : f32 to vector<8x128xf32>
    %38 = arith.maximumf %22, %37 : vector<8x128xf32>
    %cst_15 = arith.constant 0.000000e+00 : f32
    %39 = vector.broadcast %cst_15 : f32 to vector<8x128xf32>
    %40 = arith.maximumf %28, %39 : vector<8x128xf32>
    %cst_16 = arith.constant 0.000000e+00 : f32
    %41 = vector.broadcast %cst_16 : f32 to vector<8x128xf32>
    %42 = arith.maximumf %34, %41 : vector<8x128xf32>
    %43 = tpu.concatenate %36, %38, %40, %42 in 1 : vector<8x128xf32>, vector<8x128xf32>, vector<8x128xf32>, vector<8x128xf32> -> vector<8x512xf32>
    %44 = vector.shape_cast %43 : vector<8x512xf32> to vector<2x4x512xf32>
    %45 = arith.truncf %44 : vector<2x4x512xf32> to vector<2x4x512xbf16>
    %c0_17 = arith.constant 0 : index
    %c0_18 = arith.constant 0 : index
    %c0_19 = arith.constant 0 : index
    %c0_20 = arith.constant 0 : index
    %46 = vector.load %arg4[%c0_17, %c0_18, %c0_19, %c0_20] : memref<1x2x4x512xbf16, #tpu.memory_space<vmem>>, vector<1x2x4x512xbf16>
    %47 = vector.shape_cast %46 : vector<1x2x4x512xbf16> to vector<2x4x512xbf16>
    %48 = vector.shape_cast %45 : vector<2x4x512xbf16> to vector<1x2x4x512xbf16>
    tpu.vector_store %arg4[%c0_17, %c0_18, %c0_19, %c0_20], %48 {strides = array<i32>} : memref<1x2x4x512xbf16, #tpu.memory_space<vmem>>, vector<1x2x4x512xbf16>,
    return
  }
  func.func @transform_0(%arg0: i32) -> (i32, i32, i32, i32) {
    %c0_i32 = arith.constant 0 : i32
    %c0_i32_0 = arith.constant 0 : i32
    %c0_i32_1 = arith.constant 0 : i32
    %c0_i32_2 = arith.constant 0 : i32
    return %arg0, %c0_i32, %c0_i32_0, %c0_i32_1 : i32, i32, i32, i32
  }
  func.func @transform_1(%arg0: i32) -> (i32, i32) {
    %c0_i32 = arith.constant 0 : i32
    %c0_i32_0 = arith.constant 0 : i32
    %c0_i32_1 = arith.constant 0 : i32
    return %c0_i32, %c0_i32_0 : i32, i32
  }
  func.func @transform_2(%arg0: i32) -> (i32, i32) {
    %c0_i32 = arith.constant 0 : i32
    %c0_i32_0 = arith.constant 0 : i32
    %c0_i32_1 = arith.constant 0 : i32
    return %c0_i32, %c0_i32_0 : i32, i32
  }
  func.func @transform_3(%arg0: i32) -> (i32, i32, i32, i32) {
    %c0_i32 = arith.constant 0 : i32
    %c0_i32_0 = arith.constant 0 : i32
    %c0_i32_1 = arith.constant 0 : i32
    %c0_i32_2 = arith.constant 0 : i32
    return %arg0, %c0_i32, %c0_i32_0, %c0_i32_1 : i32, i32, i32, i32
  }
}

module attributes {stable_mosaic.version = 11 : i64} {
  func.func @_convt3x3_s2_kernel(%arg0: i32, %arg1: memref<1x5x9x128xbf16, #tpu.memory_space<vmem>>, %arg2: memref<1152x64xbf16, #tpu.memory_space<vmem>>, %arg3: memref<1x64xf32, #tpu.memory_space<vmem>>, %arg4: memref<1x4x8x256xbf16, #tpu.memory_space<vmem>>) attributes {dimension_semantics = [#tpu.dimension_semantics<parallel>], iteration_bounds = array<i64: 4>, scalar_prefetch = 0 : i64, scratch_operands = 0 : i64, tpu.core_type = #tpu.core_type<tc>, window_params = [{transform_indices = @transform_0, window_bounds = array<i64: 1, 5, 9, 128>}, {pipeline_mode = #tpu.pipeline_mode<synchronous>, transform_indices = @transform_1, window_bounds = array<i64: 1152, 64>}, {pipeline_mode = #tpu.pipeline_mode<synchronous>, transform_indices = @transform_2, window_bounds = array<i64: 1, 64>}, {transform_indices = @transform_3, window_bounds = array<i64: 1, 4, 8, 256>}]} {
    %c0 = arith.constant 0 : index
    %c0_0 = arith.constant 0 : index
    %c0_1 = arith.constant 0 : index
    %c0_2 = arith.constant 0 : index
    %0 = vector.load %arg1[%c0, %c0_0, %c0_1, %c0_2] : memref<1x5x9x128xbf16, #tpu.memory_space<vmem>>, vector<1x5x9x128xbf16>
    %1 = vector.shape_cast %0 : vector<1x5x9x128xbf16> to vector<5x9x128xbf16>
    %2 = vector.extract_strided_slice %1 {offsets = [0, 0, 0], sizes = [4, 8, 128], strides = [1, 1, 1]} : vector<5x9x128xbf16> to vector<4x8x128xbf16>
    %3 = vector.shape_cast %2 : vector<4x8x128xbf16> to vector<32x128xbf16>
    %4 = vector.extract_strided_slice %1 {offsets = [0, 1, 0], sizes = [4, 8, 128], strides = [1, 1, 1]} : vector<5x9x128xbf16> to vector<4x8x128xbf16>
    %5 = vector.shape_cast %4 : vector<4x8x128xbf16> to vector<32x128xbf16>
    %6 = vector.extract_strided_slice %1 {offsets = [1, 0, 0], sizes = [4, 8, 128], strides = [1, 1, 1]} : vector<5x9x128xbf16> to vector<4x8x128xbf16>
    %7 = vector.shape_cast %6 : vector<4x8x128xbf16> to vector<32x128xbf16>
    %8 = vector.extract_strided_slice %1 {offsets = [1, 1, 0], sizes = [4, 8, 128], strides = [1, 1, 1]} : vector<5x9x128xbf16> to vector<4x8x128xbf16>
    %9 = vector.shape_cast %8 : vector<4x8x128xbf16> to vector<32x128xbf16>
    %c0_3 = arith.constant 0 : index
    %c0_4 = arith.constant 0 : index
    %10 = vector.load %arg3[%c0_3, %c0_4] : memref<1x64xf32, #tpu.memory_space<vmem>>, vector<1x64xf32>
    %11 = vector.shape_cast %10 : vector<1x64xf32> to vector<64xf32>
    %c0_5 = arith.constant 0 : index
    %c0_6 = arith.constant 0 : index
    %12 = vector.load %arg2[%c0_5, %c0_6] : memref<1152x64xbf16, #tpu.memory_space<vmem>>, vector<128x64xbf16>
    %cst = arith.constant dense<0.000000e+00> : vector<32x64xf32>
    %13 = tpu.matmul %3, %12, %cst {dimension_numbers = #tpu.dot_dimension_numbers<[1], [0], [0], [1], [0, 0, 1, 1], [], []>} : vector<32x128xbf16>, vector<128x64xbf16>, vector<32x64xf32> -> vector<32x64xf32>
    %14 = vector.shape_cast %11 : vector<64xf32> to vector<1x64xf32>
    %15 = vector.broadcast %14 : vector<1x64xf32> to vector<32x64xf32>
    %16 = arith.addf %13, %15 : vector<32x64xf32>
    %17 = tpu.concatenate %3, %5 in 1 : vector<32x128xbf16>, vector<32x128xbf16> -> vector<32x256xbf16>
    %c128 = arith.constant 128 : index
    %c0_7 = arith.constant 0 : index
    %18 = vector.load %arg2[%c128, %c0_7] : memref<1152x64xbf16, #tpu.memory_space<vmem>>, vector<256x64xbf16>
    %cst_8 = arith.constant dense<0.000000e+00> : vector<32x64xf32>
    %19 = tpu.matmul %17, %18, %cst_8 {dimension_numbers = #tpu.dot_dimension_numbers<[1], [0], [0], [1], [0, 0, 1, 1], [], []>} : vector<32x256xbf16>, vector<256x64xbf16>, vector<32x64xf32> -> vector<32x64xf32>
    %20 = vector.shape_cast %11 : vector<64xf32> to vector<1x64xf32>
    %21 = vector.broadcast %20 : vector<1x64xf32> to vector<32x64xf32>
    %22 = arith.addf %19, %21 : vector<32x64xf32>
    %23 = tpu.concatenate %3, %7 in 1 : vector<32x128xbf16>, vector<32x128xbf16> -> vector<32x256xbf16>
    %c384 = arith.constant 384 : index
    %c0_9 = arith.constant 0 : index
    %24 = vector.load %arg2[%c384, %c0_9] : memref<1152x64xbf16, #tpu.memory_space<vmem>>, vector<256x64xbf16>
    %cst_10 = arith.constant dense<0.000000e+00> : vector<32x64xf32>
    %25 = tpu.matmul %23, %24, %cst_10 {dimension_numbers = #tpu.dot_dimension_numbers<[1], [0], [0], [1], [0, 0, 1, 1], [], []>} : vector<32x256xbf16>, vector<256x64xbf16>, vector<32x64xf32> -> vector<32x64xf32>
    %26 = vector.shape_cast %11 : vector<64xf32> to vector<1x64xf32>
    %27 = vector.broadcast %26 : vector<1x64xf32> to vector<32x64xf32>
    %28 = arith.addf %25, %27 : vector<32x64xf32>
    %29 = tpu.concatenate %3, %5, %7, %9 in 1 : vector<32x128xbf16>, vector<32x128xbf16>, vector<32x128xbf16>, vector<32x128xbf16> -> vector<32x512xbf16>
    %c640 = arith.constant 640 : index
    %c0_11 = arith.constant 0 : index
    %30 = vector.load %arg2[%c640, %c0_11] : memref<1152x64xbf16, #tpu.memory_space<vmem>>, vector<512x64xbf16>
    %cst_12 = arith.constant dense<0.000000e+00> : vector<32x64xf32>
    %31 = tpu.matmul %29, %30, %cst_12 {dimension_numbers = #tpu.dot_dimension_numbers<[1], [0], [0], [1], [0, 0, 1, 1], [], []>} : vector<32x512xbf16>, vector<512x64xbf16>, vector<32x64xf32> -> vector<32x64xf32>
    %32 = vector.shape_cast %11 : vector<64xf32> to vector<1x64xf32>
    %33 = vector.broadcast %32 : vector<1x64xf32> to vector<32x64xf32>
    %34 = arith.addf %31, %33 : vector<32x64xf32>
    %cst_13 = arith.constant 0.000000e+00 : f32
    %35 = vector.broadcast %cst_13 : f32 to vector<32x64xf32>
    %36 = arith.maximumf %16, %35 : vector<32x64xf32>
    %cst_14 = arith.constant 0.000000e+00 : f32
    %37 = vector.broadcast %cst_14 : f32 to vector<32x64xf32>
    %38 = arith.maximumf %22, %37 : vector<32x64xf32>
    %cst_15 = arith.constant 0.000000e+00 : f32
    %39 = vector.broadcast %cst_15 : f32 to vector<32x64xf32>
    %40 = arith.maximumf %28, %39 : vector<32x64xf32>
    %cst_16 = arith.constant 0.000000e+00 : f32
    %41 = vector.broadcast %cst_16 : f32 to vector<32x64xf32>
    %42 = arith.maximumf %34, %41 : vector<32x64xf32>
    %43 = tpu.concatenate %36, %38, %40, %42 in 1 : vector<32x64xf32>, vector<32x64xf32>, vector<32x64xf32>, vector<32x64xf32> -> vector<32x256xf32>
    %44 = vector.shape_cast %43 : vector<32x256xf32> to vector<4x8x256xf32>
    %45 = arith.truncf %44 : vector<4x8x256xf32> to vector<4x8x256xbf16>
    %c0_17 = arith.constant 0 : index
    %c0_18 = arith.constant 0 : index
    %c0_19 = arith.constant 0 : index
    %c0_20 = arith.constant 0 : index
    %46 = vector.load %arg4[%c0_17, %c0_18, %c0_19, %c0_20] : memref<1x4x8x256xbf16, #tpu.memory_space<vmem>>, vector<1x4x8x256xbf16>
    %47 = vector.shape_cast %46 : vector<1x4x8x256xbf16> to vector<4x8x256xbf16>
    %48 = vector.shape_cast %45 : vector<4x8x256xbf16> to vector<1x4x8x256xbf16>
    tpu.vector_store %arg4[%c0_17, %c0_18, %c0_19, %c0_20], %48 {strides = array<i32>} : memref<1x4x8x256xbf16, #tpu.memory_space<vmem>>, vector<1x4x8x256xbf16>,
    return
  }
  func.func @transform_0(%arg0: i32) -> (i32, i32, i32, i32) {
    %c0_i32 = arith.constant 0 : i32
    %c0_i32_0 = arith.constant 0 : i32
    %c0_i32_1 = arith.constant 0 : i32
    %c0_i32_2 = arith.constant 0 : i32
    return %arg0, %c0_i32, %c0_i32_0, %c0_i32_1 : i32, i32, i32, i32
  }
  func.func @transform_1(%arg0: i32) -> (i32, i32) {
    %c0_i32 = arith.constant 0 : i32
    %c0_i32_0 = arith.constant 0 : i32
    %c0_i32_1 = arith.constant 0 : i32
    return %c0_i32, %c0_i32_0 : i32, i32
  }
  func.func @transform_2(%arg0: i32) -> (i32, i32) {
    %c0_i32 = arith.constant 0 : i32
    %c0_i32_0 = arith.constant 0 : i32
    %c0_i32_1 = arith.constant 0 : i32
    return %c0_i32, %c0_i32_0 : i32, i32
  }
  func.func @transform_3(%arg0: i32) -> (i32, i32, i32, i32) {
    %c0_i32 = arith.constant 0 : i32
    %c0_i32_0 = arith.constant 0 : i32
    %c0_i32_1 = arith.constant 0 : i32
    %c0_i32_2 = arith.constant 0 : i32
    return %arg0, %c0_i32, %c0_i32_0, %c0_i32_1 : i32, i32, i32, i32
  }
}

module attributes {stable_mosaic.version = 11 : i64} {
  func.func @_conv3x3_kernel(%arg0: i32, %arg1: memref<1x10x18x64xbf16, #tpu.memory_space<vmem>>, %arg2: memref<576x3xbf16, #tpu.memory_space<vmem>>, %arg3: memref<1x3xf32, #tpu.memory_space<vmem>>, %arg4: memref<1x3x128xf32, #tpu.memory_space<vmem>>) attributes {dimension_semantics = [#tpu.dimension_semantics<parallel>], iteration_bounds = array<i64: 4>, scalar_prefetch = 0 : i64, scratch_operands = 0 : i64, tpu.core_type = #tpu.core_type<tc>, window_params = [{transform_indices = @transform_0, window_bounds = array<i64: 1, 10, 18, 64>}, {pipeline_mode = #tpu.pipeline_mode<synchronous>, transform_indices = @transform_1, window_bounds = array<i64: 576, 3>}, {pipeline_mode = #tpu.pipeline_mode<synchronous>, transform_indices = @transform_2, window_bounds = array<i64: 1, 3>}, {transform_indices = @transform_3, window_bounds = array<i64: 1, 3, 128>}]} {
    %c0 = arith.constant 0 : index
    %c0_0 = arith.constant 0 : index
    %c0_1 = arith.constant 0 : index
    %c0_2 = arith.constant 0 : index
    %0 = vector.load %arg1[%c0, %c0_0, %c0_1, %c0_2] : memref<1x10x18x64xbf16, #tpu.memory_space<vmem>>, vector<1x10x18x64xbf16>
    %1 = vector.shape_cast %0 : vector<1x10x18x64xbf16> to vector<10x18x64xbf16>
    %2 = vector.extract_strided_slice %1 {offsets = [0, 0, 0], sizes = [8, 16, 64], strides = [1, 1, 1]} : vector<10x18x64xbf16> to vector<8x16x64xbf16>
    %3 = vector.shape_cast %2 : vector<8x16x64xbf16> to vector<128x64xbf16>
    %4 = vector.extract_strided_slice %1 {offsets = [0, 1, 0], sizes = [8, 16, 64], strides = [1, 1, 1]} : vector<10x18x64xbf16> to vector<8x16x64xbf16>
    %5 = vector.shape_cast %4 : vector<8x16x64xbf16> to vector<128x64xbf16>
    %6 = vector.extract_strided_slice %1 {offsets = [0, 2, 0], sizes = [8, 16, 64], strides = [1, 1, 1]} : vector<10x18x64xbf16> to vector<8x16x64xbf16>
    %7 = vector.shape_cast %6 : vector<8x16x64xbf16> to vector<128x64xbf16>
    %8 = vector.extract_strided_slice %1 {offsets = [1, 0, 0], sizes = [8, 16, 64], strides = [1, 1, 1]} : vector<10x18x64xbf16> to vector<8x16x64xbf16>
    %9 = vector.shape_cast %8 : vector<8x16x64xbf16> to vector<128x64xbf16>
    %10 = vector.extract_strided_slice %1 {offsets = [1, 1, 0], sizes = [8, 16, 64], strides = [1, 1, 1]} : vector<10x18x64xbf16> to vector<8x16x64xbf16>
    %11 = vector.shape_cast %10 : vector<8x16x64xbf16> to vector<128x64xbf16>
    %12 = vector.extract_strided_slice %1 {offsets = [1, 2, 0], sizes = [8, 16, 64], strides = [1, 1, 1]} : vector<10x18x64xbf16> to vector<8x16x64xbf16>
    %13 = vector.shape_cast %12 : vector<8x16x64xbf16> to vector<128x64xbf16>
    %14 = vector.extract_strided_slice %1 {offsets = [2, 0, 0], sizes = [8, 16, 64], strides = [1, 1, 1]} : vector<10x18x64xbf16> to vector<8x16x64xbf16>
    %15 = vector.shape_cast %14 : vector<8x16x64xbf16> to vector<128x64xbf16>
    %16 = vector.extract_strided_slice %1 {offsets = [2, 1, 0], sizes = [8, 16, 64], strides = [1, 1, 1]} : vector<10x18x64xbf16> to vector<8x16x64xbf16>
    %17 = vector.shape_cast %16 : vector<8x16x64xbf16> to vector<128x64xbf16>
    %18 = vector.extract_strided_slice %1 {offsets = [2, 2, 0], sizes = [8, 16, 64], strides = [1, 1, 1]} : vector<10x18x64xbf16> to vector<8x16x64xbf16>
    %19 = vector.shape_cast %18 : vector<8x16x64xbf16> to vector<128x64xbf16>
    %20 = tpu.concatenate %3, %5, %7, %9, %11, %13, %15, %17, %19 in 1 : vector<128x64xbf16>, vector<128x64xbf16>, vector<128x64xbf16>, vector<128x64xbf16>, vector<128x64xbf16>, vector<128x64xbf16>, vector<128x64xbf16>, vector<128x64xbf16>, vector<128x64xbf16> -> vector<128x576xbf16>
    %c0_3 = arith.constant 0 : index
    %c0_4 = arith.constant 0 : index
    %21 = vector.load %arg2[%c0_3, %c0_4] : memref<576x3xbf16, #tpu.memory_space<vmem>>, vector<576x3xbf16>
    %cst = arith.constant dense<0.000000e+00> : vector<128x3xf32>
    %22 = tpu.matmul %20, %21, %cst {dimension_numbers = #tpu.dot_dimension_numbers<[1], [0], [0], [1], [0, 0, 1, 1], [], []>} : vector<128x576xbf16>, vector<576x3xbf16>, vector<128x3xf32> -> vector<128x3xf32>
    %c0_5 = arith.constant 0 : index
    %c0_6 = arith.constant 0 : index
    %23 = vector.load %arg3[%c0_5, %c0_6] : memref<1x3xf32, #tpu.memory_space<vmem>>, vector<1x3xf32>
    %24 = vector.shape_cast %23 : vector<1x3xf32> to vector<3xf32>
    %25 = vector.shape_cast %24 : vector<3xf32> to vector<1x3xf32>
    %26 = vector.broadcast %25 : vector<1x3xf32> to vector<128x3xf32>
    %27 = arith.addf %22, %26 : vector<128x3xf32>
    %28 = arith.negf %27 : vector<128x3xf32>
    %29 = math.exp %28 : vector<128x3xf32>
    %cst_7 = arith.constant 1.000000e+00 : f32
    %30 = vector.broadcast %cst_7 : f32 to vector<128x3xf32>
    %31 = arith.addf %30, %29 : vector<128x3xf32>
    %32 = arith.divf %30, %31 : vector<128x3xf32>
    %33 = tpu.transpose %32, [1, 0] : vector<128x3xf32> -> vector<3x128xf32>
    %c0_8 = arith.constant 0 : index
    %c0_9 = arith.constant 0 : index
    %c0_10 = arith.constant 0 : index
    %34 = vector.load %arg4[%c0_8, %c0_9, %c0_10] : memref<1x3x128xf32, #tpu.memory_space<vmem>>, vector<1x3x128xf32>
    %35 = vector.shape_cast %34 : vector<1x3x128xf32> to vector<3x128xf32>
    %36 = vector.shape_cast %33 : vector<3x128xf32> to vector<1x3x128xf32>
    tpu.vector_store %arg4[%c0_8, %c0_9, %c0_10], %36 {strides = array<i32>} : memref<1x3x128xf32, #tpu.memory_space<vmem>>, vector<1x3x128xf32>,
    return
  }
  func.func @transform_0(%arg0: i32) -> (i32, i32, i32, i32) {
    %c0_i32 = arith.constant 0 : i32
    %c0_i32_0 = arith.constant 0 : i32
    %c0_i32_1 = arith.constant 0 : i32
    %c0_i32_2 = arith.constant 0 : i32
    return %arg0, %c0_i32, %c0_i32_0, %c0_i32_1 : i32, i32, i32, i32
  }
  func.func @transform_1(%arg0: i32) -> (i32, i32) {
    %c0_i32 = arith.constant 0 : i32
    %c0_i32_0 = arith.constant 0 : i32
    %c0_i32_1 = arith.constant 0 : i32
    return %c0_i32, %c0_i32_0 : i32, i32
  }
  func.func @transform_2(%arg0: i32) -> (i32, i32) {
    %c0_i32 = arith.constant 0 : i32
    %c0_i32_0 = arith.constant 0 : i32
    %c0_i32_1 = arith.constant 0 : i32
    return %c0_i32, %c0_i32_0 : i32, i32
  }
  func.func @transform_3(%arg0: i32) -> (i32, i32, i32) {
    %c0_i32 = arith.constant 0 : i32
    %c0_i32_0 = arith.constant 0 : i32
    %c0_i32_1 = arith.constant 0 : i32
    return %arg0, %c0_i32, %c0_i32_0 : i32, i32, i32
  }
}

</mosaic_0001>

<bundles_post_ra>
// kernel: interpolation_model.7
= control target key start
LH: loop header
LB: loop body
LE: loop exit
PB: predicated region body
PF: predicated region fallthrough
CT: control target
= control target key end

     0   :  { %s1468_s12 = smov 0   ;;  %s1800_s0 = inlined_call_operand.vmem [shape: bf16[4,6,10,64], index: 0, kind: input, shape index: {}]   ;;  %s1801_s1 = inlined_call_operand.vmem [shape: bf16[576,128], index: 1, kind: input, shape index: {}]   ;;  %s1802_s2 = inlined_call_operand.vmem [shape: f32[1,128], index: 2, kind: input, shape index: {}]   ;;  %s1803_s3 = inlined_call_operand.vmem [shape: bf16[4,2,4,128], index: 3, kind: output, shape index: {}]  }
   0x1 LB: > { %s1223_s13 = sadd.s32 4294967295, %s1444_s12   ;;  %p1227_p0 = scmp.ge.s32.totalorder %s1444_s12, 1  ;;  %s1444_s12 = sphi %s1468_s12, %s13_s12  }
   0x2   : > { %p137_p1 = scmp.lt.s32.totalorder %s1444_s12, 5 }
   0x4   : > { %p138_p2 = pnand %p1227_p0, %p137_p1 }
   0x5   : > { %p161_p3 = scmp.lt.s32.totalorder (!%p138_p2), %s1223_s13, 3  ;;  %s1446_s28 = smov (!%p138_p2), 64  }
   0x6   : > { %141 = sbr.rel (%p138_p2) target bundleno = 402 (0x192), region = 32 }
   0xb   : > { %s1809_s13 = smov (!%p161_p3, %s1223_s13), 3  ;;  %v1399_v0 = vld [vmem:[%s1801_s1 + $0x78] sm:$0xff]   ;;  %vm184_vm0 = vsmask.f32 3328  ;;  %vm185_vm1 = vsmask.f32 7440 }
   0xc   : > { %v1400_v1 = vld [vmem:[%s1801_s1 + $0x38] sm:$0xff]   ;;  %s1386_s18 = smul.u32 48, %s1809_s13  ;;  %1312 = vmatprep.subr.bf16.mxu0 %v1399_v0  ;;  %v1401_v2 = vld [vmem:[%s1801_s1 + $0x70] sm:$0xff]   ;;  %vm251_vm2 = vcmask 1042432   ;;  %vm252_vm3 = vcmask 1046532   ;;  %vm1543_vm4 = vmor %vm184_vm0, %vm185_vm1  ;;  %vm357_vm6 = vcmask 523264  }
   0xd   : > { %1313 = vmatpush3.bf16.msra.mxu0 %v1400_v1  ;;  %v1402_v3 = vld [vmem:[%s1801_s1 + $0x30] sm:$0xff]   ;;  %v1403_v4 = vld [vmem:[%s1801_s1 + $0xf8] sm:$0xff]   ;;  %vm1553_vm5 = vmor %vm251_vm2, %vm252_vm3  ;;  %vm1134_vm7 = vcmask 1041409   ;;  %vm1137_vm8 = vcmask 1042434   ;;  %s1311_s19 = sshll.u32 %s1809_s13, 2  ;;  %vm1140_vm9 = vcmask 1043459  }
   0xe   : > { %s1494_s25 = scalar_lea.vmem %s1800_s0, %s1386_s18  ;;  %1314 = vmatprep.subr.bf16.mxu0 %v1401_v2  ;;  %1340 = vmatprep.subr.bf16.mxu1 %v1403_v4  ;;  %v1404_v35 = vld [vmem:[%s1801_s1 + $0xb8] sm:$0xff]   ;;  %v1405_v57 = vld [vmem:[%s1801_s1 + $0x68] sm:$0xff]   ;;  %v1408_v4 = vld [vmem:[%s1801_s1 + $0xb0] sm:$0xff]   ;;  %s170_s13 = scalar_lea.vmem %s1803_s3, %s1311_s19 }
   0xf   : > { %v1500_v5 = vld [vmem:[%s1494_s25 + $0x8] sm:$0xf]  ;;  %v1503_v6 = vld [vmem:[%s1494_s25 + $0x10] sm:$0xf]  ;;  %v1506_v7 = vld [vmem:[%s1494_s25 + $0x14] sm:$0x1]  ;;  %1341 = vmatpush3.bf16.msra.mxu1 %v1404_v35 }
  0x10   : > { %v1243_v8 = vcombine.low %v1500_v5, %v1503_v6  ;;  %v1511_v9 = vld [vmem:[%s1494_s25 + $0x18] sm:$0xf]  ;;  %v1514_v10 = vld [vmem:[%s1494_s25 + $0x1c] sm:$0x1]  ;;  %v1517_v11 = vld [vmem:[%s1494_s25 + $0x20] sm:$0xf] }
  0x11   : > { %v1520_v12 = vld [vmem:[%s1494_s25 + $0x24] sm:$0x1]  ;;  %v216_v13 = vshrl.u32 %v1503_v6, 16  ;;  %v219_v14 = vshll.u32 %v1503_v6, 16  ;;  %v225_v15 = vshll.u32 %v1506_v7, 16  ;;  %v230_v16 = vshrl.u32 %v1511_v9, 16  ;;  %1315 = vmatpush3.bf16.msra.mxu0 %v1402_v3 }
  0x12   : > { %335 = vrot.lane.b32.xlu0 %v1243_v8, %s1446_s28  ;;  %v233_v17 = vshll.u32 %v1511_v9, 16  ;;  %v239_v18 = vshll.u32 %v1514_v10, 16  ;;  %v271_v19 = vshrl.u32 %v1517_v11, 16  ;;  %v274_v20 = vshll.u32 %v1517_v11, 16  ;;  %v175_v21 = vld [vmem:[%s1494_s25 + $0xc] sm:$0x1]  ;;  %1316 = vmatprep.subr.bf16.mxu0 %v1405_v57 }
  0x13   : > { %v218_v22 = vrot.slane %v216_v13, 4  ;;  %v221_v23 = vrot.slane %v219_v14, 5  ;;  %v227_v24 = vrot.slane %v225_v15, 5  ;;  %v232_v25 = vrot.slane %v230_v16, 4  ;;  %v1533_v26 = vld [vmem:[%s1494_s25] sm:$0xf] }
  0x14   : > { %v235_v27 = vrot.slane %v233_v17, 5  ;;  %v241_v28 = vrot.slane %v239_v18, 5  ;;  %v273_v29 = vrot.slane %v271_v19, 4  ;;  %v276_v30 = vrot.slane %v274_v20, 5  ;;  %v1548_v40 = vld [vmem:[%s1494_s25 + $0x4] sm:$0x1] }
  0x15   : > { %v222_v31 = vor.u32 %v221_v23, %v218_v22  ;;  %v280_v32 = vshll.u32 %v1520_v12, 16  ;;  %v202_v33 = vshrl.u32 %v1500_v5, 16  ;;  %v205_v34 = vshll.u32 %v1500_v5, 16  ;;  %v1558_v51 = vld [vmem:[%s1494_s25 + $0x28] sm:$0xf]  ;;  %v1407_v3 = vld [vmem:[%s1801_s1 + $0xf0] sm:$0xff]  }
  0x16   : > { %v236_v37 = vor.u32 %v235_v27, %v232_v25  ;;  %v277_v38 = vor.u32 %v276_v30, %v273_v29  ;;  %v211_v39 = vshll.u32 %v175_v21, 16  ;;  %v188_v41 = vshrl.u32 %v1533_v26, 16  ;;  %v183_v56 = vld [vmem:[%s1494_s25 + $0x2c] sm:$0x1]  ;;  %v1409_v16 = vld [vmem:[%s1801_s1 + $0x60] sm:$0xff]   ;;  %1342 = vmatprep.subr.bf16.mxu1 %v1407_v3  ;;  %v1420_v50 = vld [vmem:[%s1801_s1 + $0x98] sm:$0xff]  }
  0x17   : > { %v223_v42 = vrot.slane %v222_v31, 4  ;;  %v282_v43 = vrot.slane %v280_v32, 5  ;;  %v204_v44 = vrot.slane %v202_v33, 4  ;;  %v207_v45 = vrot.slane %v205_v34, 5  ;;  %v1406_v58 = vld [vmem:[%s1801_s1 + $0x28] sm:$0xff]   ;;  %v1410_v20 = vld [vmem:[%s1801_s1 + $0x20] sm:$0xff]   ;;  %1343 = vmatpush3.bf16.msra.mxu1 %v1408_v4 }
  0x18   : > { %v237_v46 = vrot.slane %v236_v37, 4  ;;  %v278_v47 = vrot.slane %v277_v38, 4  ;;  %v213_v48 = vrot.slane %v211_v39, 5  ;;  %v190_v49 = vrot.slane %v188_v41, 4  ;;  %1317 = vmatpush3.bf16.msra.mxu0 %v1406_v58  ;;  %v1411_v29 = vld [vmem:[%s1801_s1 + $0xe8] sm:$0xff]  }
  0x19   : > { %v1562_v52 = vsel %vm1543_vm4, %v223_v42, %v227_v24  ;;  %v208_v53 = vor.u32 %v207_v45, %v204_v44  ;;  %v191_v54 = vshll.u32 %v1533_v26, 16  ;;  %v197_v55 = vshll.u32 %v1548_v40, 16  ;;  %1318 = vmatprep.subr.bf16.mxu0 %v1409_v16  ;;  %1344 = vmatprep.subr.bf16.mxu1 %v1411_v29  ;;  %v1412_v39 = vld [vmem:[%s1801_s1 + $0xa8] sm:$0xff]  }
  0x1a   : > { %v1575_v59 = vsel %vm1543_vm4, %v237_v46, %v241_v28  ;;  %v1579_v60 = vsel %vm1543_vm4, %v278_v47, %v282_v43  ;;  %v1232_v61 = vrot.slane %v1500_v5, 9  ;;  %v260_v62 = vrot.slane %v175_v21, 5  ;;  %v1413_v46 = vld [vmem:[%s1801_s1 + $0x58] sm:$0xff]   ;;  %v1421_v3 = vld [vmem:[%s1801_s1 + $0x48] sm:$0xff]  }
  0x1b   : > { %v1240_v63 = vcombine.low %v1562_v52, %v1575_v59  ;;  %v1246_v0 = vcombine.low %v1575_v59, %v1579_v60  ;;  %v209_v1 = vrot.slane %v208_v53, 4  ;;  %v193_v2 = vrot.slane %v191_v54, 5  ;;  %1345 = vmatpush3.bf16.msra.mxu1 %v1412_v39  ;;  %v1414_v54 = vld [vmem:[%s1801_s1 + $0x18] sm:$0xff]   ;;  %v1422_v4 = vld [vmem:[%s1801_s1 + $0x8] sm:$0xff]  }
  0x1c   : > { %v199_v8 = vrot.slane %v197_v55, 5  ;;  %v1594_v13 = vsel %vm1553_vm5, %v1232_v61, %v260_v62  ;;  %v1233_v14 = vrot.slane %v1503_v6, 9  ;;  %v264_v15 = vrot.slane %v1506_v7, 5  ;;  %1319 = vmatpush3.bf16.msra.mxu0 %v1410_v20  ;;  %v1416_v62 = vld [vmem:[%s1801_s1 + $0xa0] sm:$0xff]   ;;  %v1427_v16 = vld [vmem:[%s1801_s1 + $0xc8] sm:$0xff]  }
  0x1d   : > { %324 = vrot.lane.b32.xlu1 %v1240_v63, %s1446_s28  ;;  %v1604_v17 = vsel %vm1543_vm4, %v209_v1, %v213_v48  ;;  %v194_v18 = vor.u32 %v193_v2, %v190_v49  ;;  %v291_v19 = vshrl.u32 %v1558_v51, 16  ;;  %v294_v22 = vshll.u32 %v1558_v51, 16  ;;  %1320 = vmatprep.subr.bf16.mxu0 %v1413_v46  ;;  %v1418_v63 = vld [vmem:[%s1801_s1 + $0x10] sm:$0xff]   ;;  %v1419_v2 = vld [vmem:[%s1801_s1 + $0xd8] sm:$0xff]   ;;  %v1431_v20 = vld [vmem:[%s1801_s1 + $0xc0] sm:$0xff]  }
  0x1e   : > { %v1245_v7 = vcombine.low %v1604_v17, %v1562_v52  ;;  %v265_v21 = vsel %vm1553_vm5, %v1233_v14, %v264_v15  ;;  %v300_v23 = vshll.u32 %v183_v56, 16  ;;  %v1234_v28 = vrot.slane %v1511_v9, 9  ;;  %v1425_v14 = vld [vmem:[%s1801_s1 + $0x40] sm:$0xff]   ;;  %v1435_v52 = vld [vmem:[%s1801_s1 + $0x108] sm:$0xff]  }
  0x1f   : > { %v195_v24 = vrot.slane %v194_v18, 4  ;;  %v1247_v25 = vcombine.low %v1594_v13, %v265_v21  ;;  %v293_v27 = vrot.slane %v291_v19, 4  ;;  %v296_v30 = vrot.slane %v294_v22, 5  ;;  %v1426_v15 = vld [vmem:[%s1801_s1] sm:$0xff]   ;;  %v1428_v18 = vld [vmem:[%s1801_s1 + $0x88] sm:$0xff]   ;;  %v1429_v19 = vld [vmem:[%s1801_s1 + $0x118] sm:$0xff]  }
  0x20   : > { %v302_v31 = vrot.slane %v300_v23, 5  ;;  %v268_v32 = vrot.slane %v1514_v10, 5  ;;  %v1235_v33 = vrot.slane %v1517_v11, 9  ;;  %v288_v35 = vrot.slane %v1520_v12, 5  ;;  %1321 = vmatpush3.bf16.msra.mxu0 %v1414_v54 }
  0x21   : > { %v200_v34 = vsel %vm1543_vm4, %v195_v24, %v199_v8  ;;  %345 = vrot.lane.b32.xlu1 %v1247_v25, %s1446_s28  ;;  %v1236_v37 = vrot.slane %v1558_v51, 9  ;;  %v308_v38 = vrot.slane %v183_v56, 5  ;;  %v297_v41 = vor.u32 %v296_v30, %v293_v27  ;;  %v1415_v56 = vld [vmem:[%s1801_s1 + $0xe0] sm:$0xff]   ;;  %v1423_v8 = vld [vmem:[%s1801_s1 + $0xd0] sm:$0xff]  }
  0x22   : > { %v1239_v10 = vcombine.low %v200_v34, %v1604_v17  ;;  %v269_v42 = vsel %vm1553_vm5, %v1234_v28, %v268_v32  ;;  %v1237_v43 = vcombine.low %v1533_v26, %v1500_v5  ;;  %v1637_v12 = vsel %vm1553_vm5, %v1235_v33, %v288_v35  ;;  %1346 = vmatprep.subr.bf16.mxu1 %v1415_v56  ;;  %v1434_v30 = vld [vmem:[%s1801_s1 + $0x110] sm:$0xff]   ;;  %v1437_v33 = vld [vmem:[%s1801_s1 + $0x100] sm:$0xff]  }
  0x23   : > { %v1641_v44 = vsel %vm1553_vm5, %v1236_v37, %v308_v38  ;;  %v1643_v45 = vcombine.low %v265_v21, %v269_v42  ;;  %v1231_v47 = vrot.slane %v1533_v26, 9  ;;  %v1244_v48 = vcombine.low %v1511_v9, %v1517_v11  ;;  %1347 = vmatpush3.bf16.msra.mxu1 %v1416_v62  ;;  %v1433_v21 = vld [vmem:[%s1801_s1 + $0x80] sm:$0xff]  }
  0x24   : > { %322 = vrot.lane.b32.xlu0 %v1239_v10, %s1446_s28  ;;  %v298_v49 = vrot.slane %v297_v41, 4  ;;  %v1251_v53 = vcombine.low %v1637_v12, %v1641_v44  ;;  %v1238_v55 = vcombine.low %v1503_v6, %v1511_v9  ;;  %v256_v57 = vrot.slane %v1548_v40, 5  ;;  %v1417_v9 = vld [vmem:[%s1801_s1 + $0x50] sm:$0xff]   ;;  %1348 = vmatprep.subr.bf16.mxu1 %v1419_v2  ;;  %v1252_v44 = vld [vmem:[%s1802_s2] ss:$0 sm:$0xff] }
  0x25   : > { %v1249_v58 = vcombine.low %v1517_v11, %v1558_v51  ;;  %v1248_v36 = vcombine.low %v269_v42, %v1637_v12  ;;  %1322 = vmatprep.subr.bf16.mxu0 %v1417_v9  ;;  %v1447_v41 = vmov 1983009808  }
  0x26   : > { %v303_v61 = vsel %vm1543_vm4, %v298_v49, %v302_v31  ;;  %v257_v40 = vsel %vm1553_vm5, %v1231_v47, %v256_v57  ;;  %1323 = vmatpush3.bf16.msra.mxu0 %v1418_v63  ;;  %v843_v42 = vunpack.c.l.s4 %v1447_v41 }
  0x27   : > { %v1250_v6 = vcombine.low %v1579_v60, %v303_v61  ;;  %v1241_v1 = vcombine.low %v257_v40, %v1594_v13  ;;  %1349 = vmatpush3.bf16.msra.mxu1 %v1420_v50  ;;  %1324 = vmatprep.subr.bf16.mxu0 %v1421_v3  ;;  %v1424_v13 = vld [vmem:[%s1801_s1 + $0x90] sm:$0xff]  }
  0x28   : > { %337 = vrot.lane.b32.xlu0 %v1244_v48, %s1446_s28  ;;  %1350 = vmatprep.subr.bf16.mxu1 %v1423_v8  ;;  %v844_v56 = vunpack.c.0.s8 %v843_v42 }
  0x29   : > { %353 = vrot.lane.b32.xlu1 %v1250_v6, %s1446_s28 }
  0x2a   : > { %1325 = vmatpush3.bf16.msra.mxu0 %v1422_v4 }
  0x2b   : > { %1351 = vmatpush3.bf16.msra.mxu1 %v1424_v13  ;;  %1326 = vmatprep.subr.bf16.mxu0 %v1425_v14 }
  0x2c   : > { %347 = vrot.lane.b32.xlu0 %v1248_v36, %s1446_s28  ;;  %1352 = vmatprep.subr.bf16.mxu1 %v1427_v16 }
  0x2e   : > { %1327 = vmatpush3.bf16.msra.mxu0 %v1426_v15 }
  0x2f   : > { %1353 = vmatpush3.bf16.msra.mxu1 %v1428_v18  ;;  %1374 = vmatprep.subr.bf16.mxu0 %v1429_v19 }
  0x30   : > { %1354 = vmatprep.subr.bf16.mxu1 %v1431_v20 }
  0x33   : > { %1355 = vmatpush3.bf16.msra.mxu1 %v1433_v21 }
  0x84   : > { %v336_v22 = vpop.permute.xlu0 %335 }
  0x85   : > { %v368_v23 = vsel %vm357_vm6, %v1241_v1, %v336_v22 }
  0x86   : > { %718 = vmatprep.mubr.bf16.mxu0 %v368_v23 }
  0x8f   : > { %v325_v24 = vpop.permute.xlu1 %324 }
  0x90   : > { %v364_v25 = vsel %vm357_vm6, %v1238_v55, %v325_v24 }
  0x91   : > { %767 = vmatprep.mubr.bf16.mxu1 %v364_v25 }
  0x93   : > { %v346_v27 = vpop.permute.xlu1 %345 }
  0x94   : > { %v376_v28 = vsel %vm357_vm6, %v1245_v7, %v346_v27 }
  0x95   : > { %768 = vmatmul.mubr.bf16.vlgmr.msra.gmra.mxu1 %v376_v28 }
  0x96   : > { %v323_v29 = vpop.permute.xlu0 %322 }
  0x97   : > { %v360_v31 = vsel %vm357_vm6, %v1237_v43, %v323_v29  ;;  %v845_v43 = vlaneseq }
  0x98   : > { %719 = vmatmul.mubr.bf16.vlgmr.msra.gmra.mxu0 %v360_v31 }
  0x99   : > { %1375 = vmatpush3.bf16.msra.mxu0 %v1429_v19  ;;  %v846_v57 = vshrl.u32 %v845_v43, 7 }
  0x9a   : > { %1376 = vmatprep.subr.bf16.mxu0 %v1434_v30  ;;  %v338_v32 = vpop.permute.xlu0 %337 }
  0x9b   : > { %v372_v17 = vsel %vm357_vm6, %v1643_v45, %v338_v32  ;;  %v354_v7 = vpop.permute.xlu1 %353  ;;  %v1761_v50 = vsub.s32 %v844_v56, %v846_v57 }
  0x9c   : > { %726 = vmatprep.mubr.bf16.mxu0 %v372_v17  ;;  %v384_v5 = vsel %vm357_vm6, %v1249_v58, %v354_v7 }
  0x9d   : > { %1377 = vmatpush3.bf16.msra.mxu0 %v1434_v30  ;;  %775 = vmatprep.mubr.bf16.mxu1 %v384_v5 }
  0x9e   : > { %1378 = vmatprep.subr.bf16.mxu0 %v1435_v52  ;;  %v348_v26 = vpop.permute.xlu0 %347 }
  0x9f   : > { %v380_v34 = vsel %vm357_vm6, %v1246_v0, %v348_v26 }
  0xa0   : > { %727 = vmatmul.mubr.bf16.gmra.mxu0 %v364_v25  ;;  %776 = vmatmul.mubr.bf16.gmra.mxu1 %v380_v34 }
  0xa1   : > { %1379 = vmatpush3.bf16.msra.mxu0 %v1435_v52  ;;  %1382 = vmatprep.mubr.msk.bf16.mxu0 %vm357_vm6, %v1643_v45 }
  0xa2   : > { %1380 = vmatprep.subr.bf16.mxu0 %v1437_v33 }
  0xa5   : > { %1381 = vmatpush3.bf16.msra.mxu0 %v1437_v33 }
  0xa8   : > { %1383 = vmatmul.mubr.msk.bf16.vlgmr.msra.gmra.mxu0 %vm357_vm6, %v1251_v53 }
 0x155   : > { %v1356_v11 = vpop.f32.mrf.mxu1 }
 0x157   : > { %v1357_v51 = vpop.f32.mrf.mxu1 }
 0x158   : > { %v1328_v35 = vpop.f32.mrf.mxu0  ;;  %v1358_v54 = vadd.f32 %v1357_v51, %v1356_v11 }
 0x159   : > { %v1359_v37 = vpop.f32.mrf.mxu1 }
 0x15a   : > { %v1329_v59 = vpop.f32.mrf.mxu0 }
 0x15b   : > { %v1360_v0 = vpop.f32.mrf.mxu1  ;;  %v1330_v47 = vadd.f32 %v1329_v59, %v1328_v35 }
 0x15c   : > { %v1331_v60 = vpop.f32.mrf.mxu0  ;;  %v1361_v4 = vadd.f32 %v1360_v0, %v1359_v37 }
 0x15d   : > { %v721_v62 = vadd.f32 %v1330_v47, %v1252_v44 }
 0x15e   : > { %v1332_v38 = vpop.f32.mrf.mxu0 }
 0x15f   : > { %v1333_v36 = vadd.f32 %v1332_v38, %v1331_v60  ;;  %v770_v3 = vadd.f32 %v1358_v54, %v721_v62 }
 0x160   : > { %v1334_v39 = vpop.f32.mrf.mxu0  ;;  %v1362_v10 = vpop.f32.mrf.mxu1 }
 0x161   : > { %v724_v16 = vadd.f32 %v1333_v36, %v1252_v44 }
 0x162   : > { %v1335_v45 = vpop.f32.mrf.mxu0  ;;  %v1363_v46 = vpop.f32.mrf.mxu1 }
 0x163   : > { %v1336_v48 = vadd.f32 %v1335_v45, %v1334_v39  ;;  %v1364_v12 = vadd.f32 %v1363_v46, %v1362_v10  ;;  %v773_v23 = vadd.f32 %v1361_v4, %v724_v16 }
 0x164   : > { %v1337_v49 = vpop.f32.mrf.mxu0  ;;  %v1365_v53 = vpop.f32.mrf.mxu1 }
 0x165   : > { %v729_v55 = vadd.f32 %v1336_v48, %v1252_v44 }
 0x166   : > { %v1338_v58 = vpop.f32.mrf.mxu0  ;;  %v1366_v61 = vpop.f32.mrf.mxu1 }
 0x167   : > { %v1339_v6 = vadd.f32 %v1338_v58, %v1337_v49  ;;  %v778_v9 = vadd.f32 %v1364_v12, %v729_v55  ;;  %v1367_v40 = vadd.f32 %v1366_v61, %v1365_v53 }
 0x168   : > { %v1384_v63 = vpop.f32.mrf.mxu0 }
 0x169   : > { %v732_v1 = vadd.f32 %v1339_v6, %v1252_v44  ;;  %v827_v2 = vadd.f32 %v1384_v63, %v778_v9 }
 0x16a   : > { %v818_v8 = vpop.f32.mrf.mxu0 }
 0x16b   : > { %v835_v13 = vmax.f32 %v827_v2, 0.0  ;;  %v819_v14 = vadd.f32 %v818_v8, %v770_v3  ;;  %v781_v15 = vadd.f32 %v1367_v40, %v732_v1 }
 0x16c   : > { %v1385_v18 = vpop.f32.mrf.mxu0 }
 0x16d   : > { %v875_v19 = vcombine.high %v835_v13, %v835_v13  ;;  %v882_v20 = vrot.slane %v835_v13, %v1761_v50  ;;  %v833_v21 = vmax.f32 %v819_v14, 0.0  ;;  %v830_v22 = vadd.f32 %v1385_v18, %v781_v15 }
 0x16e   : > { %v821_v24 = vpop.f32.mrf.mxu0 }
 0x16f   : > { %v889_v25 = vrot.slane %v875_v19, %v1761_v50  ;;  %v890_v27 = vcombine.high %v882_v20, %v882_v20  ;;  %v1295_v28 = vrot.slane %v882_v20, 9  ;;  %v841_v29 = vcombine.high %v833_v21, %v833_v21 }
 0x170   : > { %v848_v30 = vrot.slane %v833_v21, %v1761_v50  ;;  %v836_v31 = vmax.f32 %v830_v22, 0.0  ;;  %v822_v7 = vadd.f32 %v821_v24, %v773_v23 }
 0x171   : > { %v891_v32 = vcombine.high %v889_v25, %v889_v25  ;;  %v1296_v52 = vrot.slane %v890_v27, 9  ;;  %v1297_v17 = vrot.slane %v889_v25, 9  ;;  %v855_v5 = vrot.slane %v841_v29, %v1761_v50 }
 0x172   : > { %v856_v26 = vcombine.high %v848_v30, %v848_v30  ;;  %v1291_v33 = vrot.slane %v848_v30, 9  ;;  %v892_v34 = vcombine.high %v836_v31, %v836_v31  ;;  %v953_v51 = vmax.f32 %v882_v20, %v1295_v28 }
 0x173   : > { %v1298_v11 = vrot.slane %v891_v32, 9  ;;  %v899_v35 = vrot.slane %v836_v31, %v1761_v50  ;;  %v954_v37 = vmax.f32 %v890_v27, %v1296_v52  ;;  %v857_v59 = vcombine.high %v855_v5, %v855_v5 }
 0x174   : > { %v1292_v60 = vrot.slane %v856_v26, 9  ;;  %v1293_v0 = vrot.slane %v855_v5, 9  ;;  %v955_v38 = vmax.f32 %v889_v25, %v1297_v17  ;;  %v906_v39 = vrot.slane %v892_v34, %v1761_v50 }
 0x175   : > { %v907_v10 = vcombine.high %v899_v35, %v899_v35  ;;  %v1303_v41 = vrot.slane %v899_v35, 9  ;;  %v956_v42 = vmax.f32 %v891_v32, %v1298_v11  ;;  %v1294_v43 = vrot.slane %v857_v59, 9 }
 0x176   : > { %v949_v45 = vmax.f32 %v848_v30, %v1291_v33  ;;  %v834_v46 = vmax.f32 %v822_v7, 0.0  ;;  %v908_v47 = vcombine.high %v906_v39, %v906_v39  ;;  %v1305_v12 = vrot.slane %v906_v39, 9 }
 0x177   : > { %v1304_v48 = vrot.slane %v907_v10, 9  ;;  %v985_v44 = vmax.f32 %v899_v35, %v1303_v41  ;;  %v950_v49 = vmax.f32 %v856_v26, %v1292_v60  ;;  %v951_v53 = vmax.f32 %v855_v5, %v1293_v0 }
 0x178   : > { %v858_v54 = vcombine.high %v834_v46, %v834_v46  ;;  %v865_v55 = vrot.slane %v834_v46, %v1761_v50  ;;  %v1306_v56 = vrot.slane %v908_v47, 9  ;;  %v987_v58 = vmax.f32 %v906_v39, %v1305_v12 }
 0x179   : > { %v986_v57 = vmax.f32 %v907_v10, %v1304_v48  ;;  %v993_v61 = vmax.f32 %v953_v51, %v985_v44  ;;  %v952_v62 = vmax.f32 %v857_v59, %v1294_v43 }
 0x17a   : > { %v872_v6 = vrot.slane %v858_v54, %v1761_v50  ;;  %v873_v9 = vcombine.high %v865_v55, %v865_v55  ;;  %v1299_v40 = vrot.slane %v865_v55, 9  ;;  %v988_v36 = vmax.f32 %v908_v47, %v1306_v56 }
 0x17b   : > { %v994_v63 = vmax.f32 %v954_v37, %v986_v57  ;;  %v995_v1 = vmax.f32 %v955_v38, %v987_v58  ;;  %v1001_v2 = vpack.c.bf16 %v993_v61, %v993_v61 }
 0x17c   : > { %v874_v3 = vcombine.high %v872_v6, %v872_v6  ;;  %v1300_v4 = vrot.slane %v873_v9, 9  ;;  %v1301_v8 = vrot.slane %v872_v6, 9  ;;  %v981_v13 = vmax.f32 %v865_v55, %v1299_v40 }
 0x17d   : > { %v996_v14 = vmax.f32 %v956_v42, %v988_v36  ;;  %v1002_v15 = vpack.c.bf16 %v994_v63, %v994_v63  ;;  %v1003_v16 = vpack.c.bf16 %v995_v1, %v995_v1  ;;  %v1047_v18 = vrot.slane %v1001_v2, %v1761_v50 }
 0x17e   : > { %v1302_v19 = vrot.slane %v874_v3, 9  ;;  %v982_v20 = vmax.f32 %v873_v9, %v1300_v4  ;;  %v983_v21 = vmax.f32 %v872_v6, %v1301_v8  ;;  %v989_v22 = vmax.f32 %v949_v45, %v981_v13 }
 0x17f   : > { %v1004_v23 = vpack.c.bf16 %v996_v14, %v996_v14  ;;  %v1054_v24 = vrot.slane %v1002_v15, %v1761_v50  ;;  %v1061_v25 = vrot.slane %v1003_v16, %v1761_v50  ;;  %v1103_v27 = vrot.slane %v1047_v18, %v1761_v50 }
 0x180   : > { %v984_v28 = vmax.f32 %v874_v3, %v1302_v19  ;;  %v990_v29 = vmax.f32 %v950_v49, %v982_v20  ;;  %v991_v30 = vmax.f32 %v951_v53, %v983_v21  ;;  %v997_v31 = vpack.c.bf16 %v989_v22, %v989_v22 }
 0x181   : > { %v1068_v32 = vrot.slane %v1004_v23, %v1761_v50  ;;  %v1110_v52 = vrot.slane %v1054_v24, %v1761_v50  ;;  %v1117_v17 = vrot.slane %v1061_v25, %v1761_v50  ;;  %v1129_v35 = vunpack.c.l.b16 %v1103_v27 }
 0x182   : > { %v992_v7 = vmax.f32 %v952_v62, %v984_v28  ;;  %v998_v5 = vpack.c.bf16 %v990_v29, %v990_v29  ;;  %v999_v26 = vpack.c.bf16 %v991_v30, %v991_v30  ;;  %v1019_v33 = vrot.slane %v997_v31, %v1761_v50 }
 0x183   : > { %v1124_v34 = vrot.slane %v1068_v32, %v1761_v50  ;;  %v1130_v11 = vunpack.c.l.b16 %v1110_v52  ;;  %v1131_v51 = vunpack.c.l.b16 %v1117_v17 }
 0x184   : > { %v1000_v37 = vpack.c.bf16 %v992_v7, %v992_v7  ;;  %v1026_v59 = vrot.slane %v998_v5, %v1761_v50  ;;  %v1033_v60 = vrot.slane %v999_v26, %v1761_v50  ;;  %v1075_v10 = vrot.slane %v1019_v33, %v1761_v50 }
 0x185   : > { %v1132_v0 = vunpack.c.l.b16 %v1124_v34  ;;  %v1142_v38 = vrot.slane %v1130_v11, 7  ;;  %v1144_v39 = vrot.slane %v1131_v51, 6 }
 0x186   : > { %v1040_v41 = vrot.slane %v1000_v37, %v1761_v50  ;;  %v1082_v42 = vrot.slane %v1026_v59, %v1761_v50  ;;  %v1089_v43 = vrot.slane %v1033_v60, %v1761_v50  ;;  %v1125_v53 = vunpack.c.l.b16 %v1075_v10 }
 0x187   : > { %v1143_v45 = vsel %vm1134_vm7, %v1142_v38, %v1129_v35  ;;  %v1146_v46 = vrot.slane %v1132_v0, 5 }
 0x188   : > { %v1145_v47 = vsel %vm1137_vm8, %v1144_v39, %v1143_v45  ;;  %v1096_v48 = vrot.slane %v1040_v41, %v1761_v50  ;;  %v1126_v12 = vunpack.c.l.b16 %v1082_v42  ;;  %v1127_v44 = vunpack.c.l.b16 %v1089_v43 }
 0x189   : > { %v1147_v49 = vsel %vm1140_vm9, %v1146_v46, %v1145_v47 }
 0x18a   : > { %v1149_v54 = vpack.c.b16 %v1147_v49, %v1147_v49  ;;  %v1128_v55 = vunpack.c.l.b16 %v1096_v48  ;;  %v1133_v56 = vrot.slane %v1126_v12, 7  ;;  %v1136_v57 = vrot.slane %v1127_v44, 6 }
 0x18c   : > { %1308 = vst.sshfl [vmem:[%s170_s13 + $0x2] sm:$0x3 pattern:$0x76325410] %v1149_v54  ;;  %v1135_v58 = vsel %vm1134_vm7, %v1133_v56, %v1125_v53  ;;  %v1139_v61 = vrot.slane %v1128_v55, 5 }
 0x18d   : > { %v1138_v62 = vsel %vm1137_vm8, %v1136_v57, %v1135_v58 }
 0x18e   : > { %v1141_v50 = vsel %vm1140_vm9, %v1139_v61, %v1138_v62 }
 0x18f   : > { %v1148_v6 = vpack.c.b16 %v1141_v50, %v1141_v50 }
 0x191   : > { %1307 = vst.sshfl [vmem:[%s170_s13] sm:$0x3 pattern:$0x76325410] %v1148_v6 }
 0x192 PF: > { %s13_s12 = sadd.s32 1, %s1444_s12  }
 0x193   : > { %p10_p4 = scmp.ge.s32.totalorder %s13_s12, 6  }
 0x195   :  { %12 = sbr.rel (!%p10_p4) target bundleno = 1 (0x1), region = 62 }

// kernel: interpolation_model.6
= control target key start
LH: loop header
LB: loop body
LE: loop exit
PB: predicated region body
PF: predicated region fallthrough
CT: control target
= control target key end

     0   :  { %s2317_s12 = smov 0   ;;  %s2987_s0 = inlined_call_operand.vmem [shape: bf16[4,10,18,6], index: 0, kind: input, shape index: {}]   ;;  %s2988_s1 = inlined_call_operand.vmem [shape: bf16[54,64], index: 1, kind: input, shape index: {}]   ;;  %s2989_s2 = inlined_call_operand.vmem [shape: f32[1,64], index: 2, kind: input, shape index: {}]   ;;  %s2990_s3 = inlined_call_operand.vmem [shape: bf16[4,4,8,64], index: 3, kind: output, shape index: {}]  }
   0x1 LB: > { %s2010_s13 = sadd.s32 4294967295, %s2286_s12   ;;  %p2014_p0 = scmp.ge.s32.totalorder %s2286_s12, 1  ;;  %s2286_s12 = sphi %s2317_s12, %s13_s12  }
   0x2   : > { %p137_p1 = scmp.lt.s32.totalorder %s2286_s12, 5 }
   0x4   : > { %p138_p2 = pnand %p2014_p0, %p137_p1 }
   0x5   : > { %p161_p3 = scmp.lt.s32.totalorder (!%p138_p2), %s2010_s13, 3  ;;  %s2288_s18 = smov (!%p138_p2), 18  }
   0x6   : > { %141 = sbr.rel (%p138_p2) target bundleno = 519 (0x207), region = 32  ;;  %s2289_s19 = smov (!%p138_p2), 12  }
   0x7   : > { %s2290_s20 = smov (!%p138_p2), 6   ;;  %s2291_s21 = smov (!%p138_p2), 24  }
   0x8   : > { %s2292_s22 = smov (!%p138_p2), 30   ;;  %s2293_s23 = smov (!%p138_p2), 36  }
   0x9   : > { %s2294_s26 = smov (!%p138_p2), 42   ;;  %s2295_s29 = smov (!%p138_p2), 48  }
   0xb   : > { %s2996_s13 = smov (!%p161_p3, %s2010_s13), 3  ;;  %vm421_vm0 = vcmask 1042432   ;;  %vm422_vm1 = vcmask 1046532   ;;  %vm202_vm2 = vsmask.f32 3328  ;;  %vm766_vm6 = vcmask 48128  }
   0xc   : > { %s2248_s14 = smul.u32 120, %s2996_s13  ;;  %vm203_vm3 = vsmask.f32 7440  ;;  %vm2363_vm4 = vmor %vm421_vm0, %vm422_vm1  ;;  %vm791_vm7 = vcmask 97280   ;;  %vm825_vm8 = vcmask 195584   ;;  %vm808_vm9 = vcmask 146432  }
   0xd   : > { %vm2412_vm5 = vmor %vm202_vm2, %vm203_vm3  ;;  %vm842_vm10 = vcmask 244736   ;;  %vm859_vm11 = vcmask 293888   ;;  %vm876_vm12 = vcmask 343040   ;;  %vm893_vm13 = vcmask 392192   ;;  %s2169_s9 = sshll.u32 %s2996_s13, 4 }
   0xe   : > { %s2331_s17 = scalar_lea.vmem %s2987_s0, %s2248_s14  ;;  %vm945_vm14 = vcmask 441344   ;;  %vm1880_vm15 = vcmask 1041409   ;;  %vm1886_vm1 = vcmask 1043459   ;;  %vm1889_vm2 = vcmask 1044484   ;;  %s2923_s13 = scalar_lea.vmem %s2990_s3, %s2169_s9 }
   0xf   : > { %v2334_v0 = vld [vmem:[%s2331_s17 + $0x3c] sm:$0xf]  ;;  %v2337_v1 = vld [vmem:[%s2331_s17 + $0x40] sm:$0xf]  ;;  %v175_v2 = vld [vmem:[%s2331_s17 + $0xc] sm:$0xf] }
  0x10   : > { %v339_v3 = vshrl.u32 %v2337_v1, 16  ;;  %v2343_v4 = vcombine.low %v2334_v0, %v2337_v1  ;;  %v326_v5 = vshrl.u32 %v2334_v0, 16  ;;  %v329_v6 = vshll.u32 %v2334_v0, 16  ;;  %v176_v7 = vld [vmem:[%s2331_s17 + $0x10] sm:$0xf] }
  0x11   : > { %v239_v8 = vshll.u32 %v176_v7, 16  ;;  %v243_v9 = vshrl.u32 %v176_v7, 16  ;;  %v2348_v10 = vcombine.low %v175_v2, %v176_v7  ;;  %v230_v11 = vshrl.u32 %v175_v2, 16  ;;  %v2351_v12 = vld [vmem:[%s2331_s17 + $0x30] sm:$0xf] }
  0x12   : > { %663 = vrot.lane.b32.xlu1 %v2343_v4, %s2288_s18  ;;  %v233_v13 = vshll.u32 %v175_v2, 16  ;;  %v2356_v14 = vld [vmem:[%s2331_s17 + $0x34] sm:$0xf]  ;;  %v2359_v15 = vld [vmem:[%s2331_s17 + $0x38] sm:$0x1]  ;;  %v2022_v17 = vrot.slane %v2351_v12, 9 }
  0x13   : > { %v245_v18 = vrot.slane %v243_v9, 4  ;;  %655 = vrot.lane.b32.xlu0 %v2348_v10, %s2288_s18  ;;  %v232_v19 = vrot.slane %v230_v11, 4  ;;  %v454_v20 = vrot.slane %v2356_v14, 5  ;;  %v457_v21 = vrot.slane %v2359_v15, 5  ;;  %v2373_v22 = vld [vmem:[%s2331_s17] sm:$0xf] }
  0x14   : > { %v235_v23 = vrot.slane %v233_v13, 5  ;;  %v2376_v24 = vld [vmem:[%s2331_s17 + $0x4] sm:$0xf]  ;;  %v174_v25 = vld [vmem:[%s2331_s17 + $0x8] sm:$0x1]  ;;  %v2018_v26 = vrot.slane %v2373_v22, 9  ;;  %v2382_v27 = vcombine.low %v2351_v12, %v2356_v14 }
  0x15   : > { %v455_v28 = vsel %vm2363_vm4, %v2022_v17, %v454_v20  ;;  %v456_v29 = vrot.slane %v454_v20, 4  ;;  %v426_v30 = vrot.slane %v2376_v24, 5  ;;  %v429_v31 = vrot.slane %v174_v25, 5  ;;  %v2388_v32 = vld [vmem:[%s2331_s17 + $0x44] sm:$0x1] }
  0x16   : > { %v2023_v33 = vrot.slane %v2334_v0, 9  ;;  %v461_v34 = vrot.slane %v2337_v1, 5  ;;  %v464_v35 = vrot.slane %v2388_v32, 5  ;;  %v177_v36 = vld [vmem:[%s2331_s17 + $0x14] sm:$0x1]  ;;  %v2019_v37 = vrot.slane %v175_v2, 9 }
  0x17   : > { %v458_v38 = vsel %vm2363_vm4, %v456_v29, %v457_v21  ;;  %v427_v39 = vsel %vm2363_vm4, %v2018_v26, %v426_v30  ;;  %v428_v40 = vrot.slane %v426_v30, 4  ;;  %v433_v41 = vrot.slane %v176_v7, 5 }
  0x18   : > { %v2398_v42 = vcombine.low %v455_v28, %v458_v38  ;;  %v462_v43 = vsel %vm2363_vm4, %v2023_v33, %v461_v34  ;;  %v463_v44 = vrot.slane %v461_v34, 4  ;;  %v436_v45 = vrot.slane %v177_v36, 5 }
  0x19   : > { %v430_v46 = vsel %vm2363_vm4, %v428_v40, %v429_v31  ;;  %v434_v47 = vsel %vm2363_vm4, %v2019_v37, %v433_v41  ;;  %v435_v48 = vrot.slane %v433_v41, 4  ;;  %v236_v49 = vor.u32 %v235_v23, %v232_v19  ;;  %v2451_v37 = vld [vmem:[%s2331_s17 + $0x48] sm:$0xf] }
  0x1a   : > { %644 = vrot.lane.b32.xlu1 %v2398_v42, %s2289_s19  ;;  %v2044_v50 = vcombine.low %v427_v39, %v430_v46  ;;  %v465_v51 = vsel %vm2363_vm4, %v463_v44, %v464_v35  ;;  %v241_v53 = vrot.slane %v239_v8, 5  ;;  %v249_v54 = vshll.u32 %v177_v36, 16 }
  0x1b   : > { %v2416_v55 = vcombine.low %v462_v43, %v465_v51  ;;  %v437_v56 = vsel %vm2363_vm4, %v435_v48, %v436_v45  ;;  %v237_v57 = vrot.slane %v236_v49, 4  ;;  %v206_v58 = vshrl.u32 %v2373_v22, 16  ;;  %v2468_v51 = vld [vmem:[%s2331_s17 + $0x1c] sm:$0xf] }
  0x1c   : > { %636 = vrot.lane.b32.xlu0 %v2044_v50, %s2289_s19  ;;  %v2422_v59 = vcombine.low %v434_v47, %v437_v56  ;;  %v246_v60 = vor.u32 %v245_v18, %v241_v53  ;;  %v251_v61 = vrot.slane %v249_v54, 5  ;;  %v209_v62 = vshll.u32 %v2373_v22, 16  ;;  %v2465_v50 = vld [vmem:[%s2331_s17 + $0x18] sm:$0xf] }
  0x1d   : > { %v242_v63 = vsel %vm2412_vm5, %v237_v57, %v241_v53  ;;  %v208_v2 = vrot.slane %v206_v58, 4  ;;  %v215_v7 = vshll.u32 %v2376_v24, 16  ;;  %v219_v8 = vshrl.u32 %v2376_v24, 16 }
  0x1e   : > { %646 = vrot.lane.b32.xlu1 %v2416_v55, %s2289_s19  ;;  %v247_v9 = vrot.slane %v246_v60, 4  ;;  %v211_v11 = vrot.slane %v209_v62, 5  ;;  %v225_v13 = vshll.u32 %v174_v25, 16  ;;  %v328_v17 = vrot.slane %v326_v5, 4  ;;  %v192_v60 = vld [vmem:[%s2331_s17 + $0x50] sm:$0x1] }
  0x1f   : > { %v217_v18 = vrot.slane %v215_v7, 5  ;;  %v221_v19 = vrot.slane %v219_v8, 4  ;;  %v331_v20 = vrot.slane %v329_v6, 5  ;;  %v335_v21 = vshll.u32 %v2337_v1, 16 }
  0x20   : > { %638 = vrot.lane.b32.xlu0 %v2422_v59, %s2289_s19  ;;  %v252_v23 = vsel %vm2412_vm5, %v247_v9, %v251_v61  ;;  %v212_v26 = vor.u32 %v211_v11, %v208_v2  ;;  %v227_v28 = vrot.slane %v225_v13, 5  ;;  %v341_v25 = vrot.slane %v339_v3, 4 }
  0x21   : > { %v2442_v5 = vcombine.low %v242_v63, %v252_v23  ;;  %v222_v29 = vor.u32 %v221_v19, %v217_v18  ;;  %v332_v30 = vor.u32 %v331_v20, %v328_v17  ;;  %v337_v0 = vrot.slane %v335_v21, 5  ;;  %v2492_v20 = vld [vmem:[%s2331_s17 + $0x20] sm:$0x1] }
  0x22   : > { %v213_v6 = vrot.slane %v212_v26, 4  ;;  %v345_v31 = vshll.u32 %v2388_v32, 16  ;;  %v302_v33 = vshrl.u32 %v2351_v12, 16  ;;  %v305_v34 = vshll.u32 %v2351_v12, 16  ;;  %v2456_v12 = vld [vmem:[%s2331_s17 + $0x4c] sm:$0xf] }
  0x23   : > { %598 = vrot.lane.b32.xlu1 %v2442_v5, %s2290_s20  ;;  %v223_v1 = vrot.slane %v222_v29, 4  ;;  %v333_v35 = vrot.slane %v332_v30, 4  ;;  %v342_v3 = vor.u32 %v341_v25, %v337_v0  ;;  %v311_v36 = vshll.u32 %v2356_v14, 16 }
  0x24   : > { %v218_v32 = vsel %vm2412_vm5, %v213_v6, %v217_v18  ;;  %v347_v38 = vrot.slane %v345_v31, 5  ;;  %v304_v39 = vrot.slane %v302_v33, 4  ;;  %v307_v40 = vrot.slane %v305_v34, 5 }
  0x25   : > { %v228_v41 = vsel %vm2412_vm5, %v223_v1, %v227_v28  ;;  %v338_v43 = vsel %vm2412_vm5, %v333_v35, %v337_v0  ;;  %v343_v44 = vrot.slane %v342_v3, 4  ;;  %v313_v45 = vrot.slane %v311_v36, 5 }
  0x26   : > { %v2036_v46 = vcombine.low %v218_v32, %v228_v41  ;;  %v308_v47 = vor.u32 %v307_v40, %v304_v39  ;;  %v315_v48 = vshrl.u32 %v2356_v14, 16  ;;  %v321_v49 = vshll.u32 %v2359_v15, 16 }
  0x27   : > { %v348_v53 = vsel %vm2412_vm5, %v343_v44, %v347_v38  ;;  %v350_v54 = vshrl.u32 %v2451_v37, 16  ;;  %v353_v56 = vshll.u32 %v2451_v37, 16  ;;  %v363_v57 = vshrl.u32 %v2456_v12, 16 }
  0x28   : > { %596 = vrot.lane.b32.xlu0 %v2036_v46, %s2290_s20  ;;  %v2476_v58 = vcombine.low %v338_v43, %v348_v53  ;;  %v309_v14 = vrot.slane %v308_v47, 4  ;;  %v317_v15 = vrot.slane %v315_v48, 4  ;;  %v323_v61 = vrot.slane %v321_v49, 5  ;;  %v2520_v48 = vld [vmem:[%s2331_s17 + $0x58] sm:$0xf] }
  0x29   : > { %v254_v62 = vshrl.u32 %v2465_v50, 16  ;;  %v257_v63 = vshll.u32 %v2465_v50, 16  ;;  %v267_v2 = vshrl.u32 %v2468_v51, 16  ;;  %v2488_v9 = vcombine.low %v2451_v37, %v2456_v12  ;;  %v2523_v49 = vld [vmem:[%s2331_s17 + $0x24] sm:$0xf] }
  0x2a   : > { %606 = vrot.lane.b32.xlu1 %v2476_v58, %s2290_s20  ;;  %v314_v7 = vsel %vm2412_vm5, %v309_v14, %v313_v45  ;;  %v318_v8 = vor.u32 %v317_v15, %v313_v45  ;;  %v352_v11 = vrot.slane %v350_v54, 4  ;;  %v355_v13 = vrot.slane %v353_v56, 5  ;;  %v2513_v45 = vld [vmem:[%s2331_s17 + $0x54] sm:$0xf] }
  0x2b   : > { %v359_v17 = vshll.u32 %v2456_v12, 16  ;;  %v365_v18 = vrot.slane %v363_v57, 4  ;;  %v369_v19 = vshll.u32 %v192_v60, 16  ;;  %v256_v23 = vrot.slane %v254_v62, 4  ;;  %v2530_v57 = vld [vmem:[%s2331_s17 + $0x28] sm:$0xf] }
  0x2c   : > { %v319_v21 = vrot.slane %v318_v8, 4  ;;  %v259_v26 = vrot.slane %v257_v63, 5  ;;  %v263_v28 = vshll.u32 %v2468_v51, 16  ;;  %v356_v25 = vor.u32 %v355_v13, %v352_v11 }
  0x2d   : > { %v361_v29 = vrot.slane %v359_v17, 5  ;;  %v269_v30 = vrot.slane %v267_v2, 4  ;;  %v273_v33 = vshll.u32 %v2492_v20, 16  ;;  %v371_v3 = vrot.slane %v369_v19, 5 }
  0x2e   : > { %v324_v0 = vsel %vm2412_vm5, %v319_v21, %v323_v61  ;;  %665 = vrot.lane.b32.xlu1 %v2488_v9, %s2288_s18  ;;  %v260_v6 = vor.u32 %v259_v26, %v256_v23  ;;  %v265_v31 = vrot.slane %v263_v28, 5  ;;  %v357_v1 = vrot.slane %v356_v25, 4  ;;  %v2559_v26 = vld [vmem:[%s2331_s17 + $0x5c] sm:$0x1]  ;;  %v2567_v25 = vld [vmem:[%s2331_s17 + $0x2c] sm:$0x1] }
  0x2f   : > { %v2500_v34 = vcombine.low %v314_v7, %v324_v0  ;;  %v366_v35 = vor.u32 %v365_v18, %v361_v29  ;;  %v2504_v36 = vcombine.low %v2465_v50, %v2468_v51  ;;  %v2024_v38 = vrot.slane %v2451_v37, 9 }
  0x30   : > { %v270_v32 = vor.u32 %v269_v30, %v265_v31  ;;  %v468_v39 = vrot.slane %v2456_v12, 5  ;;  %v362_v40 = vsel %vm2412_vm5, %v357_v1, %v361_v29  ;;  %v261_v43 = vrot.slane %v260_v6, 4 }
  0x31   : > { %604 = vrot.lane.b32.xlu0 %v2500_v34, %s2290_s20  ;;  %v367_v41 = vrot.slane %v366_v35, 4  ;;  %v275_v44 = vrot.slane %v273_v33, 5  ;;  %v471_v47 = vrot.slane %v192_v60, 5  ;;  %v374_v54 = vshrl.u32 %v2513_v45, 16  ;;  %v2577_v35 = vld [vmem:[%s2331_s17 + $0x60] sm:$0xf] }
  0x32   : > { %682 = vrot.lane.b32.xlu1 %v2476_v58, %s2291_s21  ;;  %v271_v46 = vrot.slane %v270_v32, 4  ;;  %v470_v37 = vrot.slane %v468_v39, 4  ;;  %v377_v56 = vshll.u32 %v2513_v45, 16  ;;  %v266_v14 = vsel %vm2412_vm5, %v261_v43, %v265_v31 }
  0x33   : > { %v372_v12 = vsel %vm2412_vm5, %v367_v41, %v371_v3  ;;  %v469_v60 = vsel %vm2363_vm4, %v2024_v38, %v468_v39  ;;  %v440_v61 = vrot.slane %v2468_v51, 5  ;;  %v387_v63 = vshrl.u32 %v2520_v48, 16  ;;  %v2591_v41 = vld [vmem:[%s2331_s17 + $0x64] sm:$0xf] }
  0x34   : > { %v2525_v53 = vcombine.low %v362_v40, %v372_v12  ;;  %v276_v15 = vsel %vm2412_vm5, %v271_v46, %v275_v44  ;;  %v472_v62 = vsel %vm2363_vm4, %v470_v37, %v471_v47  ;;  %v278_v2 = vshrl.u32 %v2523_v49, 16  ;;  %v198_v47 = vld [vmem:[%s2331_s17 + $0x68] sm:$0x1] }
  0x35   : > { %657 = vrot.lane.b32.xlu0 %v2504_v36, %s2288_s18  ;;  %v281_v7 = vshll.u32 %v2523_v49, 16  ;;  %v2020_v8 = vrot.slane %v2465_v50, 9  ;;  %v443_v11 = vrot.slane %v2492_v20, 5  ;;  %v291_v51 = vshrl.u32 %v2530_v57, 16 }
  0x36   : > { %684 = vrot.lane.b32.xlu1 %v2525_v53, %s2291_s21  ;;  %v2551_v13 = vcombine.low %v266_v14, %v276_v15  ;;  %v376_v17 = vrot.slane %v374_v54, 4  ;;  %v379_v18 = vrot.slane %v377_v56, 5  ;;  %v383_v19 = vshll.u32 %v2520_v48, 16 }
  0x37   : > { %v2556_v21 = vcombine.low %v469_v60, %v472_v62  ;;  %v442_v23 = vrot.slane %v440_v61, 4  ;;  %v389_v50 = vrot.slane %v387_v63, 4  ;;  %v287_v20 = vshll.u32 %v2530_v57, 16 }
  0x38   : > { %v2564_v28 = vrot.slane %v383_v19, 5  ;;  %v280_v29 = vrot.slane %v278_v2, 4  ;;  %v293_v30 = vrot.slane %v291_v51, 4  ;;  %v380_v6 = vor.u32 %v379_v18, %v376_v17 }
  0x39   : > { %674 = vrot.lane.b32.xlu0 %v2442_v5, %s2291_s21  ;;  %v283_v5 = vrot.slane %v281_v7, 5  ;;  %v2569_v0 = vrot.slane %v287_v20, 5  ;;  %v393_v33 = vshll.u32 %v2559_v26, 16  ;;  %v297_v1 = vshll.u32 %v2567_v25, 16 }
  0x3a   : > { %701 = vrot.lane.b32.xlu1 %v2416_v55, %s2292_s22  ;;  %v390_v31 = vor.u32 %v389_v50, %v2564_v28  ;;  %v441_v3 = vsel %vm2363_vm4, %v2020_v8, %v440_v61  ;;  %v444_v32 = vsel %vm2363_vm4, %v442_v23, %v443_v11  ;;  %v2588_v40 = vcombine.low %v2513_v45, %v2520_v48  ;;  %v2619_v11 = vld [vmem:[%s2331_s17 + $0x70] sm:$0xf]  ;;  %v2276_v23 = vld [vmem:[%s2988_s1 + $0x18] ss:$0 sps:$4 sm:$0x77]  }
  0x3b   : > { %v284_v38 = vor.u32 %v283_v5, %v280_v29  ;;  %v294_v39 = vor.u32 %v293_v30, %v2569_v0  ;;  %v2595_v43 = vcombine.low %v2523_v49, %v2530_v57  ;;  %v381_v44 = vrot.slane %v380_v6, 4  ;;  %2246 = vmatprep.subr.msk.bf16.mxu0 %vm421_vm0, %v2276_v23  ;;  %2247 = vmatprep.subr.msk.bf16.mxu1 %vm421_vm0, %v2276_v23 }
  0x3c   : > { %v481_v46 = vshrl.u32 %v2577_v35, 16  ;;  %v484_v37 = vshll.u32 %v2577_v35, 16  ;;  %v2602_v12 = vcombine.low %v441_v3, %v444_v32  ;;  %v391_v54 = vrot.slane %v390_v31, 4 }
  0x3d   : > { %676 = vrot.lane.b32.xlu0 %v2551_v13, %s2291_s21  ;;  %v395_v56 = vrot.slane %v393_v33, 5  ;;  %v2604_v14 = vrot.slane %v297_v1, 5  ;;  %v2608_v15 = vrot.slane %v284_v38, 4  ;;  %v2610_v60 = vrot.slane %v294_v39, 4  ;;  %v201_v38 = vld [vmem:[%s2331_s17 + $0x74] sm:$0x1] }
  0x3e   : > { %703 = vrot.lane.b32.xlu1 %v2556_v21, %s2292_s22  ;;  %v475_v61 = vrot.slane %v2520_v48, 5  ;;  %v494_v62 = vshrl.u32 %v2591_v41, 16  ;;  %v483_v63 = vrot.slane %v481_v46, 4  ;;  %v486_v2 = vrot.slane %v484_v37, 5 }
  0x3f   : > { %v490_v7 = vshll.u32 %v2591_v41, 16  ;;  %v500_v8 = vshll.u32 %v198_v47, 16  ;;  %v386_v51 = vsel %vm2412_vm5, %v381_v44, %v2564_v28  ;;  %v2026_v18 = vrot.slane %v2577_v35, 9 }
  0x40   : > { %v496_v17 = vrot.slane %v494_v62, 4  ;;  %v509_v19 = vrot.slane %v2591_v41, 5  ;;  %v396_v50 = vsel %vm2412_vm5, %v391_v54, %v395_v56  ;;  %v487_v20 = vor.u32 %v486_v2, %v483_v63 }
  0x41   : > { %693 = vrot.lane.b32.xlu0 %v2422_v59, %s2292_s22  ;;  %v2615_v59 = vld [vmem:[%s2331_s17 + $0x6c] sm:$0xf]  ;;  %v492_v29 = vrot.slane %v490_v7, 5  ;;  %v502_v5 = vrot.slane %v500_v8, 5  ;;  %v512_v6 = vrot.slane %v198_v47, 5  ;;  %v528_v32 = vshrl.u32 %v2619_v11, 16 }
  0x42   : > { %720 = vrot.lane.b32.xlu1 %v2488_v9, %s2293_s23  ;;  %v510_v28 = vsel %vm2363_vm4, %v2026_v18, %v509_v19  ;;  %v511_v30 = vrot.slane %v509_v19, 4  ;;  %v515_v31 = vshrl.u32 %v2615_v59, 16  ;;  %v488_v33 = vrot.slane %v487_v20, 4 }
  0x43   : > { %v497_v1 = vor.u32 %v496_v17, %v492_v29  ;;  %v518_v3 = vshll.u32 %v2615_v59, 16  ;;  %v2643_v39 = vcombine.low %v386_v51, %v396_v50  ;;  %v524_v37 = vshll.u32 %v2619_v11, 16 }
  0x44   : > { %v513_v44 = vsel %vm2363_vm4, %v511_v30, %v512_v6  ;;  %v517_v46 = vrot.slane %v515_v31, 4  ;;  %v493_v47 = vsel %vm2412_vm5, %v488_v33, %v492_v29  ;;  %v530_v2 = vrot.slane %v528_v32, 4 }
  0x45   : > { %695 = vrot.lane.b32.xlu0 %v2602_v12, %s2292_s22  ;;  %v498_v54 = vrot.slane %v497_v1, 4  ;;  %v2652_v56 = vcombine.low %v510_v28, %v513_v44  ;;  %v520_v62 = vrot.slane %v518_v3, 5  ;;  %v526_v63 = vrot.slane %v524_v37, 5 }
  0x46   : > { %722 = vrot.lane.b32.xlu1 %v2588_v40, %s2293_s23  ;;  %v534_v7 = vshll.u32 %v201_v38, 16  ;;  %v2027_v8 = vrot.slane %v2615_v59, 9  ;;  %v543_v18 = vrot.slane %v2619_v11, 5  ;;  %v546_v19 = vrot.slane %v201_v38, 5 }
  0x47   : > { %v503_v51 = vsel %vm2412_vm5, %v498_v54, %v502_v5  ;;  %v521_v17 = vor.u32 %v520_v62, %v517_v46  ;;  %v531_v20 = vor.u32 %v530_v2, %v526_v63  ;;  %v2028_v5 = vcombine.low %v2373_v22, %v2376_v24  ;;  %v2279_v62 = vld [vmem:[%s2988_s1] sm:$0xff]  }
  0x48   : > { %v2660_v50 = vcombine.low %v493_v47, %v503_v51  ;;  %v536_v29 = vrot.slane %v534_v7, 5  ;;  %v2666_v30 = vsel %vm2363_vm4, %v2027_v8, %v543_v18  ;;  %v545_v6 = vrot.slane %v543_v18, 4  ;;  %v2278_v47 = vld [vmem:[%s2988_s1 + $0x8] sm:$0xff]  }
  0x49   : > { %712 = vrot.lane.b32.xlu0 %v2504_v36, %s2293_s23  ;;  %v522_v28 = vrot.slane %v521_v17, 4  ;;  %v290_v31 = vsel %vm2412_vm5, %v2608_v15, %v2569_v0  ;;  %v300_v33 = vsel %vm2412_vm5, %v2610_v60, %v2604_v14  ;;  %v2025_v1 = vrot.slane %v2513_v45, 9  ;;  %v2277_v0 = vld [vmem:[%s2988_s1 + $0x10] sm:$0xff]  }
  0x4a   : > { %739 = vrot.lane.b32.xlu1 %v2525_v53, %s2294_s26  ;;  %v532_v3 = vrot.slane %v531_v20, 4  ;;  %v477_v32 = vrot.slane %v475_v61, 4  ;;  %v478_v38 = vrot.slane %v2559_v26, 5  ;;  %v2688_v46 = vsel %vm2363_vm4, %v545_v6, %v546_v19 }
  0x4b   : > { %v527_v44 = vsel %vm2412_vm5, %v522_v28, %v526_v63  ;;  %v2057_v14 = vcombine.low %v2666_v30, %v2688_v46  ;;  %v964_v15 = vsel %vm421_vm0, %v2276_v23, 0  ;;  %v2039_v26 = vcombine.low %v290_v31, %v300_v33 }
  0x4c   : > { %v537_v45 = vsel %vm2412_vm5, %v532_v3, %v536_v29  ;;  %2215 = vmatpush3.bf16.msra.mxu0 %v964_v15  ;;  %v447_v37 = vrot.slane %v2530_v57, 5  ;;  %2242 = vmatpush3.bf16.msra.mxu1 %v964_v15  ;;  %v476_v52 = vsel %vm2363_vm4, %v2025_v1, %v475_v61  ;;  %v479_v23 = vsel %vm2363_vm4, %v477_v32, %v478_v38 }
  0x4d   : > { %714 = vrot.lane.b32.xlu0 %v2595_v43, %s2293_s23  ;;  %v2056_v60 = vcombine.low %v527_v44, %v537_v45  ;;  %2216 = vmatprep.subr.bf16.mxu0 %v2277_v0  ;;  %v2051_v57 = vcombine.low %v476_v52, %v479_v23  ;;  %v2021_v48 = vrot.slane %v2523_v49, 9  ;;  %v450_v61 = vrot.slane %v2567_v25, 5 }
  0x4e   : > { %741 = vrot.lane.b32.xlu1 %v2643_v39, %s2294_s26  ;;  %2239 = vmatprep.subr.bf16.mxu1 %v2277_v0  ;;  %v449_v54 = vrot.slane %v447_v37, 4  ;;  %v2052_v16 = vcombine.low %v2577_v35, %v2591_v41  ;;  %vm1883_vm0 = vcmask 1042434   ;;  %vm1892_vm3 = vcmask 1045509  }
  0x4f   : > { %vm1898_vm5 = vcmask 1047559  }
  0x50   : > { %2217 = vmatpush3.bf16.msra.mxu0 %v2277_v0  ;;  %2243 = vmatpush3.bf16.msra.mxu1 %v2277_v0  ;;  %v451_v49 = vsel %vm2363_vm4, %v449_v54, %v450_v61 }
  0x51   : > { %731 = vrot.lane.b32.xlu0 %v2551_v13, %s2294_s26  ;;  %2218 = vmatprep.subr.bf16.mxu0 %v2278_v47 }
  0x52   : > { %758 = vrot.lane.b32.xlu1 %v2556_v21, %s2295_s29  ;;  %2240 = vmatprep.subr.bf16.mxu1 %v2278_v47 }
  0x54   : > { %2219 = vmatpush3.bf16.msra.mxu0 %v2278_v47  ;;  %2244 = vmatpush3.bf16.msra.mxu1 %v2278_v47 }
  0x55   : > { %733 = vrot.lane.b32.xlu0 %v2039_v26, %s2294_s26  ;;  %2220 = vmatprep.subr.bf16.mxu0 %v2279_v62 }
  0x56   : > { %608 = vrot.lane.b32.xlu1 %v2525_v53, %s2290_s20  ;;  %v448_v53 = vsel %vm2363_vm4, %v2021_v48, %v447_v37  ;;  %2241 = vmatprep.subr.bf16.mxu1 %v2279_v62  ;;  %vm1895_vm4 = vcmask 1046534  }
  0x57   : > { %v2047_v25 = vcombine.low %v448_v53, %v451_v49 }
  0x58   : > { %2221 = vmatpush3.bf16.msra.mxu0 %v2279_v62  ;;  %2245 = vmatpush3.bf16.msra.mxu1 %v2279_v62 }
  0x59   : > { %750 = vrot.lane.b32.xlu0 %v2602_v12, %s2295_s29 }
  0x5a   : > { %760 = vrot.lane.b32.xlu1 %v2051_v57, %s2295_s29 }
  0x5d   : > { %600 = vrot.lane.b32.xlu0 %v2551_v13, %s2290_s20  ;;  %v2055_v13 = vcombine.low %v2615_v59, %v2619_v11 }
  0x5e   : > { %610 = vrot.lane.b32.xlu1 %v2643_v39, %s2290_s20 }
  0x61   : > { %752 = vrot.lane.b32.xlu0 %v2047_v25, %s2295_s29 }
  0x62   : > { %648 = vrot.lane.b32.xlu1 %v2556_v21, %s2289_s19 }
  0x65   : > { %602 = vrot.lane.b32.xlu0 %v2039_v26, %s2290_s20 }
  0x66   : > { %650 = vrot.lane.b32.xlu1 %v2051_v57, %s2289_s19 }
  0x69   : > { %640 = vrot.lane.b32.xlu0 %v2602_v12, %s2289_s19 }
  0x6a   : > { %667 = vrot.lane.b32.xlu1 %v2588_v40, %s2288_s18 }
  0x6d   : > { %642 = vrot.lane.b32.xlu0 %v2047_v25, %s2289_s19 }
  0x6e   : > { %669 = vrot.lane.b32.xlu1 %v2052_v16, %s2288_s18 }
  0x71   : > { %659 = vrot.lane.b32.xlu0 %v2595_v43, %s2288_s18 }
  0x72   : > { %686 = vrot.lane.b32.xlu1 %v2643_v39, %s2291_s21 }
  0x75   : > { %661 = vrot.lane.b32.xlu0 %v2382_v27, %s2288_s18 }
  0x76   : > { %688 = vrot.lane.b32.xlu1 %v2660_v50, %s2291_s21 }
  0x79   : > { %678 = vrot.lane.b32.xlu0 %v2039_v26, %s2291_s21 }
  0x7a   : > { %705 = vrot.lane.b32.xlu1 %v2051_v57, %s2292_s22 }
  0x7d   : > { %680 = vrot.lane.b32.xlu0 %v2500_v34, %s2291_s21 }
  0x7e   : > { %707 = vrot.lane.b32.xlu1 %v2652_v56, %s2292_s22 }
  0x81   : > { %697 = vrot.lane.b32.xlu0 %v2047_v25, %s2292_s22 }
  0x82   : > { %724 = vrot.lane.b32.xlu1 %v2052_v16, %s2293_s23 }
  0x84   : > { %v664_v21 = vpop.permute.xlu1 %663 }
  0x85   : > { %699 = vrot.lane.b32.xlu0 %v2398_v42, %s2292_s22  ;;  %v656_v35 = vpop.permute.xlu0 %655 }
  0x86   : > { %726 = vrot.lane.b32.xlu1 %v2055_v13, %s2293_s23 }
  0x89   : > { %716 = vrot.lane.b32.xlu0 %v2382_v27, %s2293_s23 }
  0x8a   : > { %743 = vrot.lane.b32.xlu1 %v2660_v50, %s2294_s26 }
  0x8c   : > { %v645_v41 = vpop.permute.xlu1 %644 }
  0x8d   : > { %718 = vrot.lane.b32.xlu0 %v2343_v4, %s2293_s23 }
  0x8e   : > { %745 = vrot.lane.b32.xlu1 %v2056_v60, %s2294_s26  ;;  %v637_v59 = vpop.permute.xlu0 %636 }
  0x90   : > { %v647_v12 = vpop.permute.xlu1 %646 }
  0x91   : > { %735 = vrot.lane.b32.xlu0 %v2500_v34, %s2294_s26 }
  0x92   : > { %762 = vrot.lane.b32.xlu1 %v2652_v56, %s2295_s29  ;;  %v2782_v39 = vpop.permute.xlu0 %638 }
  0x95   : > { %737 = vrot.lane.b32.xlu0 %v2476_v58, %s2294_s26  ;;  %v599_v11 = vpop.permute.xlu1 %598 }
  0x96   : > { %764 = vrot.lane.b32.xlu1 %v2057_v14, %s2295_s29  ;;  %v772_v57 = vsel %vm766_vm6, %v2348_v10, %v599_v11 }
  0x97   : > { %v795_v16 = vsel %vm791_vm7, %v772_v57, %v2782_v39 }
  0x99   : > { %754 = vrot.lane.b32.xlu0 %v2398_v42, %s2295_s29 }
  0x9a   : > { %v597_v34 = vpop.permute.xlu0 %596 }
  0x9b   : > { %v769_v3 = vsel %vm766_vm6, %v2028_v5, %v597_v34 }
  0x9c   : > { %v607_v63 = vpop.permute.xlu1 %606  ;;  %v793_v46 = vsel %vm791_vm7, %v769_v3, %v637_v59 }
  0x9d   : > { %756 = vrot.lane.b32.xlu0 %v2416_v55, %s2295_s29  ;;  %v784_v0 = vsel %vm766_vm6, %v2343_v4, %v607_v63  ;;  %v810_v14 = vsel %vm808_vm9, %v793_v46, %v656_v35 }
  0x9e   : > { %v803_v5 = vsel %vm791_vm7, %v784_v0, %v647_v12 }
  0xa0   : > { %v666_v56 = vpop.permute.xlu1 %665 }
  0xa1   : > { %v820_v26 = vsel %vm808_vm9, %v803_v5, %v666_v56 }
  0xa3   : > { %v605_v2 = vpop.permute.xlu0 %604 }
  0xa4   : > { %v683_v7 = vpop.permute.xlu1 %682  ;;  %v781_v42 = vsel %vm766_vm6, %v2382_v27, %v605_v2 }
  0xa5   : > { %v801_v6 = vsel %vm791_vm7, %v781_v42, %v645_v41 }
  0xa6   : > { %v818_v33 = vsel %vm808_vm9, %v801_v6, %v664_v21 }
  0xa7   : > { %v658_v58 = vpop.permute.xlu0 %657  ;;  %v835_v27 = vsel %vm825_vm8, %v818_v33, %v683_v7 }
  0xa8   : > { %v685_v8 = vpop.permute.xlu1 %684  ;;  %v812_v10 = vsel %vm808_vm9, %v795_v16, %v658_v58 }
  0xa9   : > { %v837_v52 = vsel %vm825_vm8, %v820_v26, %v685_v8 }
  0xab   : > { %v675_v51 = vpop.permute.xlu0 %674 }
  0xac   : > { %v702_v17 = vpop.permute.xlu1 %701  ;;  %v827_v60 = vsel %vm825_vm8, %v810_v14, %v675_v51 }
  0xad   : > { %v852_v32 = vsel %vm842_vm10, %v835_v27, %v702_v17 }
  0xaf   : > { %v677_v18 = vpop.permute.xlu0 %676 }
  0xb0   : > { %v704_v19 = vpop.permute.xlu1 %703  ;;  %v829_v21 = vsel %vm825_vm8, %v812_v10, %v677_v18 }
  0xb1   : > { %v854_v23 = vsel %vm842_vm10, %v837_v52, %v704_v19 }
  0xb3   : > { %v694_v50 = vpop.permute.xlu0 %693 }
  0xb4   : > { %v721_v20 = vpop.permute.xlu1 %720  ;;  %v844_v4 = vsel %vm842_vm10, %v827_v60, %v694_v50 }
  0xb5   : > { %v869_v38 = vsel %vm859_vm11, %v852_v32, %v721_v20 }
  0xb7   : > { %v696_v29 = vpop.permute.xlu0 %695 }
  0xb8   : > { %v723_v28 = vpop.permute.xlu1 %722  ;;  %v846_v41 = vsel %vm842_vm10, %v829_v21, %v696_v29 }
  0xb9   : > { %v871_v48 = vsel %vm859_vm11, %v854_v23, %v723_v28 }
  0xbb   : > { %v713_v30 = vpop.permute.xlu0 %712 }
  0xbc   : > { %v740_v55 = vpop.permute.xlu1 %739  ;;  %v861_v47 = vsel %vm859_vm11, %v844_v4, %v713_v30 }
  0xbd   : > { %v886_v45 = vsel %vm876_vm12, %v869_v38, %v740_v55 }
  0xbf   : > { %v715_v31 = vpop.permute.xlu0 %714 }
  0xc0   : > { %v742_v1 = vpop.permute.xlu1 %741  ;;  %v863_v12 = vsel %vm859_vm11, %v846_v41, %v715_v31 }
  0xc1   : > { %v888_v62 = vsel %vm876_vm12, %v871_v48, %v742_v1 }
  0xc3   : > { %v732_v44 = vpop.permute.xlu0 %731 }
  0xc4   : > { %v759_v22 = vpop.permute.xlu1 %758  ;;  %v878_v54 = vsel %vm876_vm12, %v861_v47, %v732_v44 }
  0xc5   : > { %v903_v24 = vsel %vm893_vm13, %v886_v45, %v759_v22 }
  0xc6   : > { %2230 = vmatprep.mubr.msk.bf16.mxu1 %vm945_vm14, %v903_v24 }
  0xc7   : > { %v734_v15 = vpop.permute.xlu0 %733 }
  0xc8   : > { %v609_v37 = vpop.permute.xlu1 %608  ;;  %v880_v59 = vsel %vm876_vm12, %v863_v12, %v734_v15 }
  0xc9   : > { %v787_v1 = vsel %vm766_vm6, %v2488_v9, %v609_v37 }
  0xcb   : > { %v751_v61 = vpop.permute.xlu0 %750 }
  0xcc   : > { %v895_v53 = vsel %vm893_vm13, %v878_v54, %v751_v61  ;;  %v761_v49 = vpop.permute.xlu1 %760 }
  0xcd   : > { %2222 = vmatprep.mubr.msk.bf16.mxu0 %vm945_vm14, %v895_v53  ;;  %v905_v25 = vsel %vm893_vm13, %v888_v62, %v761_v49 }
  0xce   : > { %2231 = vmatmul.mubr.msk.bf16.vlgmr.msra.gmra.mxu1 %vm945_vm14, %v905_v25 }
  0xcf   : > { %v601_v13 = vpop.permute.xlu0 %600 }
  0xd0   : > { %v611_v35 = vpop.permute.xlu1 %610  ;;  %v775_v15 = vsel %vm766_vm6, %v2504_v36, %v601_v13 }
  0xd1   : > { %v790_v46 = vsel %vm766_vm6, %v2588_v40, %v611_v35 }
  0xd3   : > { %v753_v11 = vpop.permute.xlu0 %752 }
  0xd4   : > { %v897_v63 = vsel %vm893_vm13, %v880_v59, %v753_v11  ;;  %v649_v34 = vpop.permute.xlu1 %648  ;;  %v2296_v59 = vmov 1983009808  }
  0xd5   : > { %2223 = vmatmul.mubr.msk.bf16.vlgmr.msra.gmra.mxu0 %vm945_vm14, %v897_v63  ;;  %v805_v3 = vsel %vm791_vm7, %v787_v1, %v649_v34  ;;  %v1097_v11 = vunpack.c.l.s4 %v2296_v59  ;;  %v1099_v63 = vlaneseq }
  0xd7   : > { %v603_v39 = vpop.permute.xlu0 %602  ;;  %v1098_v34 = vunpack.c.0.s8 %v1097_v11 }
  0xd8   : > { %v651_v56 = vpop.permute.xlu1 %650  ;;  %v778_v48 = vsel %vm766_vm6, %v2595_v43, %v603_v39  ;;  %v1100_v39 = vshrl.u32 %v1099_v63, 7  ;;  %vm1950_vm6 = vcmask 519168  }
  0xd9   : > { %v807_v45 = vsel %vm791_vm7, %v790_v46, %v651_v56  ;;  %v2874_v56 = vld [vmem:[%s2989_s2] ss:$0 sm:$0xff] }
  0xdb   : > { %v641_v2 = vpop.permute.xlu0 %640 }
  0xdc   : > { %v668_v7 = vpop.permute.xlu1 %667  ;;  %v797_v40 = vsel %vm791_vm7, %v775_v15, %v641_v2 }
  0xdd   : > { %v822_v32 = vsel %vm808_vm9, %v805_v3, %v668_v7  ;;  %v2876_v7 = vsub.s32 %v1098_v34, %v1100_v39 }
  0xdf   : > { %v643_v58 = vpop.permute.xlu0 %642 }
  0xe0   : > { %v670_v8 = vpop.permute.xlu1 %669  ;;  %v799_v62 = vsel %vm791_vm7, %v778_v48, %v643_v58 }
  0xe1   : > { %v824_v9 = vsel %vm808_vm9, %v807_v45, %v670_v8 }
  0xe3   : > { %v660_v51 = vpop.permute.xlu0 %659 }
  0xe4   : > { %v687_v17 = vpop.permute.xlu1 %686  ;;  %v814_v52 = vsel %vm808_vm9, %v797_v40, %v660_v51 }
  0xe5   : > { %v839_v44 = vsel %vm825_vm8, %v822_v32, %v687_v17 }
  0xe7   : > { %v662_v18 = vpop.permute.xlu0 %661 }
  0xe8   : > { %v689_v19 = vpop.permute.xlu1 %688  ;;  %v816_v49 = vsel %vm808_vm9, %v799_v62, %v662_v18 }
  0xe9   : > { %v841_v26 = vsel %vm825_vm8, %v824_v9, %v689_v19 }
  0xeb   : > { %v679_v50 = vpop.permute.xlu0 %678 }
  0xec   : > { %v706_v20 = vpop.permute.xlu1 %705  ;;  %v831_v47 = vsel %vm825_vm8, %v814_v52, %v679_v50 }
  0xed   : > { %v856_v0 = vsel %vm842_vm10, %v839_v44, %v706_v20 }
  0xef   : > { %v681_v29 = vpop.permute.xlu0 %680 }
  0xf0   : > { %v708_v28 = vpop.permute.xlu1 %707  ;;  %v833_v10 = vsel %vm825_vm8, %v816_v49, %v681_v29 }
  0xf1   : > { %v858_v37 = vsel %vm842_vm10, %v841_v26, %v708_v28 }
  0xf3   : > { %v698_v42 = vpop.permute.xlu0 %697 }
  0xf4   : > { %v725_v30 = vpop.permute.xlu1 %724  ;;  %v848_v54 = vsel %vm842_vm10, %v831_v47, %v698_v42 }
  0xf5   : > { %v873_v22 = vsel %vm859_vm11, %v856_v0, %v725_v30 }
  0xf7   : > { %v700_v55 = vpop.permute.xlu0 %699 }
  0xf8   : > { %v727_v6 = vpop.permute.xlu1 %726  ;;  %v850_v43 = vsel %vm842_vm10, %v833_v10, %v700_v55 }
  0xf9   : > { %v875_v4 = vsel %vm859_vm11, %v858_v37, %v727_v6 }
  0xfb   : > { %v717_v31 = vpop.permute.xlu0 %716 }
  0xfc   : > { %v744_v33 = vpop.permute.xlu1 %743  ;;  %v865_v53 = vsel %vm859_vm11, %v848_v54, %v717_v31 }
  0xfd   : > { %v890_v5 = vsel %vm876_vm12, %v873_v22, %v744_v33 }
  0xff   : > { %v719_v27 = vpop.permute.xlu0 %718 }
 0x100   : > { %v746_v38 = vpop.permute.xlu1 %745  ;;  %v867_v21 = vsel %vm859_vm11, %v850_v43, %v719_v27 }
 0x101   : > { %v892_v57 = vsel %vm876_vm12, %v875_v4, %v746_v38 }
 0x103   : > { %v736_v24 = vpop.permute.xlu0 %735 }
 0x104   : > { %v763_v14 = vpop.permute.xlu1 %762  ;;  %v882_v25 = vsel %vm876_vm12, %v865_v53, %v736_v24 }
 0x105   : > { %v907_v60 = vsel %vm893_vm13, %v890_v5, %v763_v14 }
 0x106   : > { %2234 = vmatprep.mubr.msk.bf16.mxu1 %vm945_vm14, %v907_v60 }
 0x107   : > { %v738_v23 = vpop.permute.xlu0 %737 }
 0x108   : > { %v765_v36 = vpop.permute.xlu1 %764  ;;  %v884_v35 = vsel %vm876_vm12, %v867_v21, %v738_v23 }
 0x109   : > { %v909_v61 = vsel %vm893_vm13, %v892_v57, %v765_v36 }
 0x10a   : > { %2235 = vmatmul.mubr.msk.bf16.gmra.mxu1 %vm945_vm14, %v909_v61 }
 0x10b   : > { %v755_v16 = vpop.permute.xlu0 %754 }
 0x10c   : > { %v899_v13 = vsel %vm893_vm13, %v882_v25, %v755_v16 }
 0x10d   : > { %2226 = vmatprep.mubr.msk.bf16.mxu0 %vm945_vm14, %v899_v13 }
 0x10f   : > { %v757_v41 = vpop.permute.xlu0 %756 }
 0x110   : > { %v901_v12 = vsel %vm893_vm13, %v884_v35, %v757_v41 }
 0x111   : > { %2227 = vmatmul.mubr.msk.bf16.gmra.mxu0 %vm945_vm14, %v901_v12 }
 0x18e   : > { %v2232_v2 = vpop.f32.mrf.mxu1 }
 0x18f   : > { %v1041_v58 = vadd.f32 %v2232_v2, %v2874_v56 }
 0x190   : > { %v1032_v8 = vpop.f32.mrf.mxu1 }
 0x191   : > { %v1073_v51 = vmax.f32 %v1041_v58, 0.0  ;;  %v1033_v17 = vadd.f32 %v2874_v56, %v1032_v8 }
 0x192   : > { %v2233_v20 = vpop.f32.mrf.mxu1 }
 0x193   : > { %v1265_v18 = vcombine.high %v1073_v51, %v1073_v51  ;;  %v1272_v19 = vrot.slane %v1073_v51, %v2876_v7  ;;  %v1071_v50 = vmax.f32 %v1033_v17, 0.0  ;;  %v1044_v32 = vadd.f32 %v2233_v20, %v2874_v56 }
 0x195   : > { %v2224_v29 = vpop.f32.mrf.mxu0  ;;  %v1279_v28 = vrot.slane %v1265_v18, %v2876_v7  ;;  %v1280_v42 = vcombine.high %v1272_v19, %v1272_v19  ;;  %v2119_v30 = vrot.slane %v1272_v19, 9  ;;  %v1231_v55 = vcombine.high %v1071_v50, %v1071_v50 }
 0x196   : > { %v1009_v6 = vadd.f32 %v2224_v29, %v2874_v56  ;;  %v1238_v31 = vrot.slane %v1071_v50, %v2876_v7 }
 0x197   : > { %v1281_v33 = vcombine.high %v1279_v28, %v1279_v28  ;;  %v2120_v1 = vrot.slane %v1280_v42, 9  ;;  %v2121_v3 = vrot.slane %v1279_v28, 9  ;;  %v1000_v27 = vpop.f32.mrf.mxu0  ;;  %v1245_v46 = vrot.slane %v1231_v55, %v2876_v7 }
 0x198   : > { %v1065_v38 = vmax.f32 %v1009_v6, 0.0  ;;  %v1001_v44 = vadd.f32 %v2874_v56, %v1000_v27  ;;  %v1246_v0 = vcombine.high %v1238_v31, %v1238_v31  ;;  %v1671_v22 = vmax.f32 %v1272_v19, %v2119_v30 }
 0x199   : > { %v2122_v45 = vrot.slane %v1281_v33, 9  ;;  %v1672_v24 = vmax.f32 %v1280_v42, %v2120_v1  ;;  %v2087_v9 = vrot.slane %v1238_v31, 9  ;;  %v1247_v26 = vcombine.high %v1245_v46, %v1245_v46  ;;  %v2225_v50 = vpop.f32.mrf.mxu0 }
 0x19a   : > { %v1129_v5 = vcombine.high %v1065_v38, %v1065_v38  ;;  %v1136_v14 = vrot.slane %v1065_v38, %v2876_v7  ;;  %v1063_v15 = vmax.f32 %v1001_v44, 0.0  ;;  %v1673_v60 = vmax.f32 %v1279_v28, %v2121_v3 }
 0x19b   : > { %v2088_v40 = vrot.slane %v1246_v0, 9  ;;  %v2089_v37 = vrot.slane %v1245_v46, 9  ;;  %v1543_v52 = vmax.f32 %v1238_v31, %v2087_v9  ;;  %v1674_v36 = vmax.f32 %v1281_v33, %v2122_v45  ;;  %v1035_v33 = vpop.f32.mrf.mxu1  ;;  %v1003_v45 = vpop.f32.mrf.mxu0 }
 0x19c   : > { %v1143_v4 = vrot.slane %v1129_v5, %v2876_v7  ;;  %v1144_v23 = vcombine.high %v1136_v14, %v1136_v14  ;;  %v2103_v47 = vrot.slane %v1136_v14, 9  ;;  %v1095_v57 = vcombine.high %v1063_v15, %v1063_v15 }
 0x19d   : > { %v1102_v48 = vrot.slane %v1063_v15, %v2876_v7  ;;  %v2090_v54 = vrot.slane %v1247_v26, 9  ;;  %v1544_v61 = vmax.f32 %v1246_v0, %v2088_v40  ;;  %v1545_v25 = vmax.f32 %v1245_v46, %v2089_v37 }
 0x19e   : > { %v1145_v62 = vcombine.high %v1143_v4, %v1143_v4  ;;  %v2104_v53 = vrot.slane %v1144_v23, 9  ;;  %v2105_v49 = vrot.slane %v1143_v4, 9  ;;  %v1109_v16 = vrot.slane %v1095_v57, %v2876_v7 }
 0x19f   : > { %v1110_v10 = vcombine.high %v1102_v48, %v1102_v48  ;;  %v2071_v13 = vrot.slane %v1102_v48, 9  ;;  %v1546_v43 = vmax.f32 %v1247_v26, %v2090_v54  ;;  %v1655_v35 = vmax.f32 %v1136_v14, %v2103_v47 }
 0x1a0   : > { %v2106_v21 = vrot.slane %v1145_v62, 9  ;;  %v1656_v41 = vmax.f32 %v1144_v23, %v2104_v53  ;;  %v1703_v12 = vmax.f32 %v1543_v52, %v1671_v22  ;;  %v1111_v59 = vcombine.high %v1109_v16, %v1109_v16 }
 0x1a1   : > { %v2072_v11 = vrot.slane %v1110_v10, 9  ;;  %v2073_v63 = vrot.slane %v1109_v16, 9  ;;  %v1527_v34 = vmax.f32 %v1102_v48, %v2071_v13  ;;  %v1657_v39 = vmax.f32 %v1143_v4, %v2105_v49 }
 0x1a2   : > { %v1704_v2 = vmax.f32 %v1544_v61, %v1672_v24  ;;  %v1705_v58 = vmax.f32 %v1545_v25, %v1673_v60  ;;  %v1706_v8 = vmax.f32 %v1546_v43, %v1674_v36  ;;  %v2074_v51 = vrot.slane %v1111_v59, 9 }
 0x1a3   : > { %v1528_v17 = vmax.f32 %v1110_v10, %v2072_v11  ;;  %v1529_v18 = vmax.f32 %v1109_v16, %v2073_v63  ;;  %v1687_v19 = vmax.f32 %v1527_v34, %v1655_v35  ;;  %v2186_v20 = vpack.c.bf16 %v1703_v12, %v1703_v12 }
 0x1a4   : > { %v2187_v29 = vpack.c.bf16 %v1704_v2, %v1704_v2  ;;  %v2188_v28 = vpack.c.bf16 %v1705_v58, %v1705_v58  ;;  %v1074_v42 = vmax.f32 %v1044_v32, 0.0  ;;  %v1658_v30 = vmax.f32 %v1145_v62, %v2106_v21 }
 0x1a5   : > { %v1530_v55 = vmax.f32 %v1111_v59, %v2074_v51  ;;  %v1688_v6 = vmax.f32 %v1528_v17, %v1656_v41  ;;  %v1689_v31 = vmax.f32 %v1529_v18, %v1657_v39  ;;  %v2170_v1 = vpack.c.bf16 %v1687_v19, %v1687_v19 }
 0x1a6   : > { %v2189_v3 = vpack.c.bf16 %v1706_v8, %v1706_v8  ;;  %v1864_v27 = vunpack.c.l.b16 %v2187_v29  ;;  %v1865_v0 = vunpack.c.l.b16 %v2188_v28  ;;  %v1863_v22 = vunpack.c.l.b16 %v2186_v20 }
 0x1a7   : > { %v1690_v38 = vmax.f32 %v1530_v55, %v1658_v30  ;;  %v2171_v44 = vpack.c.bf16 %v1688_v6, %v1688_v6  ;;  %v2172_v46 = vpack.c.bf16 %v1689_v31, %v1689_v31  ;;  %v1012_v9 = vadd.f32 %v2225_v50, %v2874_v56 }
 0x1a8   : > { %v1914_v24 = vrot.slane %v1864_v27, 7  ;;  %v1036_v32 = vadd.f32 %v2874_v56, %v1035_v33  ;;  %v1282_v26 = vcombine.high %v1074_v42, %v1074_v42  ;;  %v2893_v60 = vunpack.c.l.b16 %v2189_v3 }
 0x1a9   : > { %v2173_v5 = vpack.c.bf16 %v1690_v38, %v1690_v38  ;;  %v1848_v14 = vunpack.c.l.b16 %v2171_v44  ;;  %v1849_v15 = vunpack.c.l.b16 %v2172_v46  ;;  %v1066_v40 = vmax.f32 %v1012_v9, 0.0 }
 0x1aa   : > { %v1289_v37 = vrot.slane %v1074_v42, %v2876_v7  ;;  %v1004_v52 = vadd.f32 %v2874_v56, %v1003_v45  ;;  %v1847_v4 = vunpack.c.l.b16 %v2170_v1  ;;  %v1915_v47 = vsel %vm1880_vm15, %v1914_v24, %v1863_v22 }
 0x1ab   : > { %v1879_v23 = vrot.slane %v1848_v14, 7  ;;  %v1916_v57 = vrot.slane %v1865_v0, 6  ;;  %v1146_v36 = vcombine.high %v1066_v40, %v1066_v40  ;;  %v1153_v48 = vrot.slane %v1066_v40, %v2876_v7 }
 0x1ac   : > { %v1296_v54 = vrot.slane %v1282_v26, %v2876_v7  ;;  %v1297_v61 = vcombine.high %v1289_v37, %v1289_v37  ;;  %v1850_v62 = vunpack.c.l.b16 %v2173_v5  ;;  %v1882_v53 = vrot.slane %v1849_v15, 6 }
 0x1ad   : > { %v2123_v49 = vrot.slane %v1289_v37, 9  ;;  %v1064_v25 = vmax.f32 %v1004_v52, 0.0  ;;  %v1881_v16 = vsel %vm1880_vm15, %v1879_v23, %v1847_v4  ;;  %v1160_v10 = vrot.slane %v1146_v36, %v2876_v7 }
 0x1ae   : > { %v1161_v13 = vcombine.high %v1153_v48, %v1153_v48  ;;  %v2107_v43 = vrot.slane %v1153_v48, 9  ;;  %v1918_v21 = vrot.slane %v2893_v60, 5  ;;  %v1298_v35 = vcombine.high %v1296_v54, %v1296_v54 }
 0x1af   : > { %v2124_v41 = vrot.slane %v1297_v61, 9  ;;  %v2125_v12 = vrot.slane %v1296_v54, 9  ;;  %v2904_v59 = vsel %vm1883_vm0, %v1916_v57, %v1915_v47  ;;  %v1162_v11 = vcombine.high %v1160_v10, %v1160_v10 }
 0x1b0   : > { %v2108_v63 = vrot.slane %v1161_v13, 9  ;;  %v2109_v34 = vrot.slane %v1160_v10, 9  ;;  %v1884_v39 = vsel %vm1883_vm0, %v1882_v53, %v1881_v16  ;;  %v1885_v2 = vrot.slane %v1850_v62, 5 }
 0x1b1   : > { %v1675_v58 = vmax.f32 %v1289_v37, %v2123_v49  ;;  %v1112_v8 = vcombine.high %v1064_v25, %v1064_v25  ;;  %v1659_v51 = vmax.f32 %v1153_v48, %v2107_v43  ;;  %v2126_v17 = vrot.slane %v1298_v35, 9 }
 0x1b2   : > { %v1676_v18 = vmax.f32 %v1297_v61, %v2124_v41  ;;  %v1119_v19 = vrot.slane %v1064_v25, %v2876_v7  ;;  %v2110_v50 = vrot.slane %v1162_v11, 9  ;;  %v1677_v20 = vmax.f32 %v1296_v54, %v2125_v12 }
 0x1b3   : > { %v1126_v29 = vrot.slane %v1112_v8, %v2876_v7  ;;  %v1072_v28 = vmax.f32 %v1036_v32, 0.0  ;;  %v1660_v42 = vmax.f32 %v1161_v13, %v2108_v63  ;;  %v1661_v30 = vmax.f32 %v1160_v10, %v2109_v34 }
 0x1b4   : > { %v1127_v55 = vcombine.high %v1119_v19, %v1119_v19  ;;  %v2075_v6 = vrot.slane %v1119_v19, 9  ;;  %v1678_v27 = vmax.f32 %v1298_v35, %v2126_v17  ;;  %v1887_v46 = vsel %vm1886_vm1, %v1885_v2, %v1884_v39 }
 0x1b5   : > { %v1128_v31 = vcombine.high %v1126_v29, %v1126_v29  ;;  %v2077_v33 = vrot.slane %v1126_v29, 9  ;;  %v1248_v1 = vcombine.high %v1072_v28, %v1072_v28  ;;  %v1255_v3 = vrot.slane %v1072_v28, %v2876_v7 }
 0x1b6   : > { %v2076_v38 = vrot.slane %v1127_v55, 9  ;;  %v1531_v44 = vmax.f32 %v1119_v19, %v2075_v6  ;;  %v1662_v9 = vmax.f32 %v1162_v11, %v2110_v50 }
 0x1b7   : > { %v2078_v0 = vrot.slane %v1128_v31, 9  ;;  %v1533_v45 = vmax.f32 %v1126_v29, %v2077_v33  ;;  %v1262_v22 = vrot.slane %v1248_v1, %v2876_v7  ;;  %v1263_v24 = vcombine.high %v1255_v3, %v1255_v3 }
 0x1b8   : > { %v1532_v32 = vmax.f32 %v1127_v55, %v2076_v38  ;;  %v1691_v5 = vmax.f32 %v1531_v44, %v1659_v51  ;;  %v2091_v14 = vrot.slane %v1255_v3, 9 }
 0x1b9   : > { %v1534_v15 = vmax.f32 %v1128_v31, %v2078_v0  ;;  %v1693_v26 = vmax.f32 %v1533_v45, %v1661_v30  ;;  %v1264_v40 = vcombine.high %v1262_v22, %v1262_v22  ;;  %v2092_v37 = vrot.slane %v1263_v24, 9 }
 0x1ba   : > { %v1692_v52 = vmax.f32 %v1532_v32, %v1660_v42  ;;  %v2174_v4 = vpack.c.bf16 %v1691_v5, %v1691_v5  ;;  %v2093_v23 = vrot.slane %v1262_v22, 9  ;;  %v1547_v47 = vmax.f32 %v1255_v3, %v2091_v14 }
 0x1bb   : > { %v1694_v57 = vmax.f32 %v1534_v15, %v1662_v9  ;;  %v2176_v36 = vpack.c.bf16 %v1693_v26, %v1693_v26  ;;  %v2094_v48 = vrot.slane %v1264_v40, 9  ;;  %v1548_v54 = vmax.f32 %v1263_v24, %v2092_v37 }
 0x1bc   : > { %v2175_v61 = vpack.c.bf16 %v1692_v52, %v1692_v52  ;;  %v1851_v62 = vunpack.c.l.b16 %v2174_v4  ;;  %v1549_v53 = vmax.f32 %v1262_v22, %v2093_v23  ;;  %v1707_v49 = vmax.f32 %v1547_v47, %v1675_v58 }
 0x1bd   : > { %v2177_v25 = vpack.c.bf16 %v1694_v57, %v1694_v57  ;;  %v1853_v16 = vunpack.c.l.b16 %v2176_v36  ;;  %v1550_v10 = vmax.f32 %v1264_v40, %v2094_v48  ;;  %v1708_v13 = vmax.f32 %v1548_v54, %v1676_v18 }
 0x1be   : > { %v1852_v43 = vunpack.c.l.b16 %v2175_v61  ;;  %v1888_v35 = vrot.slane %v1851_v62, 4  ;;  %v1709_v41 = vmax.f32 %v1549_v53, %v1677_v20  ;;  %v2190_v12 = vpack.c.bf16 %v1707_v49, %v1707_v49 }
 0x1bf   : > { %v1854_v11 = vunpack.c.l.b16 %v2177_v25  ;;  %v1894_v63 = vrot.slane %v1853_v16, 2  ;;  %v1710_v34 = vmax.f32 %v1550_v10, %v1678_v27  ;;  %v2191_v39 = vpack.c.bf16 %v1708_v13, %v1708_v13 }
 0x1c0   : > { %v1890_v2 = vsel %vm1889_vm2, %v1888_v35, %v1887_v46  ;;  %v1891_v8 = vrot.slane %v1852_v43, 3  ;;  %v2192_v51 = vpack.c.bf16 %v1709_v41, %v1709_v41  ;;  %v1867_v17 = vunpack.c.l.b16 %v2190_v12 }
 0x1c1   : > { %v1897_v58 = vrot.slane %v1854_v11, 1  ;;  %v2193_v19 = vpack.c.bf16 %v1710_v34, %v1710_v34  ;;  %v1868_v50 = vunpack.c.l.b16 %v2191_v39  ;;  %v1919_v18 = vsel %vm1886_vm1, %v1918_v21, %v2904_v59 }
 0x1c2   : > { %v1893_v20 = vsel %vm1892_vm3, %v1891_v8, %v1890_v2  ;;  %v1869_v29 = vunpack.c.l.b16 %v2192_v51  ;;  %v1920_v28 = vrot.slane %v1867_v17, 4 }
 0x1c3   : > { %v1896_v42 = vsel %vm1895_vm4, %v1894_v63, %v1893_v20  ;;  %v1870_v30 = vunpack.c.l.b16 %v2193_v19  ;;  %v1922_v55 = vrot.slane %v1868_v50, 3 }
 0x1c4   : > { %v1899_v6 = vsel %vm1898_vm5, %v1897_v58, %v1896_v42  ;;  %v1921_v60 = vsel %vm1889_vm2, %v1920_v28, %v1919_v18  ;;  %v1924_v21 = vrot.slane %v1869_v29, 2 }
 0x1c5   : > { %v1942_v59 = vpack.c.b16 %v1899_v6, %v1899_v6  ;;  %v1923_v31 = vsel %vm1892_vm3, %v1922_v55, %v1921_v60  ;;  %v1926_v33 = vrot.slane %v1870_v30, 1 }
 0x1c6   : > { %v1925_v1 = vsel %vm1895_vm4, %v1924_v21, %v1923_v31 }
 0x1c7   : > { %1951 = vst.msk [vmem:[%s2923_s13] sm:$0xf] %vm1950_vm6, %v1942_v59  ;;  %v1927_v3 = vsel %vm1898_vm5, %v1926_v33, %v1925_v1 }
 0x1c8   : > { %v1944_v27 = vpack.c.b16 %v1927_v3, %v1927_v3 }
 0x1ca   : > { %1953 = vst.msk [vmem:[%s2923_s13 + $0x8] sm:$0xf] %vm1950_vm6, %v1944_v27  ;;  %v2236_v38 = vpop.f32.mrf.mxu1 }
 0x1cb   : > { %v1057_v44 = vadd.f32 %v2236_v38, %v2874_v56 }
 0x1cc   : > { %v1048_v46 = vpop.f32.mrf.mxu1 }
 0x1cd   : > { %v1077_v0 = vmax.f32 %v1057_v44, 0.0  ;;  %v1049_v45 = vadd.f32 %v2874_v56, %v1048_v46 }
 0x1ce   : > { %v2237_v32 = vpop.f32.mrf.mxu1 }
 0x1cf   : > { %v1333_v22 = vcombine.high %v1077_v0, %v1077_v0  ;;  %v1340_v24 = vrot.slane %v1077_v0, %v2876_v7  ;;  %v1075_v9 = vmax.f32 %v1049_v45, 0.0  ;;  %v1060_v36 = vadd.f32 %v2237_v32, %v2874_v56 }
 0x1d1   : > { %v2228_v5 = vpop.f32.mrf.mxu0  ;;  %v1347_v14 = vrot.slane %v1333_v22, %v2876_v7  ;;  %v1348_v15 = vcombine.high %v1340_v24, %v1340_v24  ;;  %v2127_v26 = vrot.slane %v1340_v24, 9  ;;  %v1299_v40 = vcombine.high %v1075_v9, %v1075_v9 }
 0x1d2   : > { %v1025_v37 = vadd.f32 %v2228_v5, %v2874_v56  ;;  %v1306_v52 = vrot.slane %v1075_v9, %v2876_v7 }
 0x1d3   : > { %v1349_v4 = vcombine.high %v1347_v14, %v1347_v14  ;;  %v2128_v23 = vrot.slane %v1348_v15, 9  ;;  %v2129_v47 = vrot.slane %v1347_v14, 9  ;;  %v1016_v57 = vpop.f32.mrf.mxu0  ;;  %v1313_v61 = vrot.slane %v1299_v40, %v2876_v7 }
 0x1d4   : > { %v1069_v48 = vmax.f32 %v1025_v37, 0.0  ;;  %v1017_v54 = vadd.f32 %v2874_v56, %v1016_v57  ;;  %v1314_v62 = vcombine.high %v1306_v52, %v1306_v52  ;;  %v1679_v49 = vmax.f32 %v1340_v24, %v2127_v26 }
 0x1d5   : > { %v2130_v53 = vrot.slane %v1349_v4, 9  ;;  %v1680_v25 = vmax.f32 %v1348_v15, %v2128_v23  ;;  %v2095_v16 = vrot.slane %v1306_v52, 9  ;;  %v1315_v35 = vcombine.high %v1313_v61, %v1313_v61  ;;  %v2229_v9 = vpop.f32.mrf.mxu0 }
 0x1d6   : > { %v1197_v10 = vcombine.high %v1069_v48, %v1069_v48  ;;  %v1204_v13 = vrot.slane %v1069_v48, %v2876_v7  ;;  %v1067_v43 = vmax.f32 %v1017_v54, 0.0  ;;  %v1681_v41 = vmax.f32 %v1347_v14, %v2129_v47 }
 0x1d7   : > { %v2096_v12 = vrot.slane %v1314_v62, 9  ;;  %v2097_v11 = vrot.slane %v1313_v61, 9  ;;  %v1551_v63 = vmax.f32 %v1306_v52, %v2095_v16  ;;  %v1682_v51 = vmax.f32 %v1349_v4, %v2130_v53  ;;  %v1051_v4 = vpop.f32.mrf.mxu1  ;;  %v1019_v53 = vpop.f32.mrf.mxu0 }
 0x1d8   : > { %v1211_v34 = vrot.slane %v1197_v10, %v2876_v7  ;;  %v1212_v39 = vcombine.high %v1204_v13, %v1204_v13  ;;  %v2111_v2 = vrot.slane %v1204_v13, 9  ;;  %v1163_v8 = vcombine.high %v1067_v43, %v1067_v43 }
 0x1d9   : > { %v1170_v17 = vrot.slane %v1067_v43, %v2876_v7  ;;  %v2098_v58 = vrot.slane %v1315_v35, 9  ;;  %v1552_v19 = vmax.f32 %v1314_v62, %v2096_v12  ;;  %v1553_v29 = vmax.f32 %v1313_v61, %v2097_v11 }
 0x1da   : > { %v1213_v50 = vcombine.high %v1211_v34, %v1211_v34  ;;  %v2112_v18 = vrot.slane %v1212_v39, 9  ;;  %v2113_v20 = vrot.slane %v1211_v34, 9  ;;  %v1177_v28 = vrot.slane %v1163_v8, %v2876_v7 }
 0x1db   : > { %v1178_v42 = vcombine.high %v1170_v17, %v1170_v17  ;;  %v2079_v30 = vrot.slane %v1170_v17, 9  ;;  %v1554_v55 = vmax.f32 %v1315_v35, %v2098_v58  ;;  %v1663_v60 = vmax.f32 %v1204_v13, %v2111_v2 }
 0x1dc   : > { %v2114_v6 = vrot.slane %v1213_v50, 9  ;;  %v1664_v21 = vmax.f32 %v1212_v39, %v2112_v18  ;;  %v1711_v59 = vmax.f32 %v1551_v63, %v1679_v49  ;;  %v1179_v31 = vcombine.high %v1177_v28, %v1177_v28 }
 0x1dd   : > { %v2080_v33 = vrot.slane %v1178_v42, 9  ;;  %v2081_v1 = vrot.slane %v1177_v28, 9  ;;  %v1535_v3 = vmax.f32 %v1170_v17, %v2079_v30  ;;  %v1665_v27 = vmax.f32 %v1211_v34, %v2113_v20 }
 0x1de   : > { %v1712_v38 = vmax.f32 %v1552_v19, %v1680_v25  ;;  %v1713_v44 = vmax.f32 %v1553_v29, %v1681_v41  ;;  %v1714_v46 = vmax.f32 %v1554_v55, %v1682_v51  ;;  %v2082_v0 = vrot.slane %v1179_v31, 9 }
 0x1df   : > { %v1536_v45 = vmax.f32 %v1178_v42, %v2080_v33  ;;  %v1537_v22 = vmax.f32 %v1177_v28, %v2081_v1  ;;  %v1695_v24 = vmax.f32 %v1535_v3, %v1663_v60  ;;  %v2194_v32 = vpack.c.bf16 %v1711_v59, %v1711_v59 }
 0x1e0   : > { %v2195_v5 = vpack.c.bf16 %v1712_v38, %v1712_v38  ;;  %v2196_v14 = vpack.c.bf16 %v1713_v44, %v1713_v44  ;;  %v1078_v15 = vmax.f32 %v1060_v36, 0.0  ;;  %v1666_v26 = vmax.f32 %v1213_v50, %v2114_v6 }
 0x1e1   : > { %v1538_v40 = vmax.f32 %v1179_v31, %v2082_v0  ;;  %v1696_v37 = vmax.f32 %v1536_v45, %v1664_v21  ;;  %v1697_v52 = vmax.f32 %v1537_v22, %v1665_v27  ;;  %v2178_v23 = vpack.c.bf16 %v1695_v24, %v1695_v24 }
 0x1e2   : > { %v2197_v47 = vpack.c.bf16 %v1714_v46, %v1714_v46  ;;  %v1872_v57 = vunpack.c.l.b16 %v2195_v5  ;;  %v1873_v62 = vunpack.c.l.b16 %v2196_v14  ;;  %v1871_v49 = vunpack.c.l.b16 %v2194_v32 }
 0x1e3   : > { %v1698_v48 = vmax.f32 %v1538_v40, %v1666_v26  ;;  %v2179_v54 = vpack.c.bf16 %v1696_v37, %v1696_v37  ;;  %v2180_v61 = vpack.c.bf16 %v1697_v52, %v1697_v52  ;;  %v1028_v16 = vadd.f32 %v2229_v9, %v2874_v56 }
 0x1e4   : > { %v1928_v25 = vrot.slane %v1872_v57, 7  ;;  %v1052_v10 = vadd.f32 %v2874_v56, %v1051_v4  ;;  %v1350_v35 = vcombine.high %v1078_v15, %v1078_v15  ;;  %v2949_v41 = vunpack.c.l.b16 %v2197_v47 }
 0x1e5   : > { %v2181_v36 = vpack.c.bf16 %v1698_v48, %v1698_v48  ;;  %v1856_v13 = vunpack.c.l.b16 %v2179_v54  ;;  %v1857_v43 = vunpack.c.l.b16 %v2180_v61  ;;  %v1070_v12 = vmax.f32 %v1028_v16, 0.0 }
 0x1e6   : > { %v1357_v11 = vrot.slane %v1078_v15, %v2876_v7  ;;  %v1020_v63 = vadd.f32 %v2874_v56, %v1019_v53  ;;  %v1855_v34 = vunpack.c.l.b16 %v2178_v23  ;;  %v1929_v2 = vsel %vm1880_vm15, %v1928_v25, %v1871_v49 }
 0x1e7   : > { %v1900_v39 = vrot.slane %v1856_v13, 7  ;;  %v1930_v8 = vrot.slane %v1873_v62, 6  ;;  %v1214_v51 = vcombine.high %v1070_v12, %v1070_v12  ;;  %v1221_v17 = vrot.slane %v1070_v12, %v2876_v7 }
 0x1e8   : > { %v1364_v58 = vrot.slane %v1350_v35, %v2876_v7  ;;  %v1365_v19 = vcombine.high %v1357_v11, %v1357_v11  ;;  %v1858_v50 = vunpack.c.l.b16 %v2181_v36  ;;  %v1902_v18 = vrot.slane %v1857_v43, 6 }
 0x1e9   : > { %v2131_v20 = vrot.slane %v1357_v11, 9  ;;  %v1068_v29 = vmax.f32 %v1020_v63, 0.0  ;;  %v1901_v28 = vsel %vm1880_vm15, %v1900_v39, %v1855_v34  ;;  %v1228_v42 = vrot.slane %v1214_v51, %v2876_v7 }
 0x1ea   : > { %v1229_v56 = vcombine.high %v1221_v17, %v1221_v17  ;;  %v2115_v30 = vrot.slane %v1221_v17, 9  ;;  %v1932_v55 = vrot.slane %v2949_v41, 5  ;;  %v1366_v6 = vcombine.high %v1364_v58, %v1364_v58 }
 0x1eb   : > { %v2132_v60 = vrot.slane %v1365_v19, 9  ;;  %v2133_v21 = vrot.slane %v1364_v58, 9  ;;  %v2960_v59 = vsel %vm1883_vm0, %v1930_v8, %v1929_v2  ;;  %v1230_v31 = vcombine.high %v1228_v42, %v1228_v42 }
 0x1ec   : > { %v2116_v33 = vrot.slane %v1229_v56, 9  ;;  %v2117_v1 = vrot.slane %v1228_v42, 9  ;;  %v1903_v3 = vsel %vm1883_vm0, %v1902_v18, %v1901_v28  ;;  %v1904_v27 = vrot.slane %v1858_v50, 5 }
 0x1ed   : > { %v1683_v38 = vmax.f32 %v1357_v11, %v2131_v20  ;;  %v1180_v44 = vcombine.high %v1068_v29, %v1068_v29  ;;  %v1667_v46 = vmax.f32 %v1221_v17, %v2115_v30  ;;  %v2134_v0 = vrot.slane %v1366_v6, 9 }
 0x1ee   : > { %v1684_v45 = vmax.f32 %v1365_v19, %v2132_v60  ;;  %v1187_v22 = vrot.slane %v1068_v29, %v2876_v7  ;;  %v2118_v24 = vrot.slane %v1230_v31, 9  ;;  %v1685_v9 = vmax.f32 %v1364_v58, %v2133_v21 }
 0x1ef   : > { %v1194_v32 = vrot.slane %v1180_v44, %v2876_v7  ;;  %v1076_v5 = vmax.f32 %v1052_v10, 0.0  ;;  %v1668_v14 = vmax.f32 %v1229_v56, %v2116_v33  ;;  %v1669_v15 = vmax.f32 %v1228_v42, %v2117_v1 }
 0x1f0   : > { %v1195_v26 = vcombine.high %v1187_v22, %v1187_v22  ;;  %v2083_v40 = vrot.slane %v1187_v22, 9  ;;  %v1686_v47 = vmax.f32 %v1366_v6, %v2134_v0  ;;  %v1905_v54 = vsel %vm1886_vm1, %v1904_v27, %v1903_v3 }
 0x1f1   : > { %v1196_v37 = vcombine.high %v1194_v32, %v1194_v32  ;;  %v2085_v52 = vrot.slane %v1194_v32, 9  ;;  %v1316_v4 = vcombine.high %v1076_v5, %v1076_v5  ;;  %v1323_v23 = vrot.slane %v1076_v5, %v2876_v7 }
 0x1f2   : > { %v2084_v57 = vrot.slane %v1195_v26, 9  ;;  %v1539_v48 = vmax.f32 %v1187_v22, %v2083_v40  ;;  %v1670_v25 = vmax.f32 %v1230_v31, %v2118_v24 }
 0x1f3   : > { %v2086_v61 = vrot.slane %v1196_v37, 9  ;;  %v1541_v62 = vmax.f32 %v1194_v32, %v2085_v52  ;;  %v1330_v53 = vrot.slane %v1316_v4, %v2876_v7  ;;  %v1331_v49 = vcombine.high %v1323_v23, %v1323_v23 }
 0x1f4   : > { %v1540_v16 = vmax.f32 %v1195_v26, %v2084_v57  ;;  %v1699_v10 = vmax.f32 %v1539_v48, %v1667_v46  ;;  %v2099_v36 = vrot.slane %v1323_v23, 9 }
 0x1f5   : > { %v1542_v13 = vmax.f32 %v1196_v37, %v2086_v61  ;;  %v1701_v43 = vmax.f32 %v1541_v62, %v1669_v15  ;;  %v1332_v35 = vcombine.high %v1330_v53, %v1330_v53  ;;  %v2100_v12 = vrot.slane %v1331_v49, 9 }
 0x1f6   : > { %v1700_v11 = vmax.f32 %v1540_v16, %v1668_v14  ;;  %v2182_v63 = vpack.c.bf16 %v1699_v10, %v1699_v10  ;;  %v2101_v34 = vrot.slane %v1330_v53, 9  ;;  %v1555_v39 = vmax.f32 %v1323_v23, %v2099_v36 }
 0x1f7   : > { %v1702_v2 = vmax.f32 %v1542_v13, %v1670_v25  ;;  %v2184_v8 = vpack.c.bf16 %v1701_v43, %v1701_v43  ;;  %v2102_v51 = vrot.slane %v1332_v35, 9  ;;  %v1556_v17 = vmax.f32 %v1331_v49, %v2100_v12 }
 0x1f8   : > { %v2183_v58 = vpack.c.bf16 %v1700_v11, %v1700_v11  ;;  %v1859_v19 = vunpack.c.l.b16 %v2182_v63  ;;  %v1557_v7 = vmax.f32 %v1330_v53, %v2101_v34  ;;  %v1715_v50 = vmax.f32 %v1555_v39, %v1683_v38 }
 0x1f9   : > { %v2185_v18 = vpack.c.bf16 %v1702_v2, %v1702_v2  ;;  %v1861_v20 = vunpack.c.l.b16 %v2184_v8  ;;  %v1558_v29 = vmax.f32 %v1332_v35, %v2102_v51  ;;  %v1716_v28 = vmax.f32 %v1556_v17, %v1684_v45 }
 0x1fa   : > { %v1860_v42 = vunpack.c.l.b16 %v2183_v58  ;;  %v1906_v56 = vrot.slane %v1859_v19, 4  ;;  %v1717_v30 = vmax.f32 %v1557_v7, %v1685_v9  ;;  %v2198_v6 = vpack.c.bf16 %v1715_v50, %v1715_v50 }
 0x1fb   : > { %v1862_v60 = vunpack.c.l.b16 %v2185_v18  ;;  %v1910_v21 = vrot.slane %v1861_v20, 2  ;;  %v1718_v31 = vmax.f32 %v1558_v29, %v1686_v47  ;;  %v2199_v33 = vpack.c.bf16 %v1716_v28, %v1716_v28 }
 0x1fc   : > { %v1907_v1 = vsel %vm1889_vm2, %v1906_v56, %v1905_v54  ;;  %v1908_v3 = vrot.slane %v1860_v42, 3  ;;  %v2200_v27 = vpack.c.bf16 %v1717_v30, %v1717_v30  ;;  %v1875_v44 = vunpack.c.l.b16 %v2198_v6 }
 0x1fd   : > { %v1912_v46 = vrot.slane %v1862_v60, 1  ;;  %v2201_v0 = vpack.c.bf16 %v1718_v31, %v1718_v31  ;;  %v1876_v38 = vunpack.c.l.b16 %v2199_v33  ;;  %v1933_v45 = vsel %vm1886_vm1, %v1932_v55, %v2960_v59 }
 0x1fe   : > { %v1909_v22 = vsel %vm1892_vm3, %v1908_v3, %v1907_v1  ;;  %v1877_v24 = vunpack.c.l.b16 %v2200_v27  ;;  %v1934_v9 = vrot.slane %v1875_v44, 4 }
 0x1ff   : > { %v1911_v32 = vsel %vm1895_vm4, %v1910_v21, %v1909_v22  ;;  %v1878_v5 = vunpack.c.l.b16 %v2201_v0  ;;  %v1936_v14 = vrot.slane %v1876_v38, 3 }
 0x200   : > { %v1913_v15 = vsel %vm1898_vm5, %v1912_v46, %v1911_v32  ;;  %v1935_v26 = vsel %vm1889_vm2, %v1934_v9, %v1933_v45  ;;  %v1938_v40 = vrot.slane %v1877_v24, 2 }
 0x201   : > { %v1943_v37 = vpack.c.b16 %v1913_v15, %v1913_v15  ;;  %v1937_v52 = vsel %vm1892_vm3, %v1936_v14, %v1935_v26  ;;  %v1940_v41 = vrot.slane %v1878_v5, 1 }
 0x202   : > { %v1939_v55 = vsel %vm1895_vm4, %v1938_v40, %v1937_v52 }
 0x203   : > { %1952 = vst.msk [vmem:[%s2923_s13 + $0x4] sm:$0xf] %vm1950_vm6, %v1943_v37  ;;  %v1941_v59 = vsel %vm1898_vm5, %v1940_v41, %v1939_v55 }
 0x204   : > { %v1945_v4 = vpack.c.b16 %v1941_v59, %v1941_v59 }
 0x206   : > { %1954 = vst.msk [vmem:[%s2923_s13 + $0xc] sm:$0xf] %vm1950_vm6, %v1945_v4 }
 0x207 PF: > { %s13_s12 = sadd.s32 1, %s2286_s12  }
 0x208   : > { %p10_p4 = scmp.ge.s32.totalorder %s13_s12, 6  }
 0x20a   :  { %12 = sbr.rel (!%p10_p4) target bundleno = 1 (0x1), region = 62 }

// kernel: interpolation_model.8
= control target key start
LH: loop header
LB: loop body
LE: loop exit
PB: predicated region body
PF: predicated region fallthrough
CT: control target
= control target key end

     0   :  { %s1979_s12 = smov 0   ;;  %s2586_s0 = inlined_call_operand.vmem [shape: bf16[4,4,6,128], index: 0, kind: input, shape index: {}]   ;;  %s2587_s1 = inlined_call_operand.vmem [shape: bf16[1152,256], index: 1, kind: input, shape index: {}]   ;;  %s2588_s2 = inlined_call_operand.vmem [shape: f32[1,256], index: 2, kind: input, shape index: {}]   ;;  %s2589_s3 = inlined_call_operand.vmem [shape: bf16[4,2,4,256], index: 3, kind: output, shape index: {}]  }
   0x1 LB: > { %s1553_s13 = sadd.s32 4294967295, %s1955_s12   ;;  %p1557_p0 = scmp.ge.s32.totalorder %s1955_s12, 1  ;;  %s1955_s12 = sphi %s1979_s12, %s13_s12  }
   0x2   : > { %p137_p1 = scmp.lt.s32.totalorder %s1955_s12, 5 }
   0x4   : > { %p138_p2 = pnand %p1557_p0, %p137_p1 }
   0x5   : > { %p2082_p3 = scmp.lt.s32.totalorder (!%p138_p2), %s1553_s13, 3 }
   0x6   : > { %141 = sbr.rel (%p138_p2) target bundleno = 375 (0x177), region = 32 }
   0xb   : > { %v1730_v0 = vld [vmem:[%s2587_s1 + $0x74] ss:$8 sps:$4 sm:$0xff]   ;;  %v1732_v1 = vld [vmem:[%s2587_s1 + $0x70] ss:$8 sps:$4 sm:$0xff]   ;;  %v1736_v4 = vld [vmem:[%s2587_s1 + $0x64] ss:$8 sps:$4 sm:$0xff]   ;;  %v181_v37 = vlaneseq }
   0xc   : > { %1255 = vmatprep.subr.bf16.mxu0 %v1730_v0  ;;  %v1733_v2 = vld [vmem:[%s2587_s1 + $0x174] ss:$8 sps:$4 sm:$0xff]   ;;  %v1735_v3 = vld [vmem:[%s2587_s1 + $0x170] ss:$8 sps:$4 sm:$0xff]   ;;  %v1738_v5 = vld [vmem:[%s2587_s1 + $0x60] ss:$8 sps:$4 sm:$0xff]  }
   0xd   : > { %1256 = vmatpush1.bf16.msra.mxu0 %v1732_v1  ;;  %1296 = vmatprep.subr.bf16.mxu1 %v1733_v2  ;;  %v1739_v6 = vld [vmem:[%s2587_s1 + $0x164] ss:$8 sps:$4 sm:$0xff]   ;;  %v1741_v7 = vld [vmem:[%s2587_s1 + $0x160] ss:$8 sps:$4 sm:$0xff]   ;;  %v1742_v8 = vld [vmem:[%s2587_s1 + $0x54] ss:$8 sps:$4 sm:$0xff]  }
   0xe   : > { %1297 = vmatpush1.bf16.msra.mxu1 %v1735_v3  ;;  %1257 = vmatprep.subr.bf16.mxu0 %v1736_v4  ;;  %v1744_v9 = vld [vmem:[%s2587_s1 + $0x50] ss:$8 sps:$4 sm:$0xff]   ;;  %v1745_v10 = vld [vmem:[%s2587_s1 + $0x154] ss:$8 sps:$4 sm:$0xff]   ;;  %v1748_v11 = vld [vmem:[%s2587_s1 + $0x44] ss:$8 sps:$4 sm:$0xff]  }
   0xf   : > { %1298 = vmatprep.subr.bf16.mxu1 %v1739_v6  ;;  %v1747_v12 = vld [vmem:[%s2587_s1 + $0x150] ss:$8 sps:$4 sm:$0xff]   ;;  %v1751_v13 = vld [vmem:[%s2587_s1 + $0x144] ss:$8 sps:$4 sm:$0xff]   ;;  %v1750_v14 = vld [vmem:[%s2587_s1 + $0x40] ss:$8 sps:$4 sm:$0xff]  }
  0x10   : > { %v1754_v15 = vld [vmem:[%s2587_s1 + $0x34] ss:$8 sps:$4 sm:$0xff]   ;;  %v1753_v16 = vld [vmem:[%s2587_s1 + $0x140] ss:$8 sps:$4 sm:$0xff]   ;;  %v1756_v18 = vld [vmem:[%s2587_s1 + $0x30] ss:$8 sps:$4 sm:$0xff]  }
  0x11   : > { %1258 = vmatpush1.bf16.msra.mxu0 %v1738_v5  ;;  %v1757_v17 = vld [vmem:[%s2587_s1 + $0x134] ss:$8 sps:$4 sm:$0xff]   ;;  %v1760_v19 = vld [vmem:[%s2587_s1 + $0x24] ss:$8 sps:$4 sm:$0xff]   ;;  %v1759_v20 = vld [vmem:[%s2587_s1 + $0x130] ss:$8 sps:$4 sm:$0xff]  }
  0x12   : > { %1259 = vmatprep.subr.bf16.mxu0 %v1742_v8  ;;  %1299 = vmatpush1.bf16.msra.mxu1 %v1741_v7  ;;  %v1763_v21 = vld [vmem:[%s2587_s1 + $0x124] ss:$8 sps:$4 sm:$0xff]   ;;  %v1762_v22 = vld [vmem:[%s2587_s1 + $0x20] ss:$8 sps:$4 sm:$0xff]   ;;  %v1766_v23 = vld [vmem:[%s2587_s1 + $0x14] ss:$8 sps:$4 sm:$0xff]  }
  0x13   : > { %1300 = vmatprep.subr.bf16.mxu1 %v1745_v10  ;;  %v1765_v24 = vld [vmem:[%s2587_s1 + $0x120] ss:$8 sps:$4 sm:$0xff]   ;;  %v1769_v25 = vld [vmem:[%s2587_s1 + $0x114] ss:$8 sps:$4 sm:$0xff]   ;;  %v1768_v26 = vld [vmem:[%s2587_s1 + $0x10] ss:$8 sps:$4 sm:$0xff]  }
  0x14   : > { %v1772_v27 = vld [vmem:[%s2587_s1 + $0x4] ss:$8 sps:$4 sm:$0xff]   ;;  %v1771_v28 = vld [vmem:[%s2587_s1 + $0x110] ss:$8 sps:$4 sm:$0xff]   ;;  %v1774_v30 = vld [vmem:[%s2587_s1] ss:$8 sps:$4 sm:$0xff]  }
  0x15   : > { %1260 = vmatpush1.bf16.msra.mxu0 %v1744_v9  ;;  %v1775_v29 = vld [vmem:[%s2587_s1 + $0x104] ss:$8 sps:$4 sm:$0xff]   ;;  %v1778_v31 = vld [vmem:[%s2587_s1 + $0xf4] ss:$8 sps:$4 sm:$0xff]   ;;  %v1777_v32 = vld [vmem:[%s2587_s1 + $0x100] ss:$8 sps:$4 sm:$0xff]  }
  0x16   : > { %1261 = vmatprep.subr.bf16.mxu0 %v1748_v11  ;;  %1301 = vmatpush1.bf16.msra.mxu1 %v1747_v12  ;;  %v1781_v33 = vld [vmem:[%s2587_s1 + $0x1f4] ss:$8 sps:$4 sm:$0xff]   ;;  %v1780_v34 = vld [vmem:[%s2587_s1 + $0xf0] ss:$8 sps:$4 sm:$0xff]   ;;  %v1957_v35 = vmov 1983009808  }
  0x17   : > { %1302 = vmatprep.subr.bf16.mxu1 %v1751_v13  ;;  %v179_v36 = vunpack.c.l.s4 %v1957_v35  ;;  %v1784_v38 = vld [vmem:[%s2587_s1 + $0xe4] ss:$8 sps:$4 sm:$0xff]   ;;  %s2604_s13 = smov (!%p2082_p3, %s1553_s13), 3  ;;  %v1783_v39 = vld [vmem:[%s2587_s1 + $0x1f0] ss:$8 sps:$4 sm:$0xff]   ;;  %v2116_v43 = vshrl.u32 %v181_v37, 7 }
  0x18   : > { %v1787_v40 = vld [vmem:[%s2587_s1 + $0x1e4] ss:$8 sps:$4 sm:$0xff]   ;;  %v1786_v41 = vld [vmem:[%s2587_s1 + $0xe0] ss:$8 sps:$4 sm:$0xff]   ;;  %v1790_v44 = vld [vmem:[%s2587_s1 + $0xd4] ss:$8 sps:$4 sm:$0xff]  }
  0x19   : > { %1262 = vmatpush1.bf16.msra.mxu0 %v1750_v14  ;;  %v180_v42 = vunpack.c.0.s8 %v179_v36  ;;  %s1718_s20 = sshll.u32 %s2604_s13, 4  ;;  %v1789_v45 = vld [vmem:[%s2587_s1 + $0x1e0] ss:$8 sps:$4 sm:$0xff]   ;;  %v1793_v46 = vld [vmem:[%s2587_s1 + $0x1d4] ss:$8 sps:$4 sm:$0xff]   ;;  %vm229_vm1 = vcmask 1040384  }
  0x1a   : > { %1263 = vmatprep.subr.bf16.mxu0 %v1754_v15  ;;  %1303 = vmatpush1.bf16.msra.mxu1 %v1753_v16  ;;  %vm194_vm0 = vsmask.f32 1280  ;;  %v1792_v47 = vld [vmem:[%s2587_s1 + $0xd0] ss:$8 sps:$4 sm:$0xff]   ;;  %s2137_s4 = scalar_lea.vmem %s2586_s0, %s1718_s20  ;;  %v1796_v50 = vld [vmem:[%s2587_s1 + $0xc4] ss:$8 sps:$4 sm:$0xff]  }
  0x1b   : > { %1304 = vmatprep.subr.bf16.mxu1 %v1757_v17  ;;  %v1795_v48 = vld [vmem:[%s2587_s1 + $0x1d0] ss:$8 sps:$4 sm:$0xff]   ;;  %v2140_v49 = vsub.s32 %v180_v42, %v2116_v43  ;;  %vm230_vm2 = vcmask 1042434   ;;  %vm232_vm3 = vcmask 1044484   ;;  %v1798_v51 = vld [vmem:[%s2587_s1 + $0xc0] ss:$8 sps:$4 sm:$0xff]  }
  0x1c   : > { %vm195_vm4 = vsmask.f32 3336  ;;  %v1799_v52 = vld [vmem:[%s2587_s1 + $0x1c4] ss:$8 sps:$4 sm:$0xff]   ;;  %v2152_v53 = vld [vmem:[%s2137_s4] sm:$0x7]  ;;  %vm2224_vm9 = vmor %vm229_vm1, %vm230_vm2 }
  0x1d   : > { %1264 = vmatpush1.bf16.msra.mxu0 %v1756_v18  ;;  %v2155_v54 = vld [vmem:[%s2137_s4 + $0x4] sm:$0x7]  ;;  %v1801_v55 = vld [vmem:[%s2587_s1 + $0x1c0] ss:$8 sps:$4 sm:$0xff]   ;;  %v1802_v56 = vld [vmem:[%s2587_s1 + $0xb4] ss:$8 sps:$4 sm:$0xff]   ;;  %v2168_v58 = vrot.slane %v2152_v53, %v2140_v49 }
  0x1e   : > { %1265 = vmatprep.subr.bf16.mxu0 %v1760_v19  ;;  %1305 = vmatpush1.bf16.msra.mxu1 %v1759_v20  ;;  %v2164_v57 = vld [vmem:[%s2137_s4 + $0x8] sm:$0x7]  ;;  %v2172_v59 = vrot.slane %v2155_v54, %v2140_v49  ;;  %vm2175_vm5 = vmor %vm194_vm0, %vm195_vm4  ;;  %vm197_vm6 = vsmask.f32 5392  ;;  %vm199_vm7 = vsmask.f32 7448 }
  0x1f   : > { %1306 = vmatprep.subr.bf16.mxu1 %v1763_v21  ;;  %v2181_v61 = vrot.slane %v2164_v57, %v2140_v49  ;;  %v325_v62 = vcombine.low %v2155_v54, %v2164_v57  ;;  %v1804_v63 = vld [vmem:[%s2587_s1 + $0xb0] ss:$8 sps:$4 sm:$0xff]   ;;  %v1805_v0 = vld [vmem:[%s2587_s1 + $0x1b4] ss:$8 sps:$4 sm:$0xff]   ;;  %v2193_v1 = vcombine.high %v2168_v58, %v2168_v58  ;;  %v202_v3 = vshrl.u32 %v2168_v58, 16  ;;  %vm2212_vm8 = vmor %vm2175_vm5, %vm197_vm6  ;;  %s1719_s11 = sshll.u32 %s2604_s13, 3 }
  0x20   : > { %v2197_v2 = vcombine.high %v2172_v59, %v2172_v59  ;;  %v205_v4 = vshll.u32 %v2168_v58, 16  ;;  %v216_v5 = vshrl.u32 %v2172_v59, 16  ;;  %v219_v6 = vshll.u32 %v2172_v59, 16  ;;  %v1807_v9 = vld [vmem:[%s2587_s1 + $0x1b0] ss:$8 sps:$4 sm:$0xff]   ;;  %vm2234_vm11 = vmor %vm2212_vm8, %vm199_vm7  ;;  %s170_s16 = scalar_lea.vmem %s2589_s3, %s1719_s11 }
  0x21   : > { %1266 = vmatpush1.bf16.msra.mxu0 %v1762_v22  ;;  %v252_v7 = vcombine.high %v2181_v61, %v2181_v61  ;;  %v254_v8 = vshrl.u32 %v2181_v61, 16  ;;  %v204_v11 = vrot.slane %v202_v3, 6  ;;  %v211_v13 = vshll.u32 %v2193_v1, 16  ;;  %v1808_v15 = vld [vmem:[%s2587_s1 + $0xa4] ss:$8 sps:$4 sm:$0xff]   ;;  %vm2248_vm12 = vmor %vm2224_vm9, %vm232_vm3 }
  0x22   : > { %1267 = vmatprep.subr.bf16.mxu0 %v1766_v23  ;;  %1307 = vmatpush1.bf16.msra.mxu1 %v1765_v24  ;;  %v207_v12 = vrot.slane %v205_v4, 7  ;;  %v225_v14 = vshll.u32 %v2197_v2, 16  ;;  %v218_v16 = vrot.slane %v216_v5, 6  ;;  %v221_v17 = vrot.slane %v219_v6, 7  ;;  %v1811_v24 = vld [vmem:[%s2587_s1 + $0x1a4] ss:$8 sps:$4 sm:$0xff]  }
  0x23   : > { %1308 = vmatprep.subr.bf16.mxu1 %v1769_v25  ;;  %v256_v18 = vrot.slane %v254_v8, 6  ;;  %v257_v19 = vshll.u32 %v2181_v61, 16  ;;  %v213_v22 = vrot.slane %v211_v13, 7  ;;  %v263_v23 = vshll.u32 %v252_v7, 16  ;;  %v1814_v35 = vld [vmem:[%s2587_s1 + $0x94] ss:$8 sps:$4 sm:$0xff]  }
  0x24   : > { %v208_v21 = vor.u32 %v207_v12, %v204_v11  ;;  %vm234_vm10 = vcmask 1046534   ;;  %v1563_v42 = vrot.slane %v2172_v59, 9  ;;  %v1819_v59 = vld [vmem:[%s2587_s1 + $0x190] ss:$8 sps:$4 sm:$0xff]   ;;  %v1829_v5 = vld [vmem:[%s2587_s1 + $0x274] ss:$8 sps:$4 sm:$0xff]  }
  0x25   : > { %1268 = vmatpush1.bf16.msra.mxu0 %v1768_v26  ;;  %v222_v26 = vor.u32 %v221_v17, %v218_v16  ;;  %vm2270_vm13 = vmor %vm2248_vm12, %vm234_vm10  ;;  %v1827_v8 = vld [vmem:[%s2587_s1 + $0x270] ss:$8 sps:$4 sm:$0xff]   ;;  %v1836_v11 = vld [vmem:[%s2587_s1 + $0x264] ss:$8 sps:$4 sm:$0xff]  }
  0x26   : > { %1269 = vmatprep.subr.bf16.mxu0 %v1772_v27  ;;  %1309 = vmatpush1.bf16.msra.mxu1 %v1771_v28  ;;  %v227_v27 = vrot.slane %v225_v14, 7  ;;  %v259_v28 = vrot.slane %v257_v19, 7  ;;  %v1831_v12 = vld [vmem:[%s2587_s1 + $0x370] ss:$8 sps:$4 sm:$0xff]   ;;  %v1839_v13 = vld [vmem:[%s2587_s1 + $0x364] ss:$8 sps:$4 sm:$0xff]  }
  0x27   : > { %1310 = vmatprep.subr.bf16.mxu1 %v1775_v29  ;;  %v332_v29 = vrot.slane %v325_v62, %v2140_v49  ;;  %v223_v36 = vrot.slane %v222_v26, 2  ;;  %v1834_v14 = vld [vmem:[%s2587_s1 + $0x260] ss:$8 sps:$4 sm:$0xff]   ;;  %v1845_v17 = vld [vmem:[%s2587_s1 + $0x354] ss:$8 sps:$4 sm:$0xff]  }
  0x28   : > { %v260_v37 = vor.u32 %v259_v28, %v256_v18  ;;  %v1837_v16 = vld [vmem:[%s2587_s1 + $0x360] ss:$8 sps:$4 sm:$0xff]   ;;  %v1840_v18 = vld [vmem:[%s2587_s1 + $0x250] ss:$8 sps:$4 sm:$0xff]   ;;  %v1848_v19 = vld [vmem:[%s2587_s1 + $0x244] ss:$8 sps:$4 sm:$0xff]  }
  0x29   : > { %1270 = vmatpush1.bf16.msra.mxu0 %v1774_v30  ;;  %v1810_v30 = vld [vmem:[%s2587_s1 + $0xa0] ss:$8 sps:$4 sm:$0xff]   ;;  %1328 = vmatprep.mubr.bf16.mxu1 %v332_v29  ;;  %v1843_v20 = vld [vmem:[%s2587_s1 + $0x350] ss:$8 sps:$4 sm:$0xff]   ;;  %v1857_v26 = vld [vmem:[%s2587_s1 + $0x334] ss:$8 sps:$4 sm:$0xff]  }
  0x2a   : > { %1271 = vmatprep.subr.bf16.mxu0 %v1778_v31  ;;  %1311 = vmatpush1.bf16.msra.mxu1 %v1777_v32  ;;  %v1813_v31 = vld [vmem:[%s2587_s1 + $0x1a0] ss:$8 sps:$4 sm:$0xff]   ;;  %v209_v32 = vrot.slane %v208_v21, 2  ;;  %v1851_v21 = vld [vmem:[%s2587_s1 + $0x344] ss:$8 sps:$4 sm:$0xff]  }
  0x2b   : > { %1312 = vmatprep.subr.bf16.mxu1 %v1781_v33  ;;  %v265_v33 = vrot.slane %v263_v23, 7  ;;  %v1854_v23 = vld [vmem:[%s2587_s1 + $0x234] ss:$8 sps:$4 sm:$0xff]   ;;  %v1860_v28 = vld [vmem:[%s2587_s1 + $0x224] ss:$8 sps:$4 sm:$0xff]  }
  0x2c   : > { %v1855_v29 = vld [vmem:[%s2587_s1 + $0x330] ss:$8 sps:$4 sm:$0xff]  }
  0x2d   : > { %1272 = vmatpush2.bf16.msra.mxu0 %v1780_v34  ;;  %v1869_v34 = vld [vmem:[%s2587_s1 + $0x314] ss:$8 sps:$4 sm:$0xff]  }
  0x2e   : > { %1273 = vmatprep.subr.bf16.mxu0 %v1784_v38  ;;  %1313 = vmatpush2.bf16.msra.mxu1 %v1783_v39  ;;  %v1562_v38 = vrot.slane %v2168_v58, 9  ;;  %v238_v39 = vrot.slane %v2193_v1, 7  ;;  %v298_v1 = vcombine.low %v2152_v53, %v2155_v54  ;;  %v1825_v53 = vld [vmem:[%s2587_s1 + $0x180] ss:$8 sps:$4 sm:$0xff]  }
  0x2f   : > { %1314 = vmatprep.subr.bf16.mxu1 %v1787_v40  ;;  %v1817_v40 = vld [vmem:[%s2587_s1 + $0x194] ss:$8 sps:$4 sm:$0xff]  }
  0x30   : > { %v239_v62 = vsel %vm2270_vm13, %v1562_v38, %v238_v39  ;;  %v305_v54 = vrot.slane %v298_v1, %v2140_v49  ;;  %v1875_v38 = vld [vmem:[%s2587_s1 + $0x304] ss:$8 sps:$4 sm:$0xff]  }
  0x31   : > { %1274 = vmatpush2.bf16.msra.mxu0 %v1786_v41  ;;  %v214_v41 = vsel %vm2234_vm11, %v209_v32, %v213_v22  ;;  %v1846_v22 = vld [vmem:[%s2587_s1 + $0x240] ss:$8 sps:$4 sm:$0xff]   ;;  %v1866_v32 = vld [vmem:[%s2587_s1 + $0x214] ss:$8 sps:$4 sm:$0xff]   ;;  %v175_v39 = vld [vmem:[%s2137_s4 + $0xc] sm:$0x7] }
  0x32   : > { %1275 = vmatprep.subr.bf16.mxu0 %v1790_v44  ;;  %1315 = vmatpush2.bf16.msra.mxu1 %v1789_v45  ;;  %v242_v44 = vrot.slane %v2197_v2, 7  ;;  %v1564_v45 = vrot.slane %v2181_v61, 9  ;;  %v1822_v2 = vld [vmem:[%s2587_s1 + $0x80] ss:$8 sps:$4 sm:$0xff]  }
  0x33   : > { %1316 = vmatprep.subr.bf16.mxu1 %v1793_v46  ;;  %v228_v46 = vsel %vm2234_vm11, %v223_v36, %v227_v27  ;;  %v1852_v27 = vld [vmem:[%s2587_s1 + $0x230] ss:$8 sps:$4 sm:$0xff]   ;;  %v1872_v36 = vld [vmem:[%s2587_s1 + $0x204] ss:$8 sps:$4 sm:$0xff]  }
  0x35   : > { %1276 = vmatpush2.bf16.msra.mxu0 %v1792_v47  ;;  %v261_v47 = vrot.slane %v260_v37, 2  ;;  %v1867_v37 = vld [vmem:[%s2587_s1 + $0x310] ss:$8 sps:$4 sm:$0xff]  }
  0x36   : > { %1277 = vmatprep.subr.bf16.mxu0 %v1796_v50  ;;  %1317 = vmatpush2.bf16.msra.mxu1 %v1795_v48  ;;  %v269_v50 = vrot.slane %v252_v7, 7  ;;  %v1833_v7 = vld [vmem:[%s2587_s1 + $0x374] ss:$8 sps:$4 sm:$0xff]  }
  0x37   : > { %1318 = vmatprep.subr.bf16.mxu1 %v1799_v52  ;;  %v307_v52 = vcombine.low %v214_v41, %v228_v46  ;;  %v278_v41 = vrot.slane %v175_v39, %v2140_v49  ;;  %v1890_v48 = vld [vmem:[%s2587_s1 + $0x2d4] ss:$8 sps:$4 sm:$0xff]  }
  0x38   : > { %v2286_v58 = vsel %vm2270_vm13, %v1564_v45, %v269_v50  ;;  %v1878_v45 = vld [vmem:[%s2587_s1 + $0x2f4] ss:$8 sps:$4 sm:$0xff]  }
  0x39   : > { %1278 = vmatpush2.bf16.msra.mxu0 %v1798_v51  ;;  %v1816_v51 = vld [vmem:[%s2587_s1 + $0x90] ss:$8 sps:$4 sm:$0xff]   ;;  %v314_v60 = vrot.slane %v307_v52, %v2140_v49  ;;  %v281_v50 = vshrl.u32 %v278_v41, 16  ;;  %v1881_v52 = vld [vmem:[%s2587_s1 + $0x3f4] ss:$8 sps:$4 sm:$0xff]  }
  0x3a   : > { %1279 = vmatprep.subr.bf16.mxu0 %v1802_v56  ;;  %1319 = vmatpush2.bf16.msra.mxu1 %v1801_v55  ;;  %v1820_v55 = vld [vmem:[%s2587_s1 + $0x84] ss:$8 sps:$4 sm:$0xff]   ;;  %v2282_v56 = vsel %vm2234_vm11, %v261_v47, %v265_v33  ;;  %v1861_v33 = vld [vmem:[%s2587_s1 + $0x320] ss:$8 sps:$4 sm:$0xff]   ;;  %v1565_v47 = vrot.slane %v278_v41, 9 }
  0x3b   : > { %1320 = vmatprep.subr.bf16.mxu1 %v1805_v0  ;;  %v334_v61 = vcombine.low %v228_v46, %v2282_v56  ;;  %v1823_v0 = vld [vmem:[%s2587_s1 + $0x184] ss:$8 sps:$4 sm:$0xff]   ;;  %1287 = vmatprep.mubr.bf16.mxu0 %v314_v60  ;;  %v279_v46 = vcombine.high %v278_v41, %v278_v41  ;;  %v283_v60 = vrot.slane %v281_v50, 6  ;;  %v1946_v50 = vld [vmem:[%s2587_s1 + $0x400] ss:$8 sps:$4 sm:$0xff]  }
  0x3d   : > { %1280 = vmatpush2.bf16.msra.mxu0 %v1804_v63  ;;  %v243_v63 = vsel %vm2270_vm13, %v1563_v42, %v242_v44  ;;  %v2306_v3 = vrot.slane %v334_v61, %v2140_v49  ;;  %v352_v42 = vcombine.low %v2164_v57, %v175_v39  ;;  %v1873_v44 = vld [vmem:[%s2587_s1 + $0x300] ss:$8 sps:$4 sm:$0xff]  }
  0x3e   : > { %1281 = vmatprep.subr.bf16.mxu0 %v1808_v15  ;;  %1321 = vmatpush2.bf16.msra.mxu1 %v1807_v9  ;;  %v343_v4 = vcombine.low %v243_v63, %v2286_v58  ;;  %v316_v6 = vcombine.low %v239_v62, %v243_v63  ;;  %v1842_v15 = vld [vmem:[%s2587_s1 + $0x254] ss:$8 sps:$4 sm:$0xff]   ;;  %v290_v62 = vshll.u32 %v279_v46, 16  ;;  %v1884_v63 = vld [vmem:[%s2587_s1 + $0x2e4] ss:$8 sps:$4 sm:$0xff]  }
  0x3f   : > { %1322 = vmatprep.subr.bf16.mxu1 %v1811_v24  ;;  %v1849_v24 = vld [vmem:[%s2587_s1 + $0x340] ss:$8 sps:$4 sm:$0xff]   ;;  %v2421_v57 = vrot.slane %v352_v42, %v2140_v49  ;;  %v1942_v42 = vld [vmem:[%s2587_s1 + $0x424] ss:$8 sps:$4 sm:$0xff]  }
  0x40   : > { %v350_v9 = vrot.slane %v343_v4, %v2140_v49  ;;  %v323_v10 = vrot.slane %v316_v6, %v2140_v49  ;;  %v292_v4 = vrot.slane %v290_v62, 7  ;;  %v1934_v39 = vld [vmem:[%s2587_s1 + $0x440] ss:$8 sps:$4 sm:$0xff]  }
  0x41   : > { %1282 = vmatpush2.bf16.msra.mxu0 %v1810_v30  ;;  %v1863_v30 = vld [vmem:[%s2587_s1 + $0x324] ss:$8 sps:$4 sm:$0xff]  }
  0x42   : > { %1283 = vmatprep.subr.bf16.mxu0 %v1814_v35  ;;  %1323 = vmatpush2.bf16.msra.mxu1 %v1813_v31  ;;  %v1858_v31 = vld [vmem:[%s2587_s1 + $0x220] ss:$8 sps:$4 sm:$0xff]   ;;  %v1864_v35 = vld [vmem:[%s2587_s1 + $0x210] ss:$8 sps:$4 sm:$0xff]  }
  0x43   : > { %1324 = vmatprep.subr.bf16.mxu1 %v1817_v40  ;;  %v1870_v40 = vld [vmem:[%s2587_s1 + $0x200] ss:$8 sps:$4 sm:$0xff]  }
  0x45   : > { %1284 = vmatpush2.bf16.msra.mxu0 %v1816_v51  ;;  %v284_v51 = vshll.u32 %v278_v41, 16  ;;  %v1937_v41 = vld [vmem:[%s2587_s1 + $0x430] ss:$8 sps:$4 sm:$0xff]  }
  0x46   : > { %1285 = vmatprep.subr.bf16.mxu0 %v1820_v55  ;;  %1325 = vmatpush2.bf16.msra.mxu1 %v1819_v59  ;;  %v1876_v55 = vld [vmem:[%s2587_s1 + $0x2f0] ss:$8 sps:$4 sm:$0xff]   ;;  %v296_v59 = vrot.slane %v279_v46, 7 }
  0x47   : > { %1326 = vmatprep.subr.bf16.mxu1 %v1823_v0  ;;  %v286_v61 = vrot.slane %v284_v51, 7  ;;  %v1879_v0 = vld [vmem:[%s2587_s1 + $0x3f0] ss:$8 sps:$4 sm:$0xff]   ;;  %v527_v51 = vsub.s32 0, %v2116_v43 }
  0x48   : > { %v297_v1 = vsel %vm2270_vm13, %v1565_v47, %v296_v59  ;;  %v1943_v46 = vld [vmem:[%s2587_s1 + $0x410] ss:$8 sps:$4 sm:$0xff]   ;;  %v1948_v47 = vld [vmem:[%s2587_s1 + $0x404] ss:$8 sps:$4 sm:$0xff]  }
  0x49   : > { %1286 = vmatpush2.bf16.msra.mxu0 %v1822_v2  ;;  %v287_v2 = vor.u32 %v286_v61, %v283_v60  ;;  %v370_v6 = vcombine.low %v2286_v58, %v297_v1 }
  0x4a   : > { %1337 = vmatprep.subr.bf16.mxu0 %v1829_v5  ;;  %1327 = vmatpush2.bf16.msra.mxu1 %v1825_v53  ;;  %v1887_v5 = vld [vmem:[%s2587_s1 + $0x3e4] ss:$8 sps:$4 sm:$0xff]   ;;  %v1882_v53 = vld [vmem:[%s2587_s1 + $0x2e0] ss:$8 sps:$4 sm:$0xff]  }
  0x4b   : > { %1378 = vmatprep.subr.bf16.mxu1 %v1833_v7  ;;  %v2445_v7 = vrot.slane %v370_v6, %v2140_v49 }
  0x4c   : > { %1288 = vmatmul.mubr.bf16.vlgmr.msra.gmra.mxu0 %v305_v54  ;;  %v288_v54 = vrot.slane %v287_v2, 2 }
  0x4d   : > { %1338 = vmatpush1.bf16.msra.mxu0 %v1827_v8  ;;  %1369 = vmatprep.mubr.bf16.mxu0 %v350_v9  ;;  %v1885_v8 = vld [vmem:[%s2587_s1 + $0x3e0] ss:$8 sps:$4 sm:$0xff]   ;;  %v1893_v9 = vld [vmem:[%s2587_s1 + $0x3d4] ss:$8 sps:$4 sm:$0xff]  }
  0x4e   : > { %1329 = vmatmul.mubr.bf16.vlgmr.msra.gmra.mxu1 %v323_v10  ;;  %1339 = vmatprep.subr.bf16.mxu0 %v1836_v11  ;;  %v293_v58 = vsel %vm2234_vm11, %v288_v54, %v292_v4  ;;  %v1888_v11 = vld [vmem:[%s2587_s1 + $0x2d0] ss:$8 sps:$4 sm:$0xff]  }
  0x4f   : > { %1379 = vmatpush1.bf16.msra.mxu1 %v1831_v12  ;;  %v361_v10 = vcombine.low %v2282_v56, %v293_v58  ;;  %v1896_v12 = vld [vmem:[%s2587_s1 + $0x2c4] ss:$8 sps:$4 sm:$0xff]  }
  0x50   : > { %1380 = vmatprep.subr.bf16.mxu1 %v1839_v13  ;;  %v1891_v13 = vld [vmem:[%s2587_s1 + $0x3d0] ss:$8 sps:$4 sm:$0xff]   ;;  %v1899_v56 = vld [vmem:[%s2587_s1 + $0x3c4] ss:$8 sps:$4 sm:$0xff]  }
  0x51   : > { %1340 = vmatpush1.bf16.msra.mxu0 %v1834_v14  ;;  %v368_v25 = vrot.slane %v361_v10, %v2140_v49  ;;  %v1894_v14 = vld [vmem:[%s2587_s1 + $0x2c0] ss:$8 sps:$4 sm:$0xff]   ;;  %v1902_v49 = vld [vmem:[%s2587_s1 + $0x2b4] ss:$8 sps:$4 sm:$0xff]  }
  0x52   : > { %1341 = vmatprep.subr.bf16.mxu0 %v1842_v15  ;;  %v1897_v15 = vld [vmem:[%s2587_s1 + $0x3c0] ss:$8 sps:$4 sm:$0xff]  }
  0x53   : > { %1381 = vmatpush1.bf16.msra.mxu1 %v1837_v16  ;;  %1410 = vmatprep.mubr.bf16.mxu1 %v368_v25  ;;  %v1905_v16 = vld [vmem:[%s2587_s1 + $0x3b4] ss:$8 sps:$4 sm:$0xff]  }
  0x54   : > { %1382 = vmatprep.subr.bf16.mxu1 %v1845_v17  ;;  %v1900_v17 = vld [vmem:[%s2587_s1 + $0x2b0] ss:$8 sps:$4 sm:$0xff]  }
  0x55   : > { %1342 = vmatpush1.bf16.msra.mxu0 %v1840_v18  ;;  %v1908_v18 = vld [vmem:[%s2587_s1 + $0x2a4] ss:$8 sps:$4 sm:$0xff]  }
  0x56   : > { %1343 = vmatprep.subr.bf16.mxu0 %v1848_v19  ;;  %v1903_v19 = vld [vmem:[%s2587_s1 + $0x3b0] ss:$8 sps:$4 sm:$0xff]  }
  0x57   : > { %1383 = vmatpush1.bf16.msra.mxu1 %v1843_v20  ;;  %v1911_v20 = vld [vmem:[%s2587_s1 + $0x3a4] ss:$8 sps:$4 sm:$0xff]  }
  0x58   : > { %1384 = vmatprep.subr.bf16.mxu1 %v1851_v21  ;;  %v1906_v21 = vld [vmem:[%s2587_s1 + $0x2a0] ss:$8 sps:$4 sm:$0xff]  }
  0x59   : > { %1344 = vmatpush1.bf16.msra.mxu0 %v1846_v22  ;;  %v1914_v22 = vld [vmem:[%s2587_s1 + $0x294] ss:$8 sps:$4 sm:$0xff]  }
  0x5a   : > { %1345 = vmatprep.subr.bf16.mxu0 %v1854_v23  ;;  %v1909_v23 = vld [vmem:[%s2587_s1 + $0x3a0] ss:$8 sps:$4 sm:$0xff]  }
  0x5b   : > { %1385 = vmatpush1.bf16.msra.mxu1 %v1849_v24  ;;  %v1917_v24 = vld [vmem:[%s2587_s1 + $0x394] ss:$8 sps:$4 sm:$0xff]  }
  0x5c   : > { %1386 = vmatprep.subr.bf16.mxu1 %v1857_v26  ;;  %v1912_v26 = vld [vmem:[%s2587_s1 + $0x290] ss:$8 sps:$4 sm:$0xff]  }
  0x5d   : > { %1346 = vmatpush1.bf16.msra.mxu0 %v1852_v27  ;;  %v1920_v27 = vld [vmem:[%s2587_s1 + $0x284] ss:$8 sps:$4 sm:$0xff]  }
  0x5e   : > { %1347 = vmatprep.subr.bf16.mxu0 %v1860_v28  ;;  %v1915_v28 = vld [vmem:[%s2587_s1 + $0x390] ss:$8 sps:$4 sm:$0xff]  }
  0x5f   : > { %1387 = vmatpush1.bf16.msra.mxu1 %v1855_v29  ;;  %v1923_v29 = vld [vmem:[%s2587_s1 + $0x384] ss:$8 sps:$4 sm:$0xff]  }
  0x60   : > { %1388 = vmatprep.subr.bf16.mxu1 %v1863_v30  ;;  %v1918_v30 = vld [vmem:[%s2587_s1 + $0x280] ss:$8 sps:$4 sm:$0xff]  }
  0x61   : > { %1348 = vmatpush1.bf16.msra.mxu0 %v1858_v31  ;;  %v1926_v31 = vld [vmem:[%s2587_s1 + $0x474] ss:$8 sps:$4 sm:$0xff]  }
  0x62   : > { %1349 = vmatprep.subr.bf16.mxu0 %v1866_v32  ;;  %v1921_v32 = vld [vmem:[%s2587_s1 + $0x380] ss:$8 sps:$4 sm:$0xff]  }
  0x63   : > { %1389 = vmatpush1.bf16.msra.mxu1 %v1861_v33  ;;  %v1924_v33 = vld [vmem:[%s2587_s1 + $0x470] ss:$8 sps:$4 sm:$0xff]  }
  0x64   : > { %1390 = vmatprep.subr.bf16.mxu1 %v1869_v34  ;;  %v1930_v34 = vld [vmem:[%s2587_s1 + $0x464] ss:$8 sps:$4 sm:$0xff]  }
  0x65   : > { %1350 = vmatpush1.bf16.msra.mxu0 %v1864_v35  ;;  %v1928_v35 = vld [vmem:[%s2587_s1 + $0x460] ss:$8 sps:$4 sm:$0xff]  }
  0x66   : > { %1351 = vmatprep.subr.bf16.mxu0 %v1872_v36  ;;  %v1958_v36 = vmov 0  }
  0x67   : > { %1391 = vmatpush1.bf16.msra.mxu1 %v1867_v37  ;;  %v1933_v37 = vld [vmem:[%s2587_s1 + $0x454] ss:$8 sps:$4 sm:$0xff]  }
  0x68   : > { %1392 = vmatprep.subr.bf16.mxu1 %v1875_v38  ;;  %v1931_v38 = vld [vmem:[%s2587_s1 + $0x450] ss:$8 sps:$4 sm:$0xff]  }
  0x69   : > { %1352 = vmatpush1.bf16.msra.mxu0 %v1870_v40  ;;  %v1939_v40 = vld [vmem:[%s2587_s1 + $0x434] ss:$8 sps:$4 sm:$0xff]  }
  0x6a   : > { %1353 = vmatprep.subr.bf16.mxu0 %v1878_v45  ;;  %v1945_v45 = vld [vmem:[%s2587_s1 + $0x414] ss:$8 sps:$4 sm:$0xff]  }
  0x6b   : > { %1393 = vmatpush1.bf16.msra.mxu1 %v1873_v44  ;;  %v1940_v44 = vld [vmem:[%s2587_s1 + $0x420] ss:$8 sps:$4 sm:$0xff]  }
  0x6c   : > { %1394 = vmatprep.subr.bf16.mxu1 %v1881_v52  ;;  %v523_v52 = vld [vmem:[%s2588_s2] sm:$0x3] }
  0x6d   : > { %1354 = vmatpush2.bf16.msra.mxu0 %v1876_v55  ;;  %v528_v55 = vrot.slane %v523_v52, %v527_v51 }
  0x6e   : > { %1355 = vmatprep.subr.bf16.mxu0 %v1884_v63 }
  0x6f   : > { %1395 = vmatpush2.bf16.msra.mxu1 %v1879_v0 }
  0x70   : > { %1396 = vmatprep.subr.bf16.mxu1 %v1887_v5 }
  0x71   : > { %1356 = vmatpush2.bf16.msra.mxu0 %v1882_v53 }
  0x72   : > { %1357 = vmatprep.subr.bf16.mxu0 %v1890_v48 }
  0x73   : > { %1397 = vmatpush2.bf16.msra.mxu1 %v1885_v8 }
  0x74   : > { %1398 = vmatprep.subr.bf16.mxu1 %v1893_v9 }
  0x75   : > { %1358 = vmatpush2.bf16.msra.mxu0 %v1888_v11 }
  0x76   : > { %1359 = vmatprep.subr.bf16.mxu0 %v1896_v12 }
  0x77   : > { %1399 = vmatpush2.bf16.msra.mxu1 %v1891_v13 }
  0x78   : > { %1400 = vmatprep.subr.bf16.mxu1 %v1899_v56 }
  0x79   : > { %1360 = vmatpush2.bf16.msra.mxu0 %v1894_v14 }
  0x7a   : > { %1361 = vmatprep.subr.bf16.mxu0 %v1902_v49 }
  0x7b   : > { %1401 = vmatpush2.bf16.msra.mxu1 %v1897_v15 }
  0x7c   : > { %1402 = vmatprep.subr.bf16.mxu1 %v1905_v16 }
  0x7d   : > { %1362 = vmatpush2.bf16.msra.mxu0 %v1900_v17 }
  0x7e   : > { %1363 = vmatprep.subr.bf16.mxu0 %v1908_v18 }
  0x7f   : > { %1403 = vmatpush2.bf16.msra.mxu1 %v1903_v19 }
  0x80   : > { %1404 = vmatprep.subr.bf16.mxu1 %v1911_v20 }
  0x81   : > { %1364 = vmatpush2.bf16.msra.mxu0 %v1906_v21 }
  0x82   : > { %1365 = vmatprep.subr.bf16.mxu0 %v1914_v22 }
  0x83   : > { %1405 = vmatpush2.bf16.msra.mxu1 %v1909_v23 }
  0x84   : > { %1406 = vmatprep.subr.bf16.mxu1 %v1917_v24 }
  0x85   : > { %1366 = vmatpush2.bf16.msra.mxu0 %v1912_v26 }
  0x86   : > { %1367 = vmatprep.subr.bf16.mxu0 %v1920_v27 }
  0x87   : > { %1407 = vmatpush2.bf16.msra.mxu1 %v1915_v28 }
  0x88   : > { %1408 = vmatprep.subr.bf16.mxu1 %v1923_v29 }
  0x89   : > { %1368 = vmatpush2.bf16.msra.mxu0 %v1918_v30 }
  0x8a   : > { %1419 = vmatprep.subr.bf16.mxu0 %v1926_v31 }
  0x8b   : > { %1409 = vmatpush2.bf16.msra.mxu1 %v1921_v32 }
  0x8c   : > { %1370 = vmatmul.mubr.bf16.vlgmr.msra.gmra.mxu0 %v2306_v3  ;;  %v1936_v3 = vld [vmem:[%s2587_s1 + $0x444] ss:$8 sps:$4 sm:$0xff]  }
  0x8d   : > { %1420 = vmatpush1.bf16.msra.mxu0 %v1924_v33  ;;  %1451 = vmatprep.mubr.bf16.mxu0 %v1958_v36 }
  0x8e   : > { %1411 = vmatmul.mubr.bf16.vlgmr.msra.gmra.mxu1 %v2421_v57  ;;  %1421 = vmatprep.subr.bf16.mxu0 %v1930_v34  ;;  %v531_v57 = vsub.s32 1, %v2116_v43 }
  0x90   : > { %v532_v59 = vrot.slane %v523_v52, %v531_v57 }
  0x91   : > { %1422 = vmatpush1.bf16.msra.mxu0 %v1928_v35 }
  0x92   : > { %1423 = vmatprep.subr.bf16.mxu0 %v1933_v37 }
  0x95   : > { %1424 = vmatpush1.bf16.msra.mxu0 %v1931_v38 }
  0x96   : > { %1425 = vmatprep.subr.bf16.mxu0 %v1936_v3 }
  0x99   : > { %1426 = vmatpush1.bf16.msra.mxu0 %v1934_v39 }
  0x9a   : > { %1427 = vmatprep.subr.bf16.mxu0 %v1939_v40 }
  0x9d   : > { %1428 = vmatpush1.bf16.msra.mxu0 %v1937_v41 }
  0x9e   : > { %1429 = vmatprep.subr.bf16.mxu0 %v1942_v42 }
  0xa1   : > { %1430 = vmatpush1.bf16.msra.mxu0 %v1940_v44 }
  0xa2   : > { %1431 = vmatprep.subr.bf16.mxu0 %v1945_v45 }
  0xa5   : > { %1432 = vmatpush1.bf16.msra.mxu0 %v1943_v46 }
  0xa6   : > { %1433 = vmatprep.subr.bf16.mxu0 %v1948_v47 }
  0xa9   : > { %1434 = vmatpush1.bf16.msra.mxu0 %v1946_v50 }
  0xac   : > { %1452 = vmatmul.mubr.bf16.vlgmr.msra.gmra.mxu0 %v2445_v7 }
 0x10c   : > { %v1289_v60 = vpop.f32.mrf.mxu0 }
 0x10d   : > { %v1290_v61 = vadd.f32 %v1289_v60, %v528_v55 }
 0x10e   : > { %v1291_v62 = vpop.f32.mrf.mxu0  ;;  %v1330_v63 = vpop.f32.mrf.mxu1 }
 0x10f   : > { %v1292_v0 = vadd.f32 %v1291_v62, %v532_v59  ;;  %v1331_v1 = vadd.f32 %v1330_v63, %v1290_v61 }
 0x110   : > { %v1293_v2 = vpop.f32.mrf.mxu0  ;;  %v1332_v4 = vpop.f32.mrf.mxu1 }
 0x111   : > { %v1333_v5 = vadd.f32 %v1332_v4, %v1292_v0 }
 0x112   : > { %v1294_v6 = vpop.f32.mrf.mxu0  ;;  %v1334_v53 = vpop.f32.mrf.mxu1 }
 0x114   : > { %v1335_v54 = vpop.f32.mrf.mxu1 }
 0x14c   : > { %v1371_v48 = vpop.f32.mrf.mxu0 }
 0x14d   : > { %v1372_v12 = vadd.f32 %v1371_v48, %v1331_v1 }
 0x14e   : > { %v1373_v7 = vpop.f32.mrf.mxu0  ;;  %v1412_v8 = vpop.f32.mrf.mxu1 }
 0x14f   : > { %v1374_v25 = vadd.f32 %v1373_v7, %v1333_v5  ;;  %v1413_v56 = vadd.f32 %v1412_v8, %v1372_v12 }
 0x150   : > { %v1375_v58 = vpop.f32.mrf.mxu0  ;;  %v1414_v43 = vpop.f32.mrf.mxu1 }
 0x151   : > { %v1415_v14 = vadd.f32 %v1414_v43, %v1374_v25 }
 0x152   : > { %v1376_v9 = vpop.f32.mrf.mxu0  ;;  %v1416_v10 = vpop.f32.mrf.mxu1 }
 0x154   : > { %v1417_v11 = vpop.f32.mrf.mxu1 }
 0x16c   : > { %v1453_v13 = vpop.f32.mrf.mxu0 }
 0x16d   : > { %v1454_v15 = vadd.f32 %v1453_v13, %v1413_v56 }
 0x16e   : > { %v1455_v49 = vpop.f32.mrf.mxu0 }
 0x16f   : > { %v1456_v16 = vadd.f32 %v1455_v49, %v1415_v14 }
 0x170   : > { %v1457_v17 = vpop.f32.mrf.mxu0 }
 0x171   : > { %v1462_v18 = vcombine.low %v1454_v15, %v1456_v16  ;;  %v1463_v19 = vcombine.high %v1454_v15, %v1456_v16  ;;  %v1710_v20 = vcombine.low %v1456_v16, %v1456_v16  ;;  %v1711_v21 = vcombine.high %v1456_v16, %v1456_v16 }
 0x172   : > { %v1458_v22 = vpop.f32.mrf.mxu0 }
 0x173   : > { %v1712_v23 = vpack.c.bf16 %v1710_v20, %v1462_v18  ;;  %v1713_v24 = vpack.c.bf16 %v1711_v21, %v1463_v19 }
 0x175   : > { %1714 = vst.sshfl [vmem:[%s170_s16] sm:$0x33 pattern:$0x76325410] %v1712_v23 }
 0x176   : > { %1715 = vst.sshfl [vmem:[%s170_s16 + $0x4] sm:$0x33 pattern:$0x76325410] %v1713_v24 }
 0x177 PF: > { %s13_s12 = sadd.s32 1, %s1955_s12  }
 0x178   : > { %p10_p4 = scmp.ge.s32.totalorder %s13_s12, 6  }
 0x17a   :  { %12 = sbr.rel (!%p10_p4) target bundleno = 1 (0x1), region = 62 }

// kernel: interpolation_model.9
= control target key start
LH: loop header
LB: loop body
LE: loop exit
PB: predicated region body
PF: predicated region fallthrough
CT: control target
= control target key end

     0   :  { %s2495_s12 = smov 0   ;;  %s3029_s0 = inlined_call_operand.vmem [shape: bf16[4,3,5,256], index: 0, kind: input, shape index: {}]   ;;  %s3030_s1 = inlined_call_operand.vmem [shape: bf16[2304,128], index: 1, kind: input, shape index: {}]   ;;  %s3031_s2 = inlined_call_operand.vmem [shape: f32[1,128], index: 2, kind: input, shape index: {}]   ;;  %s3032_s3 = inlined_call_operand.vmem [shape: bf16[4,2,4,512], index: 3, kind: output, shape index: {}]  }
   0x1 LB: > { %s1947_s13 = sadd.s32 4294967295, %s2472_s12   ;;  %p1951_p0 = scmp.ge.s32.totalorder %s2472_s12, 1  ;;  %s2472_s12 = sphi %s2495_s12, %s13_s12  }
   0x2   : > { %p137_p1 = scmp.lt.s32.totalorder %s2472_s12, 5 }
   0x4   : > { %p138_p2 = pnand %p1951_p0, %p137_p1 }
   0x5   : > { %p161_p3 = scmp.lt.s32.totalorder (!%p138_p2), %s1947_s13, 3 }
   0x6   : > { %141 = sbr.rel (%p138_p2) target bundleno = 382 (0x17e), region = 32 }
   0xb   : > { %v2322_v0 = vld [vmem:[%s3030_s1 + $0x78] sm:$0xff]   ;;  %v2326_v4 = vld [vmem:[%s3030_s1 + $0x70] sm:$0xff]   ;;  %v2330_v8 = vld [vmem:[%s3030_s1 + $0x68] sm:$0xff]   ;;  %s3036_s13 = smov (!%p161_p3, %s1947_s13), 3  ;;  %v294_v27 = vlaneseq  ;;  %v2474_v35 = vmov 1983009808  }
   0xc   : > { %v2323_v1 = vld [vmem:[%s3030_s1 + $0x38] sm:$0xff]   ;;  %2114 = vmatprep.subr.bf16.mxu0 %v2322_v0  ;;  %v2327_v5 = vld [vmem:[%s3030_s1 + $0x30] sm:$0xff]   ;;  %v2331_v9 = vld [vmem:[%s3030_s1 + $0x28] sm:$0xff]   ;;  %s2312_s14 = smul.u32 24, %s3036_s13  ;;  %v292_v36 = vunpack.c.l.s4 %v2474_v35  ;;  %vm193_vm0 = vsmask.f32 1280 }
   0xd   : > { %v2324_v2 = vld [vmem:[%s3030_s1 + $0xf8] sm:$0xff]   ;;  %2115 = vmatpush3.bf16.msra.mxu0 %v2323_v1  ;;  %v2328_v6 = vld [vmem:[%s3030_s1 + $0xf0] sm:$0xff]   ;;  %v2332_v10 = vld [vmem:[%s3030_s1 + $0xe8] sm:$0xff]   ;;  %v295_v32 = vshrl.u32 %v294_v27, 7  ;;  %vm194_vm1 = vsmask.f32 3336 }
   0xe   : > { %v2325_v3 = vld [vmem:[%s3030_s1 + $0xb8] sm:$0xff]   ;;  %2136 = vmatprep.subr.bf16.mxu1 %v2324_v2  ;;  %2116 = vmatprep.subr.bf16.mxu0 %v2326_v4  ;;  %v2329_v7 = vld [vmem:[%s3030_s1 + $0xb0] sm:$0xff]   ;;  %v2333_v11 = vld [vmem:[%s3030_s1 + $0xa8] sm:$0xff]   ;;  %s2600_s25 = scalar_lea.vmem %s3029_s0, %s2312_s14  ;;  %v293_v39 = vunpack.c.0.s8 %v292_v36  ;;  %vm196_vm2 = vsmask.f32 5392  ;;  %s2113_s11 = sshll.u32 %s3036_s13, 4 }
   0xf   : > { %2137 = vmatpush3.bf16.msra.mxu1 %v2325_v3  ;;  %v2334_v12 = vld [vmem:[%s3030_s1 + $0x60] sm:$0xff]   ;;  %v2338_v16 = vld [vmem:[%s3030_s1 + $0x58] sm:$0xff]   ;;  %v2342_v20 = vld [vmem:[%s3030_s1 + $0x50] sm:$0xff]   ;;  %vm198_vm3 = vsmask.f32 7448  ;;  %s170_s15 = scalar_lea.vmem %s3032_s3, %s2113_s11 }
  0x10   : > { %2138 = vmatprep.subr.bf16.mxu1 %v2328_v6  ;;  %v2335_v13 = vld [vmem:[%s3030_s1 + $0x20] sm:$0xff]   ;;  %v2339_v17 = vld [vmem:[%s3030_s1 + $0x18] sm:$0xff]   ;;  %v2343_v21 = vld [vmem:[%s3030_s1 + $0x10] sm:$0xff]   ;;  %v2622_v41 = vsub.s32 %v293_v39, %v295_v32 }
  0x11   : > { %2117 = vmatpush3.bf16.msra.mxu0 %v2327_v5  ;;  %v2336_v14 = vld [vmem:[%s3030_s1 + $0xe0] sm:$0xff]   ;;  %v2340_v18 = vld [vmem:[%s3030_s1 + $0xd8] sm:$0xff]   ;;  %v2344_v22 = vld [vmem:[%s3030_s1 + $0xd0] sm:$0xff]  }
  0x12   : > { %2118 = vmatprep.subr.bf16.mxu0 %v2330_v8  ;;  %v2337_v15 = vld [vmem:[%s3030_s1 + $0xa0] sm:$0xff]   ;;  %v2341_v19 = vld [vmem:[%s3030_s1 + $0x98] sm:$0xff]   ;;  %v2345_v23 = vld [vmem:[%s3030_s1 + $0x90] sm:$0xff]  }
  0x13   : > { %2139 = vmatpush3.bf16.msra.mxu1 %v2329_v7  ;;  %v2346_v24 = vld [vmem:[%s3030_s1 + $0x48] sm:$0xff]   ;;  %v2350_v29 = vld [vmem:[%s3030_s1 + $0x40] sm:$0xff]   ;;  %v2354_v40 = vld [vmem:[%s3030_s1 + $0x178] sm:$0xff]  }
  0x14   : > { %2140 = vmatprep.subr.bf16.mxu1 %v2332_v10  ;;  %v2347_v25 = vld [vmem:[%s3030_s1 + $0x8] sm:$0xff]   ;;  %v2351_v30 = vld [vmem:[%s3030_s1] sm:$0xff]   ;;  %v2356_v42 = vld [vmem:[%s3030_s1 + $0x1f8] sm:$0xff]  }
  0x15   : > { %2119 = vmatpush3.bf16.msra.mxu0 %v2331_v9  ;;  %v2348_v26 = vld [vmem:[%s3030_s1 + $0xc8] sm:$0xff]   ;;  %v2352_v31 = vld [vmem:[%s3030_s1 + $0xc0] sm:$0xff]   ;;  %v2355_v44 = vld [vmem:[%s3030_s1 + $0x138] sm:$0xff]  }
  0x16   : > { %2120 = vmatprep.subr.bf16.mxu0 %v2334_v12  ;;  %v2349_v28 = vld [vmem:[%s3030_s1 + $0x88] sm:$0xff]   ;;  %v2609_v33 = vld.sshfl [vmem:[%s2600_s25] sm:$0x5f pattern:$0x76325410]  ;;  %v2357_v45 = vld [vmem:[%s3030_s1 + $0x1b8] sm:$0xff]  }
  0x17   : > { %2141 = vmatpush3.bf16.msra.mxu1 %v2333_v11  ;;  %v2612_v34 = vld.sshfl [vmem:[%s2600_s25 + $0x8] sm:$0x5f pattern:$0x76325410]  ;;  %v2353_v37 = vld [vmem:[%s3030_s1 + $0x80] sm:$0xff]   ;;  %v2358_v47 = vld [vmem:[%s3030_s1 + $0x170] sm:$0xff]   ;;  %v191_v0 = vcombine.high %v2609_v33, %v2609_v33 }
  0x18   : > { %2142 = vmatprep.subr.bf16.mxu1 %v2336_v14  ;;  %v290_v38 = vcombine.low %v2609_v33, %v2612_v34  ;;  %v2360_v48 = vld [vmem:[%s3030_s1 + $0x1f0] sm:$0xff]   ;;  %v2362_v51 = vld [vmem:[%s3030_s1 + $0x168] sm:$0xff]   ;;  %v2366_v55 = vld [vmem:[%s3030_s1 + $0x160] sm:$0xff]   ;;  %v201_v56 = vshrl.u32 %v2609_v33, 16  ;;  %v204_v58 = vshll.u32 %v2609_v33, 16  ;;  %v215_v60 = vshrl.u32 %v2612_v34, 16 }
  0x19   : > { %2121 = vmatpush3.bf16.msra.mxu0 %v2335_v13  ;;  %v2359_v49 = vld [vmem:[%s3030_s1 + $0x130] sm:$0xff]   ;;  %v2364_v52 = vld [vmem:[%s3030_s1 + $0x1e8] sm:$0xff]   ;;  %v2368_v57 = vld [vmem:[%s3030_s1 + $0x1e0] sm:$0xff]   ;;  %v218_v62 = vshll.u32 %v2612_v34, 16  ;;  %v192_v5 = vcombine.high %v2612_v34, %v2612_v34  ;;  %v210_v10 = vshll.u32 %v191_v0, 16 }
  0x1a   : > { %2122 = vmatprep.subr.bf16.mxu0 %v2338_v16  ;;  %v2628_v43 = vrot.slane %v290_v38, %v2622_v41  ;;  %v2361_v50 = vld [vmem:[%s3030_s1 + $0x1b0] sm:$0xff]   ;;  %v2363_v53 = vld [vmem:[%s3030_s1 + $0x128] sm:$0xff]   ;;  %v2367_v59 = vld [vmem:[%s3030_s1 + $0x120] sm:$0xff]   ;;  %v203_v1 = vrot.slane %v201_v56, 6  ;;  %v206_v3 = vrot.slane %v204_v58, 7  ;;  %v217_v6 = vrot.slane %v215_v60, 6 }
  0x1b   : > { %2143 = vmatpush3.bf16.msra.mxu1 %v2337_v15  ;;  %v2365_v54 = vld [vmem:[%s3030_s1 + $0x1a8] sm:$0xff]   ;;  %v2369_v61 = vld [vmem:[%s3030_s1 + $0x1a0] sm:$0xff]   ;;  %v2370_v63 = vld [vmem:[%s3030_s1 + $0x158] sm:$0xff]   ;;  %v220_v8 = vrot.slane %v218_v62, 7  ;;  %v224_v14 = vshll.u32 %v192_v5, 16 }
  0x1c   : > { %2144 = vmatprep.subr.bf16.mxu1 %v2340_v18  ;;  %v2638_v46 = vcombine.high %v2628_v43, %v2628_v43  ;;  %v2372_v2 = vld [vmem:[%s3030_s1 + $0x1d8] sm:$0xff]   ;;  %v2374_v9 = vld [vmem:[%s3030_s1 + $0x150] sm:$0xff]   ;;  %v207_v12 = vor.u32 %v206_v3, %v203_v1  ;;  %v212_v18 = vrot.slane %v210_v10, 7  ;;  %v2383_v27 = vld [vmem:[%s3030_s1 + $0x100] sm:$0xff]  }
  0x1d   : > { %2123 = vmatpush3.bf16.msra.mxu0 %v2339_v17  ;;  %v2371_v4 = vld [vmem:[%s3030_s1 + $0x118] sm:$0xff]   ;;  %v2376_v11 = vld [vmem:[%s3030_s1 + $0x1d0] sm:$0xff]   ;;  %v221_v16 = vor.u32 %v220_v8, %v217_v6  ;;  %v2378_v17 = vld [vmem:[%s3030_s1 + $0x148] sm:$0xff]  }
  0x1e   : > { %2124 = vmatprep.subr.bf16.mxu0 %v2342_v20  ;;  %429 = vmatprep.mubr.bf16.mxu0 %v2638_v46  ;;  %v2373_v7 = vld [vmem:[%s3030_s1 + $0x198] sm:$0xff]   ;;  %v2375_v13 = vld [vmem:[%s3030_s1 + $0x110] sm:$0xff]   ;;  %v208_v20 = vrot.slane %v207_v12, 2  ;;  %vm195_vm4 = vmor %vm193_vm0, %vm194_vm1 }
  0x1f   : > { %2145 = vmatpush3.bf16.msra.mxu1 %v2341_v19  ;;  %736 = vmatprep.mubr.bf16.mxu1 %v2638_v46  ;;  %v2377_v15 = vld [vmem:[%s3030_s1 + $0x190] sm:$0xff]   ;;  %v2380_v19 = vld [vmem:[%s3030_s1 + $0x1c8] sm:$0xff]   ;;  %vm197_vm5 = vmor %vm195_vm4, %vm196_vm2 }
  0x20   : > { %2146 = vmatprep.subr.bf16.mxu1 %v2344_v22  ;;  %v226_v22 = vrot.slane %v224_v14, 7  ;;  %vm2734_vm6 = vmor %vm197_vm5, %vm198_vm3  ;;  %v2386_v32 = vld [vmem:[%s3030_s1 + $0x278] sm:$0xff]   ;;  %v2408_v58 = vld [vmem:[%s3030_s1 + $0x2d0] sm:$0xff]  }
  0x21   : > { %2125 = vmatpush3.bf16.msra.mxu0 %v2343_v21  ;;  %v2379_v21 = vld [vmem:[%s3030_s1 + $0x108] sm:$0xff]   ;;  %v2388_v35 = vld [vmem:[%s3030_s1 + $0x2f8] sm:$0xff]   ;;  %v2409_v60 = vld [vmem:[%s3030_s1 + $0x290] sm:$0xff]  }
  0x22   : > { %2126 = vmatprep.subr.bf16.mxu0 %v2346_v24  ;;  %v222_v24 = vrot.slane %v221_v16, 2  ;;  %v2387_v38 = vld [vmem:[%s3030_s1 + $0x238] sm:$0xff]   ;;  %v2412_v62 = vld [vmem:[%s3030_s1 + $0x2c8] sm:$0xff]   ;;  %v2416_v3 = vld [vmem:[%s3030_s1 + $0x2c0] sm:$0xff]  }
  0x23   : > { %2147 = vmatpush3.bf16.msra.mxu1 %v2345_v23  ;;  %v2381_v23 = vld [vmem:[%s3030_s1 + $0x188] sm:$0xff]   ;;  %v2405_v56 = vld [vmem:[%s3030_s1 + $0x298] sm:$0xff]   ;;  %v2417_v6 = vld [vmem:[%s3030_s1 + $0x280] sm:$0xff]  }
  0x24   : > { %2148 = vmatprep.subr.bf16.mxu1 %v2348_v26  ;;  %v2384_v26 = vld [vmem:[%s3030_s1 + $0x1c0] sm:$0xff]   ;;  %v2411_v0 = vld [vmem:[%s3030_s1 + $0x208] sm:$0xff]   ;;  %v2421_v16 = vld [vmem:[%s3030_s1 + $0x3b8] sm:$0xff]  }
  0x25   : > { %2127 = vmatpush3.bf16.msra.mxu0 %v2347_v25  ;;  %v2382_v25 = vld [vmem:[%s3030_s1 + $0x140] sm:$0xff]   ;;  %v2413_v1 = vld [vmem:[%s3030_s1 + $0x288] sm:$0xff]  }
  0x26   : > { %2128 = vmatprep.subr.bf16.mxu0 %v2350_v29  ;;  %v2385_v29 = vld [vmem:[%s3030_s1 + $0x180] sm:$0xff]  }
  0x27   : > { %2149 = vmatpush3.bf16.msra.mxu1 %v2349_v28  ;;  %v2429_v28 = vld [vmem:[%s3030_s1 + $0x3a8] sm:$0xff]  }
  0x28   : > { %2150 = vmatprep.subr.bf16.mxu1 %v2352_v31  ;;  %v2745_v31 = vsel %vm2734_vm6, %v222_v24, %v226_v22  ;;  %v2424_v22 = vld [vmem:[%s3030_s1 + $0x3f0] sm:$0xff]  }
  0x29   : > { %2129 = vmatpush3.bf16.msra.mxu0 %v2351_v30  ;;  %v213_v30 = vsel %vm2734_vm6, %v208_v20, %v212_v18  ;;  %v2419_v18 = vld [vmem:[%s3030_s1 + $0x338] sm:$0xff]   ;;  %v2422_v20 = vld [vmem:[%s3030_s1 + $0x370] sm:$0xff]  }
  0x2a   : > { %2158 = vmatprep.subr.bf16.mxu0 %v2354_v40  ;;  %v437_v33 = vcombine.low %v213_v30, %v2745_v31  ;;  %v2392_v40 = vld [vmem:[%s3030_s1 + $0x2f0] sm:$0xff]   ;;  %v2427_v30 = vld [vmem:[%s3030_s1 + $0x328] sm:$0xff]  }
  0x2b   : > { %2151 = vmatpush3.bf16.msra.mxu1 %v2353_v37  ;;  %v2389_v37 = vld [vmem:[%s3030_s1 + $0x2b8] sm:$0xff]   ;;  %v2425_v24 = vld [vmem:[%s3030_s1 + $0x3b0] sm:$0xff]  }
  0x2c   : > { %2180 = vmatprep.subr.bf16.mxu1 %v2356_v42  ;;  %430 = vmatmul.mubr.bf16.vlgmr.msra.gmra.mxu0 %v2628_v43  ;;  %v2755_v36 = vrot.slane %v437_v33, %v2622_v41  ;;  %v2390_v42 = vld [vmem:[%s3030_s1 + $0x270] sm:$0xff]   ;;  %v2433_v33 = vld [vmem:[%s3030_s1 + $0x3a0] sm:$0xff]  }
  0x2d   : > { %2159 = vmatpush3.bf16.msra.mxu0 %v2355_v44  ;;  %v2393_v44 = vld [vmem:[%s3030_s1 + $0x2b0] sm:$0xff]  }
  0x2e   : > { %737 = vmatmul.mubr.bf16.vlgmr.msra.gmra.mxu1 %v2628_v43  ;;  %2160 = vmatprep.subr.bf16.mxu0 %v2358_v47  ;;  %v2765_v39 = vcombine.high %v2755_v36, %v2755_v36  ;;  %v2396_v47 = vld [vmem:[%s3030_s1 + $0x2e8] sm:$0xff]  }
  0x2f   : > { %2181 = vmatpush3.bf16.msra.mxu1 %v2357_v45  ;;  %1083 = vmatprep.mubr.bf16.mxu1 %v2638_v46  ;;  %v2391_v45 = vld [vmem:[%s3030_s1 + $0x230] sm:$0xff]  }
  0x30   : > { %2182 = vmatprep.subr.bf16.mxu1 %v2360_v48  ;;  %776 = vmatprep.mubr.bf16.mxu0 %v2765_v39  ;;  %v2394_v48 = vld [vmem:[%s3030_s1 + $0x268] sm:$0xff]  }
  0x31   : > { %2161 = vmatpush3.bf16.msra.mxu0 %v2359_v49  ;;  %v2397_v49 = vld [vmem:[%s3030_s1 + $0x2a8] sm:$0xff]  }
  0x32   : > { %2162 = vmatprep.subr.bf16.mxu0 %v2362_v51  ;;  %v2398_v51 = vld [vmem:[%s3030_s1 + $0x260] sm:$0xff]  }
  0x33   : > { %2183 = vmatpush3.bf16.msra.mxu1 %v2361_v50  ;;  %v2395_v50 = vld [vmem:[%s3030_s1 + $0x228] sm:$0xff]  }
  0x34   : > { %2184 = vmatprep.subr.bf16.mxu1 %v2364_v52  ;;  %v2401_v52 = vld [vmem:[%s3030_s1 + $0x2a0] sm:$0xff]  }
  0x35   : > { %2163 = vmatpush3.bf16.msra.mxu0 %v2363_v53  ;;  %v2399_v53 = vld [vmem:[%s3030_s1 + $0x220] sm:$0xff]  }
  0x36   : > { %2164 = vmatprep.subr.bf16.mxu0 %v2366_v55  ;;  %v2402_v55 = vld [vmem:[%s3030_s1 + $0x258] sm:$0xff]  }
  0x37   : > { %2185 = vmatpush3.bf16.msra.mxu1 %v2365_v54  ;;  %v2404_v54 = vld [vmem:[%s3030_s1 + $0x2d8] sm:$0xff]  }
  0x38   : > { %2186 = vmatprep.subr.bf16.mxu1 %v2368_v57  ;;  %v2403_v57 = vld [vmem:[%s3030_s1 + $0x218] sm:$0xff]  }
  0x39   : > { %2165 = vmatpush3.bf16.msra.mxu0 %v2367_v59  ;;  %v2406_v59 = vld [vmem:[%s3030_s1 + $0x250] sm:$0xff]  }
  0x3a   : > { %2166 = vmatprep.subr.bf16.mxu0 %v2370_v63  ;;  %v2410_v63 = vld [vmem:[%s3030_s1 + $0x248] sm:$0xff]  }
  0x3b   : > { %2187 = vmatpush3.bf16.msra.mxu1 %v2369_v61  ;;  %v2407_v61 = vld [vmem:[%s3030_s1 + $0x210] sm:$0xff]  }
  0x3c   : > { %2188 = vmatprep.subr.bf16.mxu1 %v2372_v2  ;;  %v2414_v2 = vld [vmem:[%s3030_s1 + $0x240] sm:$0xff]  }
  0x3d   : > { %2167 = vmatpush3.bf16.msra.mxu0 %v2371_v4  ;;  %v1957_v4 = vld.sshfl [vmem:[%s2600_s25 + $0x10] sm:$0x5f pattern:$0x76325410] }
  0x3e   : > { %2168 = vmatprep.subr.bf16.mxu0 %v2374_v9  ;;  %v784_v5 = vcombine.low %v2612_v34, %v1957_v4  ;;  %v238_v8 = vshrl.u32 %v1957_v4, 16  ;;  %v2415_v9 = vld [vmem:[%s3030_s1 + $0x200] sm:$0xff]   ;;  %v241_v10 = vshll.u32 %v1957_v4, 16  ;;  %v2418_v34 = vld [vmem:[%s3030_s1 + $0x378] sm:$0xff]  }
  0x3f   : > { %2189 = vmatpush3.bf16.msra.mxu1 %v2373_v7  ;;  %v236_v7 = vcombine.high %v1957_v4, %v1957_v4  ;;  %v2462_v4 = vld [vmem:[%s3030_s1 + $0x448] sm:$0xff]  }
  0x40   : > { %2190 = vmatprep.subr.bf16.mxu1 %v2376_v11  ;;  %v2858_v11 = vrot.slane %v784_v5, %v2622_v41  ;;  %v240_v12 = vrot.slane %v238_v8, 6  ;;  %v243_v14 = vrot.slane %v241_v10, 7  ;;  %v2463_v5 = vld [vmem:[%s3030_s1 + $0x408] sm:$0xff]  }
  0x41   : > { %2169 = vmatpush3.bf16.msra.mxu0 %v2375_v13  ;;  %v2420_v13 = vld [vmem:[%s3030_s1 + $0x3f8] sm:$0xff]  }
  0x42   : > { %2170 = vmatprep.subr.bf16.mxu0 %v2378_v17  ;;  %v247_v17 = vshll.u32 %v236_v7, 16  ;;  %v2465_v7 = vld [vmem:[%s3030_s1 + $0x400] sm:$0xff]  }
  0x43   : > { %2191 = vmatpush3.bf16.msra.mxu1 %v2377_v15  ;;  %v792_v15 = vcombine.high %v2858_v11, %v2858_v11 }
  0x44   : > { %2192 = vmatprep.subr.bf16.mxu1 %v2380_v19  ;;  %v244_v19 = vor.u32 %v243_v14, %v240_v12 }
  0x45   : > { %2171 = vmatpush3.bf16.msra.mxu0 %v2379_v21  ;;  %v249_v21 = vrot.slane %v247_v17, 7 }
  0x46   : > { %2172 = vmatprep.subr.bf16.mxu0 %v2382_v25  ;;  %v2423_v25 = vld [vmem:[%s3030_s1 + $0x330] sm:$0xff]  }
  0x47   : > { %2193 = vmatpush3.bf16.msra.mxu1 %v2381_v23  ;;  %v245_v23 = vrot.slane %v244_v19, 2 }
  0x48   : > { %2194 = vmatprep.subr.bf16.mxu1 %v2384_v26  ;;  %v2426_v26 = vld [vmem:[%s3030_s1 + $0x368] sm:$0xff]  }
  0x49   : > { %2173 = vmatpush3.bf16.msra.mxu0 %v2383_v27 }
  0x4a   : > { %2202 = vmatprep.subr.bf16.mxu0 %v2386_v32  ;;  %v2432_v32 = vld [vmem:[%s3030_s1 + $0x3e0] sm:$0xff]  }
  0x4b   : > { %2195 = vmatpush3.bf16.msra.mxu1 %v2385_v29  ;;  %v2428_v29 = vld [vmem:[%s3030_s1 + $0x3e8] sm:$0xff]  }
  0x4c   : > { %2224 = vmatprep.subr.bf16.mxu1 %v2388_v35  ;;  %777 = vmatmul.mubr.bf16.vlgmr.msra.gmra.mxu0 %v2755_v36  ;;  %v2431_v35 = vld [vmem:[%s3030_s1 + $0x320] sm:$0xff]  }
  0x4d   : > { %2203 = vmatpush3.bf16.msra.mxu0 %v2387_v38  ;;  %1123 = vmatprep.mubr.bf16.mxu0 %v792_v15  ;;  %v2436_v38 = vld [vmem:[%s3030_s1 + $0x3d8] sm:$0xff]  }
  0x4e   : > { %1084 = vmatmul.mubr.bf16.vlgmr.msra.gmra.mxu1 %v2628_v43  ;;  %2204 = vmatprep.subr.bf16.mxu0 %v2390_v42  ;;  %v2438_v42 = vld [vmem:[%s3030_s1 + $0x350] sm:$0xff]  }
  0x4f   : > { %2225 = vmatpush3.bf16.msra.mxu1 %v2389_v37  ;;  %1686 = vmatprep.mubr.bf16.mxu1 %v2638_v46  ;;  %v2400_v46 = vld [vmem:[%s3030_s1 + $0x2e0] sm:$0xff]   ;;  %v2434_v37 = vld [vmem:[%s3030_s1 + $0x358] sm:$0xff]  }
  0x50   : > { %2226 = vmatprep.subr.bf16.mxu1 %v2392_v40  ;;  %v2435_v40 = vld [vmem:[%s3030_s1 + $0x318] sm:$0xff]  }
  0x51   : > { %2205 = vmatpush3.bf16.msra.mxu0 %v2391_v45  ;;  %v2441_v45 = vld [vmem:[%s3030_s1 + $0x390] sm:$0xff]  }
  0x52   : > { %2206 = vmatprep.subr.bf16.mxu0 %v2394_v48  ;;  %v2442_v48 = vld [vmem:[%s3030_s1 + $0x348] sm:$0xff]  }
  0x53   : > { %2227 = vmatpush3.bf16.msra.mxu1 %v2393_v44  ;;  %v2440_v44 = vld [vmem:[%s3030_s1 + $0x3d0] sm:$0xff]  }
  0x54   : > { %2228 = vmatprep.subr.bf16.mxu1 %v2396_v47  ;;  %v2439_v47 = vld [vmem:[%s3030_s1 + $0x310] sm:$0xff]  }
  0x55   : > { %2207 = vmatpush3.bf16.msra.mxu0 %v2395_v50  ;;  %v2445_v50 = vld [vmem:[%s3030_s1 + $0x388] sm:$0xff]  }
  0x56   : > { %2208 = vmatprep.subr.bf16.mxu0 %v2398_v51  ;;  %v2446_v51 = vld [vmem:[%s3030_s1 + $0x340] sm:$0xff]  }
  0x57   : > { %2229 = vmatpush3.bf16.msra.mxu1 %v2397_v49  ;;  %v2444_v49 = vld [vmem:[%s3030_s1 + $0x3c8] sm:$0xff]  }
  0x58   : > { %2230 = vmatprep.subr.bf16.mxu1 %v2400_v46  ;;  %v2443_v46 = vld [vmem:[%s3030_s1 + $0x308] sm:$0xff]  }
  0x59   : > { %2209 = vmatpush3.bf16.msra.mxu0 %v2399_v53  ;;  %v2449_v53 = vld [vmem:[%s3030_s1 + $0x380] sm:$0xff]  }
  0x5a   : > { %2210 = vmatprep.subr.bf16.mxu0 %v2402_v55 }
  0x5b   : > { %2231 = vmatpush3.bf16.msra.mxu1 %v2401_v52  ;;  %v2448_v52 = vld [vmem:[%s3030_s1 + $0x3c0] sm:$0xff]  }
  0x5c   : > { %2232 = vmatprep.subr.bf16.mxu1 %v2404_v54  ;;  %v2447_v54 = vld [vmem:[%s3030_s1 + $0x300] sm:$0xff]  }
  0x5d   : > { %2211 = vmatpush3.bf16.msra.mxu0 %v2403_v57  ;;  %v2451_v57 = vld [vmem:[%s3030_s1 + $0x438] sm:$0xff]  }
  0x5e   : > { %2212 = vmatprep.subr.bf16.mxu0 %v2406_v59  ;;  %v2452_v59 = vld [vmem:[%s3030_s1 + $0x470] sm:$0xff]  }
  0x5f   : > { %2233 = vmatpush3.bf16.msra.mxu1 %v2405_v56  ;;  %v2450_v56 = vld [vmem:[%s3030_s1 + $0x478] sm:$0xff]  }
  0x60   : > { %2234 = vmatprep.subr.bf16.mxu1 %v2408_v58 }
  0x61   : > { %2213 = vmatpush3.bf16.msra.mxu0 %v2407_v61  ;;  %v2454_v61 = vld [vmem:[%s3030_s1 + $0x468] sm:$0xff]  }
  0x62   : > { %2214 = vmatprep.subr.bf16.mxu0 %v2410_v63  ;;  %v2457_v63 = vld [vmem:[%s3030_s1 + $0x420] sm:$0xff]  }
  0x63   : > { %2235 = vmatpush3.bf16.msra.mxu1 %v2409_v60  ;;  %v2453_v60 = vld [vmem:[%s3030_s1 + $0x430] sm:$0xff]  }
  0x64   : > { %2236 = vmatprep.subr.bf16.mxu1 %v2412_v62  ;;  %v2455_v62 = vld [vmem:[%s3030_s1 + $0x428] sm:$0xff]  }
  0x65   : > { %2215 = vmatpush3.bf16.msra.mxu0 %v2411_v0  ;;  %v2458_v0 = vld [vmem:[%s3030_s1 + $0x458] sm:$0xff]  }
  0x66   : > { %2216 = vmatprep.subr.bf16.mxu0 %v2414_v2  ;;  %v2460_v2 = vld [vmem:[%s3030_s1 + $0x450] sm:$0xff]  }
  0x67   : > { %2237 = vmatpush3.bf16.msra.mxu1 %v2413_v1  ;;  %v2459_v1 = vld [vmem:[%s3030_s1 + $0x418] sm:$0xff]  }
  0x68   : > { %2238 = vmatprep.subr.bf16.mxu1 %v2416_v3  ;;  %v2461_v3 = vld [vmem:[%s3030_s1 + $0x410] sm:$0xff]  }
  0x69   : > { %2217 = vmatpush3.bf16.msra.mxu0 %v2415_v9 }
  0x6a   : > { %2246 = vmatprep.subr.bf16.mxu0 %v2418_v34 }
  0x6b   : > { %2239 = vmatpush3.bf16.msra.mxu1 %v2417_v6  ;;  %v2464_v6 = vld [vmem:[%s3030_s1 + $0x440] sm:$0xff]  }
  0x6c   : > { %2268 = vmatprep.subr.bf16.mxu1 %v2420_v13  ;;  %1124 = vmatmul.mubr.bf16.vlgmr.msra.gmra.mxu0 %v2858_v11 }
  0x6d   : > { %2247 = vmatpush3.bf16.msra.mxu0 %v2419_v18  ;;  %1726 = vmatprep.mubr.bf16.mxu0 %v2765_v39  ;;  %v2437_v39 = vld [vmem:[%s3030_s1 + $0x398] sm:$0xff]   ;;  %v1958_v18 = vld [vmem:[%s3031_s2] ss:$0 sm:$0xff] }
  0x6e   : > { %1687 = vmatmul.mubr.bf16.vlgmr.msra.gmra.mxu1 %v2628_v43  ;;  %v250_v43 = vsel %vm2734_vm6, %v245_v23, %v249_v21  ;;  %2248 = vmatprep.subr.bf16.mxu0 %v2422_v20 }
  0x6f   : > { %2269 = vmatpush3.bf16.msra.mxu1 %v2421_v16  ;;  %1766 = vmatprep.mubr.bf16.mxu1 %v792_v15  ;;  %v1131_v27 = vcombine.low %v2745_v31, %v250_v43  ;;  %v2430_v31 = vld [vmem:[%s3030_s1 + $0x360] sm:$0xff]  }
  0x70   : > { %2270 = vmatprep.subr.bf16.mxu1 %v2424_v22 }
  0x71   : > { %2249 = vmatpush3.bf16.msra.mxu0 %v2423_v25  ;;  %v1138_v55 = vrot.slane %v1131_v27, %v2622_v41 }
  0x72   : > { %2250 = vmatprep.subr.bf16.mxu0 %v2426_v26 }
  0x73   : > { %2271 = vmatpush3.bf16.msra.mxu1 %v2425_v24  ;;  %v1139_v58 = vcombine.high %v1138_v55, %v1138_v55 }
  0x74   : > { %2272 = vmatprep.subr.bf16.mxu1 %v2428_v29 }
  0x75   : > { %2251 = vmatpush3.bf16.msra.mxu0 %v2427_v30 }
  0x76   : > { %2252 = vmatprep.subr.bf16.mxu0 %v2430_v31 }
  0x77   : > { %2273 = vmatpush3.bf16.msra.mxu1 %v2429_v28 }
  0x78   : > { %2274 = vmatprep.subr.bf16.mxu1 %v2432_v32 }
  0x79   : > { %2253 = vmatpush3.bf16.msra.mxu0 %v2431_v35 }
  0x7a   : > { %2254 = vmatprep.subr.bf16.mxu0 %v2434_v37 }
  0x7b   : > { %2275 = vmatpush3.bf16.msra.mxu1 %v2433_v33 }
  0x7c   : > { %2276 = vmatprep.subr.bf16.mxu1 %v2436_v38 }
  0x7d   : > { %2255 = vmatpush3.bf16.msra.mxu0 %v2435_v40 }
  0x7e   : > { %2256 = vmatprep.subr.bf16.mxu0 %v2438_v42 }
  0x7f   : > { %2277 = vmatpush3.bf16.msra.mxu1 %v2437_v39 }
  0x80   : > { %2278 = vmatprep.subr.bf16.mxu1 %v2440_v44 }
  0x81   : > { %2257 = vmatpush3.bf16.msra.mxu0 %v2439_v47 }
  0x82   : > { %2258 = vmatprep.subr.bf16.mxu0 %v2442_v48 }
  0x83   : > { %2279 = vmatpush3.bf16.msra.mxu1 %v2441_v45 }
  0x84   : > { %2280 = vmatprep.subr.bf16.mxu1 %v2444_v49 }
  0x85   : > { %2259 = vmatpush3.bf16.msra.mxu0 %v2443_v46 }
  0x86   : > { %2260 = vmatprep.subr.bf16.mxu0 %v2446_v51 }
  0x87   : > { %2281 = vmatpush3.bf16.msra.mxu1 %v2445_v50 }
  0x88   : > { %2282 = vmatprep.subr.bf16.mxu1 %v2448_v52 }
  0x89   : > { %2261 = vmatpush3.bf16.msra.mxu0 %v2447_v54 }
  0x8a   : > { %2290 = vmatprep.subr.bf16.mxu0 %v2450_v56 }
  0x8b   : > { %2283 = vmatpush3.bf16.msra.mxu1 %v2449_v53 }
  0x8c   : > { %1727 = vmatmul.mubr.bf16.vlgmr.msra.gmra.mxu0 %v2755_v36  ;;  %v2456_v36 = vld [vmem:[%s3030_s1 + $0x460] sm:$0xff]  }
  0x8d   : > { %2291 = vmatpush3.bf16.msra.mxu0 %v2451_v57  ;;  %1806 = vmatprep.mubr.bf16.mxu0 %v1139_v58 }
  0x8e   : > { %1767 = vmatmul.mubr.bf16.vlgmr.msra.gmra.mxu1 %v2858_v11  ;;  %2292 = vmatprep.subr.bf16.mxu0 %v2452_v59 }
  0x91   : > { %2293 = vmatpush3.bf16.msra.mxu0 %v2453_v60 }
  0x92   : > { %2294 = vmatprep.subr.bf16.mxu0 %v2454_v61 }
  0x95   : > { %2295 = vmatpush3.bf16.msra.mxu0 %v2455_v62 }
  0x96   : > { %2296 = vmatprep.subr.bf16.mxu0 %v2456_v36 }
  0x99   : > { %2297 = vmatpush3.bf16.msra.mxu0 %v2457_v63 }
  0x9a   : > { %2298 = vmatprep.subr.bf16.mxu0 %v2458_v0 }
  0x9d   : > { %2299 = vmatpush3.bf16.msra.mxu0 %v2459_v1 }
  0x9e   : > { %2300 = vmatprep.subr.bf16.mxu0 %v2460_v2 }
  0xa1   : > { %2301 = vmatpush3.bf16.msra.mxu0 %v2461_v3 }
  0xa2   : > { %2302 = vmatprep.subr.bf16.mxu0 %v2462_v4 }
  0xa5   : > { %2303 = vmatpush3.bf16.msra.mxu0 %v2463_v5 }
  0xa6   : > { %2304 = vmatprep.subr.bf16.mxu0 %v2464_v6 }
  0xa9   : > { %2305 = vmatpush3.bf16.msra.mxu0 %v2465_v7 }
  0xac   : > { %1807 = vmatmul.mubr.bf16.vlgmr.msra.gmra.mxu0 %v1138_v55 }
  0xec   : > { %v2130_v8 = vpop.f32.mrf.mxu0 }
  0xee   : > { %v2152_v9 = vpop.f32.mrf.mxu1  ;;  %v2131_v10 = vpop.f32.mrf.mxu0 }
  0xef   : > { %v2132_v34 = vadd.f32 %v2131_v10, %v2130_v8 }
  0xf0   : > { %v2153_v11 = vpop.f32.mrf.mxu1  ;;  %v2133_v13 = vpop.f32.mrf.mxu0 }
  0xf1   : > { %v2154_v12 = vadd.f32 %v2153_v11, %v2152_v9  ;;  %v432_v25 = vadd.f32 %v2132_v34, %v1958_v18 }
  0xf2   : > { %v2155_v14 = vpop.f32.mrf.mxu1  ;;  %v2134_v15 = vpop.f32.mrf.mxu0 }
  0xf3   : > { %v739_v21 = vadd.f32 %v2154_v12, %v1958_v18  ;;  %v1814_v30 = vmax.f32 %v432_v25, 0.0 }
  0xf4   : > { %v2156_v16 = vpop.f32.mrf.mxu1 }
 0x10c   : > { %v2174_v19 = vpop.f32.mrf.mxu0 }
 0x10e   : > { %v2196_v17 = vpop.f32.mrf.mxu1  ;;  %v2175_v23 = vpop.f32.mrf.mxu0 }
 0x10f   : > { %v2176_v43 = vadd.f32 %v2175_v23, %v2174_v19 }
 0x110   : > { %v2197_v20 = vpop.f32.mrf.mxu1  ;;  %v2177_v26 = vpop.f32.mrf.mxu0 }
 0x111   : > { %v2198_v22 = vadd.f32 %v2197_v20, %v2196_v17  ;;  %v779_v29 = vadd.f32 %v2176_v43, %v739_v21 }
 0x112   : > { %v2199_v24 = vpop.f32.mrf.mxu1  ;;  %v2178_v28 = vpop.f32.mrf.mxu0 }
 0x113   : > { %v1815_v31 = vmax.f32 %v779_v29, 0.0  ;;  %v1086_v45 = vadd.f32 %v2198_v22, %v1958_v18 }
 0x114   : > { %v2200_v27 = vpop.f32.mrf.mxu1 }
 0x115   : > { %v1822_v32 = vcombine.low %v1814_v30, %v1815_v31  ;;  %v1823_v33 = vcombine.high %v1814_v30, %v1815_v31  ;;  %v2103_v35 = vcombine.low %v1815_v31, %v1815_v31  ;;  %v2105_v37 = vcombine.high %v1815_v31, %v1815_v31 }
 0x117   : > { %v2107_v38 = vpack.c.bf16 %v2103_v35, %v1822_v32  ;;  %v2109_v39 = vpack.c.bf16 %v2105_v37, %v1823_v33 }
 0x119   : > { %v1862_v15 = vrot.slane %v2107_v38, %v2622_v41  ;;  %v1879_v16 = vrot.slane %v2109_v39, %v2622_v41 }
 0x12c   : > { %v2218_v42 = vpop.f32.mrf.mxu0 }
 0x12e   : > { %v2240_v40 = vpop.f32.mrf.mxu1  ;;  %v2219_v47 = vpop.f32.mrf.mxu0 }
 0x12f   : > { %v2220_v49 = vadd.f32 %v2219_v47, %v2218_v42 }
 0x130   : > { %v2241_v44 = vpop.f32.mrf.mxu1  ;;  %v2221_v50 = vpop.f32.mrf.mxu0 }
 0x131   : > { %v1126_v51 = vadd.f32 %v2220_v49, %v1086_v45  ;;  %v2242_v61 = vadd.f32 %v2241_v44, %v2240_v40 }
 0x132   : > { %v2243_v48 = vpop.f32.mrf.mxu1  ;;  %v2222_v52 = vpop.f32.mrf.mxu0 }
 0x133   : > { %v1689_v62 = vadd.f32 %v2242_v61, %v1958_v18  ;;  %v1816_v8 = vmax.f32 %v1126_v51, 0.0 }
 0x134   : > { %v2244_v46 = vpop.f32.mrf.mxu1 }
 0x14c   : > { %v2262_v54 = vpop.f32.mrf.mxu0 }
 0x14e   : > { %v2284_v53 = vpop.f32.mrf.mxu1  ;;  %v2263_v56 = vpop.f32.mrf.mxu0 }
 0x14f   : > { %v2264_v36 = vadd.f32 %v2263_v56, %v2262_v54 }
 0x150   : > { %v2285_v55 = vpop.f32.mrf.mxu1  ;;  %v2265_v58 = vpop.f32.mrf.mxu0 }
 0x151   : > { %v1729_v63 = vadd.f32 %v2264_v36, %v1689_v62  ;;  %v2286_v0 = vadd.f32 %v2285_v55, %v2284_v53 }
 0x152   : > { %v2287_v57 = vpop.f32.mrf.mxu1  ;;  %v2266_v60 = vpop.f32.mrf.mxu0 }
 0x153   : > { %v1769_v3 = vadd.f32 %v2286_v0, %v1729_v63 }
 0x154   : > { %v2288_v59 = vpop.f32.mrf.mxu1 }
 0x16c   : > { %v2306_v1 = vpop.f32.mrf.mxu0 }
 0x16e   : > { %v2307_v2 = vpop.f32.mrf.mxu0 }
 0x16f   : > { %v2308_v4 = vadd.f32 %v2307_v2, %v2306_v1 }
 0x170   : > { %v2309_v5 = vpop.f32.mrf.mxu0 }
 0x171   : > { %v1809_v6 = vadd.f32 %v2308_v4, %v1769_v3 }
 0x172   : > { %v2310_v7 = vpop.f32.mrf.mxu0 }
 0x173   : > { %v1817_v9 = vmax.f32 %v1809_v6, 0.0 }
 0x175   : > { %v1824_v10 = vcombine.low %v1816_v8, %v1817_v9  ;;  %v1825_v11 = vcombine.high %v1816_v8, %v1817_v9  ;;  %v2104_v34 = vcombine.low %v1817_v9, %v1817_v9  ;;  %v2106_v12 = vcombine.high %v1817_v9, %v1817_v9 }
 0x177   : > { %v2108_v13 = vpack.c.bf16 %v2104_v34, %v1824_v10  ;;  %v2110_v14 = vpack.c.bf16 %v2106_v12, %v1825_v11 }
 0x179   : > { %v1869_v17 = vrot.slane %v2108_v13, %v2622_v41  ;;  %v1886_v18 = vrot.slane %v2110_v14, %v2622_v41 }
 0x17b   : > { %v1870_v19 = vcombine.low %v1862_v15, %v1869_v17  ;;  %v1887_v20 = vcombine.low %v1879_v16, %v1886_v18 }
 0x17d   : > { %1890 = vst [vmem:[%s170_s15] sm:$0xff] %v1870_v19  ;;  %1891 = vst [vmem:[%s170_s15 + $0x8] sm:$0xff] %v1887_v20 }
 0x17e PF: > { %s13_s12 = sadd.s32 1, %s2472_s12  }
 0x17f   : > { %p10_p4 = scmp.ge.s32.totalorder %s13_s12, 6  }
 0x181   :  { %12 = sbr.rel (!%p10_p4) target bundleno = 1 (0x1), region = 62 }

// kernel: interpolation_model.10
= control target key start
LH: loop header
LB: loop body
LE: loop exit
PB: predicated region body
PF: predicated region fallthrough
CT: control target
= control target key end

     0   :  { %s1655_s12 = smov 0   ;;  %s2015_s0 = inlined_call_operand.vmem [shape: bf16[4,5,9,128], index: 0, kind: input, shape index: {}]   ;;  %s2016_s1 = inlined_call_operand.vmem [shape: bf16[1152,64], index: 1, kind: input, shape index: {}]   ;;  %s2017_s2 = inlined_call_operand.vmem [shape: f32[1,64], index: 2, kind: input, shape index: {}]   ;;  %s2018_s3 = inlined_call_operand.vmem [shape: bf16[4,4,8,256], index: 3, kind: output, shape index: {}]  }
   0x1 LB: > { %s1262_s13 = sadd.s32 4294967295, %s1632_s12   ;;  %p1266_p0 = scmp.ge.s32.totalorder %s1632_s12, 1  ;;  %s1632_s12 = sphi %s1655_s12, %s13_s12  }
   0x2   : > { %p137_p1 = scmp.lt.s32.totalorder %s1632_s12, 5 }
   0x4   : > { %p138_p2 = pnand %p1266_p0, %p137_p1 }
   0x5   : > { %p161_p3 = scmp.lt.s32.totalorder (!%p138_p2), %s1262_s13, 3  ;;  %s1634_s17 = smov (!%p138_p2), 64  }
   0x6   : > { %141 = sbr.rel (%p138_p2) target bundleno = 440 (0x1b8), region = 32 }
   0xb   : > { %v1550_v0 = vld [vmem:[%s2016_s1 + $0x38] sm:$0xff]   ;;  %v1553_v3 = vld [vmem:[%s2016_s1 + $0x30] sm:$0xff]   ;;  %v1556_v6 = vld [vmem:[%s2016_s1 + $0x28] sm:$0xff]   ;;  %s2022_s13 = smov (!%p161_p3, %s1262_s13), 3  ;;  %vm182_vm0 = vsmask.f32 3328 }
   0xc   : > { %v1551_v1 = vld [vmem:[%s2016_s1 + $0xb8] sm:$0xff]   ;;  %1484 = vmatprep.subr.bf16.mxu0 %v1550_v0  ;;  %v1554_v4 = vld [vmem:[%s2016_s1 + $0xb0] sm:$0xff]   ;;  %v1557_v7 = vld [vmem:[%s2016_s1 + $0xa8] sm:$0xff]   ;;  %s1520_s23 = smul.u32 40, %s2022_s13  ;;  %vm183_vm1 = vsmask.f32 7440 }
   0xd   : > { %v1552_v2 = vld [vmem:[%s2016_s1 + $0x78] sm:$0xff]   ;;  %1372 = vmatprep.subr.bf16.mxu1 %v1551_v1  ;;  %1485 = vmatpush3.bf16.msra.mxu0 %v1550_v0  ;;  %v1555_v5 = vld [vmem:[%s2016_s1 + $0x70] sm:$0xff]   ;;  %v1558_v8 = vld [vmem:[%s2016_s1 + $0x68] sm:$0xff]   ;;  %vm1162_vm3 = vcmask 523264   ;;  %s1357_s18 = sshll.u32 %s2022_s13, 5 }
   0xe   : > { %1373 = vmatpush3.bf16.msra.mxu1 %v1552_v2  ;;  %1486 = vmatprep.subr.bf16.mxu0 %v1553_v3  ;;  %v1559_v9 = vld [vmem:[%s2016_s1 + $0x20] sm:$0xff]   ;;  %v1562_v12 = vld [vmem:[%s2016_s1 + $0x18] sm:$0xff]   ;;  %v1565_v15 = vld [vmem:[%s2016_s1 + $0x10] sm:$0xff]   ;;  %s1733_s5 = scalar_lea.vmem %s2015_s0, %s1520_s23  ;;  %s170_s21 = scalar_lea.vmem %s2018_s3, %s1357_s18 }
   0xf   : > { %1374 = vmatprep.subr.bf16.mxu1 %v1554_v4  ;;  %v1560_v10 = vld [vmem:[%s2016_s1 + $0xa0] sm:$0xff]   ;;  %v1563_v13 = vld [vmem:[%s2016_s1 + $0x98] sm:$0xff]   ;;  %v1566_v16 = vld [vmem:[%s2016_s1 + $0x90] sm:$0xff]  }
  0x10   : > { %v1561_v11 = vld [vmem:[%s2016_s1 + $0x60] sm:$0xff]   ;;  %v1564_v14 = vld [vmem:[%s2016_s1 + $0x58] sm:$0xff]   ;;  %v1567_v17 = vld [vmem:[%s2016_s1 + $0x50] sm:$0xff]  }
  0x11   : > { %1487 = vmatpush3.bf16.msra.mxu0 %v1553_v3  ;;  %v1568_v18 = vld [vmem:[%s2016_s1 + $0x8] sm:$0xff]   ;;  %v1571_v21 = vld [vmem:[%s2016_s1] sm:$0xff]   ;;  %v176_v28 = vld [vmem:[%s1733_s5 + $0x10] sm:$0xf] }
  0x12   : > { %1375 = vmatpush3.bf16.msra.mxu1 %v1555_v5  ;;  %1488 = vmatprep.subr.bf16.mxu0 %v1556_v6  ;;  %v1569_v19 = vld [vmem:[%s2016_s1 + $0x88] sm:$0xff]   ;;  %v1572_v22 = vld [vmem:[%s2016_s1 + $0x80] sm:$0xff]   ;;  %v177_v29 = vld [vmem:[%s1733_s5 + $0x14] sm:$0x1]  ;;  %v214_v40 = vshrl.u32 %v176_v28, 16  ;;  %v217_v41 = vshll.u32 %v176_v28, 16 }
  0x13   : > { %1376 = vmatprep.subr.bf16.mxu1 %v1557_v7  ;;  %v1570_v20 = vld [vmem:[%s2016_s1 + $0x48] sm:$0xff]   ;;  %v172_v23 = vld [vmem:[%s1733_s5] sm:$0xf]  ;;  %v173_v25 = vld [vmem:[%s1733_s5 + $0x4] sm:$0x1]  ;;  %v223_v49 = vshll.u32 %v177_v29, 16 }
  0x14   : > { %v174_v24 = vld [vmem:[%s1733_s5 + $0x8] sm:$0xf]  ;;  %v175_v27 = vld [vmem:[%s1733_s5 + $0xc] sm:$0x1]  ;;  %v1573_v30 = vld [vmem:[%s2016_s1 + $0x40] sm:$0xff]   ;;  %v186_v31 = vshrl.u32 %v172_v23, 16 }
  0x15   : > { %1489 = vmatpush3.bf16.msra.mxu0 %v1556_v6  ;;  %v1747_v26 = vcombine.low %v172_v23, %v174_v24  ;;  %v189_v32 = vshll.u32 %v172_v23, 16  ;;  %v195_v33 = vshll.u32 %v173_v25, 16  ;;  %v200_v34 = vshrl.u32 %v174_v24, 16  ;;  %v1757_v37 = vld [vmem:[%s1733_s5 + $0x18] sm:$0xf]  ;;  %vm1761_vm2 = vmor %vm182_vm0, %vm183_vm1  ;;  %v1580_v61 = vld [vmem:[%s2016_s1 + $0x130] sm:$0xff]  }
  0x16   : > { %1377 = vmatpush3.bf16.msra.mxu1 %v1558_v8  ;;  %1490 = vmatprep.subr.bf16.mxu0 %v1559_v9  ;;  %v203_v35 = vshll.u32 %v174_v24, 16  ;;  %v209_v36 = vshll.u32 %v175_v27, 16  ;;  %v188_v38 = vrot.slane %v186_v31, 4  ;;  %v216_v47 = vrot.slane %v214_v40, 4  ;;  %v1576_v50 = vld [vmem:[%s2016_s1 + $0x138] sm:$0xff]   ;;  %v1581_v2 = vld [vmem:[%s2016_s1 + $0x1b0] sm:$0xff]  }
  0x17   : > { %1378 = vmatprep.subr.bf16.mxu1 %v1560_v10  ;;  %1500 = vmatprep.mubr.bf16.mxu0 %v1747_v26  ;;  %v191_v39 = vrot.slane %v189_v32, 5  ;;  %v197_v42 = vrot.slane %v195_v33, 5  ;;  %v202_v43 = vrot.slane %v200_v34, 4  ;;  %v219_v48 = vrot.slane %v217_v41, 5  ;;  %v1577_v54 = vld [vmem:[%s2016_s1 + $0x1b8] sm:$0xff]   ;;  %v1582_v5 = vld [vmem:[%s2016_s1 + $0xf0] sm:$0xff]  }
  0x18   : > { %v205_v44 = vrot.slane %v203_v35, 5  ;;  %v211_v52 = vrot.slane %v209_v36, 5  ;;  %v1769_v53 = vcombine.low %v176_v28, %v1757_v37  ;;  %v1774_v55 = vcombine.low %v174_v24, %v176_v28  ;;  %v1578_v58 = vld [vmem:[%s2016_s1 + $0xf8] sm:$0xff]   ;;  %v1584_v10 = vld [vmem:[%s2016_s1 + $0x128] sm:$0xff]   ;;  %v1589_v23 = vld [vmem:[%s2016_s1 + $0x1a0] sm:$0xff]  }
  0x19   : > { %1491 = vmatpush3.bf16.msra.mxu0 %v1559_v9  ;;  %v192_v46 = vor.u32 %v191_v39, %v188_v38  ;;  %v220_v57 = vor.u32 %v219_v48, %v216_v47  ;;  %v228_v59 = vshrl.u32 %v1757_v37, 16  ;;  %v225_v63 = vrot.slane %v223_v49, 5  ;;  %v1579_v0 = vld [vmem:[%s2016_s1 + $0x178] sm:$0xff]   ;;  %v1591_v27 = vld [vmem:[%s2016_s1 + $0x160] sm:$0xff]   ;;  %v1598_v32 = vld [vmem:[%s2016_s1 + $0xd0] sm:$0xff]  }
  0x1a   : > { %1379 = vmatpush3.bf16.msra.mxu1 %v1561_v11  ;;  %1492 = vmatprep.subr.bf16.mxu0 %v1562_v12  ;;  %v206_v51 = vor.u32 %v205_v44, %v202_v43  ;;  %v179_v6 = vld [vmem:[%s1733_s5 + $0x1c] sm:$0x1]  ;;  %v231_v8 = vshll.u32 %v1757_v37, 16  ;;  %v1583_v11 = vld [vmem:[%s2016_s1 + $0x170] sm:$0xff]   ;;  %v1600_v34 = vld [vmem:[%s2016_s1 + $0x108] sm:$0xff]  }
  0x1b   : > { %1380 = vmatprep.subr.bf16.mxu1 %v1563_v13  ;;  %v193_v56 = vrot.slane %v192_v46, 4  ;;  %v221_v3 = vrot.slane %v220_v57, 4  ;;  %v230_v7 = vrot.slane %v228_v59, 4  ;;  %v237_v9 = vshll.u32 %v179_v6, 16  ;;  %v1586_v13 = vld [vmem:[%s2016_s1 + $0xe8] sm:$0xff]   ;;  %v1592_v25 = vld [vmem:[%s2016_s1 + $0x118] sm:$0xff]  }
  0x1c   : > { %v207_v60 = vrot.slane %v206_v51, 4  ;;  %v1594_v28 = vld [vmem:[%s2016_s1 + $0xd8] sm:$0xff]   ;;  %v1597_v33 = vld [vmem:[%s2016_s1 + $0x190] sm:$0xff]   ;;  %v1602_v36 = vld [vmem:[%s2016_s1 + $0xc8] sm:$0xff]  }
  0x1d   : > { %1493 = vmatpush3.bf16.msra.mxu0 %v1562_v12  ;;  %v198_v62 = vsel %vm1761_vm2, %v193_v56, %v197_v42  ;;  %v233_v12 = vrot.slane %v231_v8, 5  ;;  %v1593_v29 = vld [vmem:[%s2016_s1 + $0x198] sm:$0xff]   ;;  %v1599_v35 = vld [vmem:[%s2016_s1 + $0x150] sm:$0xff]   ;;  %v1601_v38 = vld [vmem:[%s2016_s1 + $0x188] sm:$0xff]  }
  0x1e   : > { %1381 = vmatpush3.bf16.msra.mxu1 %v1564_v14  ;;  %1494 = vmatprep.subr.bf16.mxu0 %v1565_v15  ;;  %v1791_v1 = vsel %vm1761_vm2, %v207_v60, %v211_v52  ;;  %v1595_v31 = vld [vmem:[%s2016_s1 + $0x158] sm:$0xff]   ;;  %v1604_v39 = vld [vmem:[%s2016_s1 + $0x100] sm:$0xff]   ;;  %v1603_v40 = vld [vmem:[%s2016_s1 + $0x148] sm:$0xff]  }
  0x1f   : > { %1382 = vmatprep.subr.bf16.mxu1 %v1566_v16  ;;  %v1281_v4 = vcombine.low %v198_v62, %v1791_v1  ;;  %v234_v14 = vor.u32 %v233_v12, %v230_v7  ;;  %v1585_v16 = vld [vmem:[%s2016_s1 + $0x1a8] sm:$0xff]   ;;  %v1606_v41 = vld [vmem:[%s2016_s1 + $0xc0] sm:$0xff]   ;;  %v1609_v44 = vld [vmem:[%s2016_s1 + $0x238] sm:$0xff]  }
  0x20   : > { %v1605_v42 = vld [vmem:[%s2016_s1 + $0x180] sm:$0xff]   ;;  %v1610_v46 = vld [vmem:[%s2016_s1 + $0x1f8] sm:$0xff]   ;;  %v1611_v47 = vld [vmem:[%s2016_s1 + $0x230] sm:$0xff]  }
  0x21   : > { %1495 = vmatpush3.bf16.msra.mxu0 %v1565_v15  ;;  %555 = vmatprep.mubr.bf16.mxu1 %v1281_v4  ;;  %v239_v15 = vrot.slane %v237_v9, 5  ;;  %v1607_v43 = vld [vmem:[%s2016_s1 + $0x140] sm:$0xff]   ;;  %v1612_v48 = vld [vmem:[%s2016_s1 + $0x1f0] sm:$0xff]   ;;  %v1613_v49 = vld [vmem:[%s2016_s1 + $0x228] sm:$0xff]  }
  0x22   : > { %1383 = vmatpush3.bf16.msra.mxu1 %v1567_v17  ;;  %1496 = vmatprep.subr.bf16.mxu0 %v1568_v18  ;;  %v1588_v17 = vld [vmem:[%s2016_s1 + $0x120] sm:$0xff]   ;;  %v1623_v7 = vld [vmem:[%s2016_s1 + $0x1c8] sm:$0xff]  }
  0x23   : > { %1384 = vmatprep.subr.bf16.mxu1 %v1569_v19  ;;  %v235_v19 = vrot.slane %v234_v14, 4  ;;  %v180_v51 = vld [vmem:[%s1733_s5 + $0x20] sm:$0xf]  ;;  %v181_v62 = vld [vmem:[%s1733_s5 + $0x24] sm:$0x1] }
  0x24   : > { %v1615_v52 = vld [vmem:[%s2016_s1 + $0x220] sm:$0xff]   ;;  %v245_v56 = vshll.u32 %v180_v51, 16  ;;  %v1300_v57 = vcombine.low %v1757_v37, %v180_v51  ;;  %v1617_v37 = vld [vmem:[%s2016_s1 + $0x218] sm:$0xff]  }
  0x25   : > { %1497 = vmatpush3.bf16.msra.mxu0 %v1568_v18  ;;  %v1821_v18 = vsel %vm1761_vm2, %v221_v3, %v225_v63  ;;  %v1619_v63 = vld [vmem:[%s2016_s1 + $0x1d8] sm:$0xff]   ;;  %v1624_v45 = vld [vmem:[%s2016_s1 + $0x200] sm:$0xff]  }
  0x26   : > { %1385 = vmatpush3.bf16.msra.mxu1 %v1570_v20  ;;  %1498 = vmatprep.subr.bf16.mxu0 %v1571_v21  ;;  %v1587_v20 = vld [vmem:[%s2016_s1 + $0x168] sm:$0xff]   ;;  %v247_v60 = vrot.slane %v245_v56, 5  ;;  %v1625_v8 = vld [vmem:[%s2016_s1 + $0x1c0] sm:$0xff]  }
  0x27   : > { %1386 = vmatprep.subr.bf16.mxu1 %v1572_v22  ;;  %v1831_v22 = vsel %vm1761_vm2, %v235_v19, %v239_v15  ;;  %v1954_v9 = vld [vmem:[%s2017_s2] ss:$0 sm:$0xff] }
  0x28   : > { %v1282_v24 = vcombine.low %v1821_v18, %v1831_v22 }
  0x29   : > { %1499 = vmatpush3.bf16.msra.mxu0 %v1571_v21  ;;  %v1590_v21 = vld [vmem:[%s2016_s1 + $0xe0] sm:$0xff]  }
  0x2a   : > { %1387 = vmatpush3.bf16.msra.mxu1 %v1573_v30  ;;  %1400 = vmatprep.subr.bf16.mxu0 %v1576_v50  ;;  %v1596_v30 = vld [vmem:[%s2016_s1 + $0x110] sm:$0xff]   ;;  %v1614_v50 = vld [vmem:[%s2016_s1 + $0x1e8] sm:$0xff]  }
  0x2b   : > { %1428 = vmatprep.subr.bf16.mxu1 %v1577_v54  ;;  %v242_v54 = vshrl.u32 %v180_v51, 16 }
  0x2c   : > { %1501 = vmatmul.mubr.bf16.vlgmr.msra.gmra.mxu0 %v1769_v53 }
  0x2d   : > { %1401 = vmatpush3.bf16.msra.mxu0 %v1578_v58  ;;  %738 = vmatprep.mubr.bf16.mxu0 %v1774_v55  ;;  %v1317_v58 = vcombine.low %v1791_v1, %v1821_v18  ;;  %v244_v59 = vrot.slane %v242_v54, 4  ;;  %v251_v1 = vshll.u32 %v181_v62, 16 }
  0x2e   : > { %1402 = vmatprep.subr.bf16.mxu0 %v1580_v61  ;;  %556 = vmatmul.mubr.bf16.vlgmr.msra.gmra.mxu1 %v1747_v26 }
  0x2f   : > { %1429 = vmatpush3.bf16.msra.mxu1 %v1579_v0  ;;  %563 = vmatprep.mubr.bf16.mxu1 %v1282_v24  ;;  %v248_v61 = vor.u32 %v247_v60, %v244_v59  ;;  %v253_v3 = vrot.slane %v251_v1, 5 }
  0x30   : > { %1430 = vmatprep.subr.bf16.mxu1 %v1581_v2  ;;  %v1620_v2 = vld [vmem:[%s2016_s1 + $0x210] sm:$0xff]  }
  0x31   : > { %1403 = vmatpush3.bf16.msra.mxu0 %v1582_v5  ;;  %v249_v0 = vrot.slane %v248_v61, 4 }
  0x32   : > { %1404 = vmatprep.subr.bf16.mxu0 %v1584_v10 }
  0x33   : > { %1431 = vmatpush3.bf16.msra.mxu1 %v1583_v11  ;;  %v254_v5 = vsel %vm1761_vm2, %v249_v0, %v253_v3 }
  0x34   : > { %1432 = vmatprep.subr.bf16.mxu1 %v1585_v16  ;;  %v1318_v6 = vcombine.low %v1831_v22, %v254_v5 }
  0x35   : > { %1405 = vmatpush3.bf16.msra.mxu0 %v1586_v13 }
  0x36   : > { %1406 = vmatprep.subr.bf16.mxu0 %v1588_v17  ;;  %564 = vmatmul.mubr.bf16.gmra.mxu1 %v1769_v53 }
  0x37   : > { %1433 = vmatpush3.bf16.msra.mxu1 %v1587_v20  ;;  %1048 = vmatprep.mubr.bf16.mxu1 %v1281_v4  ;;  %v1621_v4 = vld [vmem:[%s2016_s1 + $0x1d0] sm:$0xff]  }
  0x38   : > { %1434 = vmatprep.subr.bf16.mxu1 %v1589_v23 }
  0x39   : > { %1407 = vmatpush3.bf16.msra.mxu0 %v1590_v21 }
  0x3a   : > { %1408 = vmatprep.subr.bf16.mxu0 %v1592_v25 }
  0x3b   : > { %1435 = vmatpush3.bf16.msra.mxu1 %v1591_v27 }
  0x3c   : > { %1436 = vmatprep.subr.bf16.mxu1 %v1593_v29 }
  0x3d   : > { %1409 = vmatpush3.bf16.msra.mxu0 %v1594_v28 }
  0x3e   : > { %1410 = vmatprep.subr.bf16.mxu0 %v1596_v30 }
  0x3f   : > { %1437 = vmatpush3.bf16.msra.mxu1 %v1595_v31 }
  0x40   : > { %1438 = vmatprep.subr.bf16.mxu1 %v1597_v33 }
  0x41   : > { %1411 = vmatpush3.bf16.msra.mxu0 %v1598_v32 }
  0x42   : > { %1412 = vmatprep.subr.bf16.mxu0 %v1600_v34 }
  0x43   : > { %1439 = vmatpush3.bf16.msra.mxu1 %v1599_v35 }
  0x44   : > { %1440 = vmatprep.subr.bf16.mxu1 %v1601_v38 }
  0x45   : > { %1413 = vmatpush3.bf16.msra.mxu0 %v1602_v36 }
  0x46   : > { %1414 = vmatprep.subr.bf16.mxu0 %v1604_v39 }
  0x47   : > { %1441 = vmatpush3.bf16.msra.mxu1 %v1603_v40 }
  0x48   : > { %1442 = vmatprep.subr.bf16.mxu1 %v1605_v42 }
  0x49   : > { %1415 = vmatpush3.bf16.msra.mxu0 %v1606_v41 }
  0x4a   : > { %1456 = vmatprep.subr.bf16.mxu0 %v1609_v44 }
  0x4b   : > { %1443 = vmatpush3.bf16.msra.mxu1 %v1607_v43 }
  0x4c   : > { %739 = vmatmul.mubr.bf16.vlgmr.msra.gmra.mxu0 %v1747_v26  ;;  %1504 = vmatprep.subr.bf16.mxu1 %v1609_v44 }
  0x4d   : > { %1457 = vmatpush3.bf16.msra.mxu0 %v1610_v46  ;;  %746 = vmatprep.mubr.bf16.mxu0 %v1300_v57 }
  0x4e   : > { %1458 = vmatprep.subr.bf16.mxu0 %v1611_v47  ;;  %1049 = vmatmul.mubr.bf16.vlgmr.msra.gmra.mxu1 %v1747_v26  ;;  %v1616_v26 = vld [vmem:[%s2016_s1 + $0x1e0] sm:$0xff]  }
  0x4f   : > { %1512 = vmatpush3.bf16.msra.mxu1 %v1610_v46  ;;  %1056 = vmatprep.mubr.bf16.mxu1 %v1282_v24 }
  0x50   : > { %1505 = vmatprep.subr.bf16.mxu1 %v1611_v47 }
  0x51   : > { %1459 = vmatpush3.bf16.msra.mxu0 %v1612_v48 }
  0x52   : > { %1460 = vmatprep.subr.bf16.mxu0 %v1613_v49 }
  0x53   : > { %1513 = vmatpush3.bf16.msra.mxu1 %v1612_v48 }
  0x54   : > { %1506 = vmatprep.subr.bf16.mxu1 %v1613_v49  ;;  %747 = vmatmul.mubr.bf16.gmra.mxu0 %v1769_v53 }
  0x55   : > { %1461 = vmatpush3.bf16.msra.mxu0 %v1614_v50  ;;  %1097 = vmatprep.mubr.bf16.mxu0 %v1317_v58 }
  0x56   : > { %1462 = vmatprep.subr.bf16.mxu0 %v1615_v52  ;;  %1057 = vmatmul.mubr.bf16.gmra.mxu1 %v1769_v53  ;;  %v1622_v53 = vld [vmem:[%s2016_s1 + $0x208] sm:$0xff]  }
  0x57   : > { %1514 = vmatpush3.bf16.msra.mxu1 %v1614_v50  ;;  %1105 = vmatprep.mubr.bf16.mxu1 %v1318_v6 }
  0x58   : > { %1507 = vmatprep.subr.bf16.mxu1 %v1615_v52 }
  0x59   : > { %1463 = vmatpush3.bf16.msra.mxu0 %v1616_v26 }
  0x5a   : > { %1464 = vmatprep.subr.bf16.mxu0 %v1617_v37 }
  0x5b   : > { %1515 = vmatpush3.bf16.msra.mxu1 %v1616_v26 }
  0x5c   : > { %1508 = vmatprep.subr.bf16.mxu1 %v1617_v37 }
  0x5d   : > { %1465 = vmatpush3.bf16.msra.mxu0 %v1619_v63 }
  0x5e   : > { %1466 = vmatprep.subr.bf16.mxu0 %v1620_v2 }
  0x5f   : > { %1516 = vmatpush3.bf16.msra.mxu1 %v1619_v63 }
  0x60   : > { %1509 = vmatprep.subr.bf16.mxu1 %v1620_v2 }
  0x61   : > { %1467 = vmatpush3.bf16.msra.mxu0 %v1621_v4 }
  0x62   : > { %1468 = vmatprep.subr.bf16.mxu0 %v1622_v53 }
  0x63   : > { %1517 = vmatpush3.bf16.msra.mxu1 %v1621_v4 }
  0x64   : > { %1510 = vmatprep.subr.bf16.mxu1 %v1622_v53 }
  0x65   : > { %1469 = vmatpush3.bf16.msra.mxu0 %v1623_v7 }
  0x66   : > { %1470 = vmatprep.subr.bf16.mxu0 %v1624_v45 }
  0x67   : > { %1518 = vmatpush3.bf16.msra.mxu1 %v1623_v7 }
  0x68   : > { %1511 = vmatprep.subr.bf16.mxu1 %v1624_v45 }
  0x69   : > { %1471 = vmatpush3.bf16.msra.mxu0 %v1625_v8 }
  0x6b   : > { %1519 = vmatpush3.bf16.msra.mxu1 %v1625_v8 }
  0x6c   : > { %1098 = vmatmul.mubr.bf16.vlgmr.msra.gmra.mxu0 %v1774_v55 }
  0x6e   : > { %1106 = vmatmul.mubr.bf16.vlgmr.msra.gmra.mxu1 %v1300_v57 }
  0xec   : > { %v1502_v10 = vpop.f32.mrf.mxu0 }
  0xed   : > { %v1957_v11 = vadd.f32 %v1502_v10, %v1954_v9 }
  0xee   : > { %v372_v12 = vpop.f32.mrf.mxu0  ;;  %v1388_v15 = vpop.f32.mrf.mxu1 }
  0xef   : > { %v1960_v13 = vadd.f32 %v1954_v9, %v372_v12 }
  0xf0   : > { %v1503_v14 = vpop.f32.mrf.mxu0  ;;  %v1389_v17 = vpop.f32.mrf.mxu1 }
  0xf1   : > { %v1963_v16 = vadd.f32 %v1503_v14, %v1954_v9  ;;  %v1390_v19 = vadd.f32 %v1389_v17, %v1388_v15 }
  0xf2   : > { %v375_v55 = vpop.f32.mrf.mxu0  ;;  %v1391_v20 = vpop.f32.mrf.mxu1 }
  0xf3   : > { %v1966_v18 = vadd.f32 %v1954_v9, %v375_v55  ;;  %v558_v21 = vadd.f32 %v1390_v19, %v1954_v9 }
  0xf4   : > { %v1392_v22 = vpop.f32.mrf.mxu1 }
  0xf5   : > { %v1393_v23 = vadd.f32 %v1392_v22, %v1391_v20  ;;  %v1118_v24 = vmax.f32 %v558_v21, 0.0 }
  0xf6   : > { %v1394_v27 = vpop.f32.mrf.mxu1 }
  0xf7   : > { %v561_v25 = vadd.f32 %v1393_v23, %v1954_v9 }
  0xf8   : > { %v1395_v29 = vpop.f32.mrf.mxu1 }
  0xf9   : > { %v1119_v28 = vmax.f32 %v561_v25, 0.0  ;;  %v1396_v30 = vadd.f32 %v1395_v29, %v1394_v27 }
  0xfa   : > { %v1397_v32 = vpop.f32.mrf.mxu1 }
  0xfb   : > { %v1530_v31 = vpack.i.bf16 %v1119_v28, %v1118_v24  ;;  %v566_v33 = vadd.f32 %v1396_v30, %v1954_v9 }
  0xfc   : > { %v1398_v34 = vpop.f32.mrf.mxu1 }
  0xfd   : > { %1531 = vrot.lane.b32.xlu0 %v1530_v31, %s1634_s17  ;;  %v1399_v35 = vadd.f32 %v1398_v34, %v1397_v32  ;;  %v1120_v36 = vmax.f32 %v566_v33, 0.0 }
  0xff   : > { %v569_v38 = vadd.f32 %v1399_v35, %v1954_v9 }
 0x101   : > { %v1121_v39 = vmax.f32 %v569_v38, 0.0 }
 0x103   : > { %v1535_v40 = vpack.i.bf16 %v1121_v39, %v1120_v36  ;;  %v1114_v39 = vmax.f32 %v1960_v13, 0.0 }
 0x105   : > { %1536 = vrot.lane.b32.xlu0 %v1535_v40, %s1634_s17  ;;  %v1115_v40 = vmax.f32 %v1966_v18, 0.0 }
 0x10c   : > { %v1416_v41 = vpop.f32.mrf.mxu0 }
 0x10e   : > { %v1417_v42 = vpop.f32.mrf.mxu0  ;;  %v1444_v49 = vpop.f32.mrf.mxu1 }
 0x10f   : > { %v1418_v43 = vadd.f32 %v1417_v42, %v1416_v41 }
 0x110   : > { %v1419_v44 = vpop.f32.mrf.mxu0  ;;  %v1445_v52 = vpop.f32.mrf.mxu1 }
 0x111   : > { %v1975_v46 = vadd.f32 %v1418_v43, %v1954_v9  ;;  %v1446_v2 = vadd.f32 %v1445_v52, %v1444_v49 }
 0x112   : > { %v1420_v47 = vpop.f32.mrf.mxu0  ;;  %v1447_v26 = vpop.f32.mrf.mxu1 }
 0x113   : > { %v1421_v48 = vadd.f32 %v1420_v47, %v1419_v44  ;;  %v1051_v7 = vadd.f32 %v1446_v2, %v1954_v9  ;;  %v1122_v41 = vmax.f32 %v1975_v46, 0.0 }
 0x114   : > { %v1422_v51 = vpop.f32.mrf.mxu0  ;;  %v1448_v61 = vpop.f32.mrf.mxu1 }
 0x115   : > { %v1978_v50 = vadd.f32 %v1421_v48, %v1954_v9  ;;  %v1449_v4 = vadd.f32 %v1448_v61, %v1447_v26 }
 0x116   : > { %v1423_v54 = vpop.f32.mrf.mxu0  ;;  %v1450_v62 = vpop.f32.mrf.mxu1 }
 0x117   : > { %v1424_v56 = vadd.f32 %v1423_v54, %v1422_v51  ;;  %v1054_v12 = vadd.f32 %v1449_v4, %v1954_v9  ;;  %v1123_v42 = vmax.f32 %v1978_v50, 0.0  ;;  %v1116_v50 = vmax.f32 %v1957_v11, 0.0 }
 0x118   : > { %v1425_v57 = vpop.f32.mrf.mxu0  ;;  %v1451_v63 = vpop.f32.mrf.mxu1 }
 0x119   : > { %v1981_v58 = vadd.f32 %v1424_v56, %v1954_v9  ;;  %v1452_v8 = vadd.f32 %v1451_v63, %v1450_v62  ;;  %v1117_v56 = vmax.f32 %v1963_v16, 0.0 }
 0x11a   : > { %v1426_v59 = vpop.f32.mrf.mxu0  ;;  %v1453_v0 = vpop.f32.mrf.mxu1 }
 0x11b   : > { %v1427_v60 = vadd.f32 %v1426_v59, %v1425_v57  ;;  %v1059_v22 = vadd.f32 %v1452_v8, %v1954_v9  ;;  %v1124_v26 = vmax.f32 %v1981_v58, 0.0 }
 0x11c   : > { %v1454_v5 = vpop.f32.mrf.mxu1 }
 0x11d   : > { %v1984_v37 = vadd.f32 %v1427_v60, %v1954_v9  ;;  %v1455_v17 = vadd.f32 %v1454_v5, %v1453_v0 }
 0x11f   : > { %v1062_v27 = vadd.f32 %v1455_v17, %v1954_v9  ;;  %v1125_v59 = vmax.f32 %v1984_v37, 0.0 }
 0x12c   : > { %v1472_v1 = vpop.f32.mrf.mxu0 }
 0x12e   : > { %v1473_v3 = vpop.f32.mrf.mxu0  ;;  %v1478_v45 = vpop.f32.mrf.mxu1 }
 0x12f   : > { %v1474_v53 = vadd.f32 %v1473_v3, %v1472_v1 }
 0x130   : > { %v1475_v6 = vpop.f32.mrf.mxu0  ;;  %v1479_v15 = vpop.f32.mrf.mxu1 }
 0x131   : > { %v1100_v14 = vadd.f32 %v1474_v53, %v1051_v7  ;;  %v1480_v19 = vadd.f32 %v1479_v15, %v1478_v45 }
 0x132   : > { %v1476_v10 = vpop.f32.mrf.mxu0  ;;  %v1481_v20 = vpop.f32.mrf.mxu1 }
 0x133   : > { %v1477_v55 = vadd.f32 %v1476_v10, %v1475_v6  ;;  %v1126_v23 = vmax.f32 %v1100_v14, 0.0  ;;  %v1108_v28 = vadd.f32 %v1480_v19, %v1059_v22 }
 0x134   : > { %v1482_v25 = vpop.f32.mrf.mxu1 }
 0x135   : > { %v1103_v21 = vadd.f32 %v1477_v55, %v1054_v12  ;;  %v1483_v29 = vadd.f32 %v1482_v25, %v1481_v20  ;;  %v1128_v32 = vmax.f32 %v1108_v28, 0.0 }
 0x137   : > { %v1127_v24 = vmax.f32 %v1103_v21, 0.0  ;;  %v1111_v31 = vadd.f32 %v1483_v29, %v1062_v27 }
 0x139   : > { %v1540_v30 = vpack.i.bf16 %v1127_v24, %v1126_v23  ;;  %v1129_v33 = vmax.f32 %v1111_v31, 0.0 }
 0x13b   : > { %1541 = vrot.lane.b32.xlu1 %v1540_v30, %s1634_s17  ;;  %v1545_v34 = vpack.i.bf16 %v1129_v33, %v1128_v32 }
 0x13f   : > { %1546 = vrot.lane.b32.xlu1 %v1545_v34, %s1634_s17 }
 0x16f   : > { %v1532_v35 = vpop.permute.xlu0 %1531 }
 0x170   : > { %v1534_v36 = vunpack.i.h.bf16 %v1532_v35  ;;  %v1533_v38 = vunpack.i.l.bf16 %v1532_v35 }
 0x172   : > { %v1164_v48 = vsel %vm1162_vm3, %v1115_v40, %v1534_v36  ;;  %v1163_v49 = vsel %vm1162_vm3, %v1114_v39, %v1533_v38 }
 0x177   : > { %v1537_v43 = vpop.permute.xlu0 %1536 }
 0x178   : > { %v1539_v51 = vunpack.i.h.bf16 %v1537_v43  ;;  %v1538_v52 = vunpack.i.l.bf16 %v1537_v43 }
 0x17a   : > { %v1166_v62 = vsel %vm1162_vm3, %v1117_v56, %v1539_v51  ;;  %v1165_v63 = vsel %vm1162_vm3, %v1116_v50, %v1538_v52 }
 0x1ad   : > { %v1542_v9 = vpop.permute.xlu1 %1541 }
 0x1ae   : > { %v1544_v44 = vunpack.i.h.bf16 %v1542_v9  ;;  %v1543_v47 = vunpack.i.l.bf16 %v1542_v9 }
 0x1b0   : > { %v1168_v13 = vsel %vm1162_vm3, %v1123_v42, %v1544_v44  ;;  %v1167_v18 = vsel %vm1162_vm3, %v1122_v41, %v1543_v47 }
 0x1b1   : > { %v1358_v46 = vpack.c.bf16 %v1167_v18, %v1163_v49  ;;  %v1359_v54 = vpack.c.bf16 %v1168_v13, %v1164_v48  ;;  %v1547_v57 = vpop.permute.xlu1 %1546 }
 0x1b2   : > { %v1549_v60 = vunpack.i.h.bf16 %v1547_v57  ;;  %v1548_v61 = vunpack.i.l.bf16 %v1547_v57 }
 0x1b3   : > { %1203 = vst [vmem:[%s170_s21] sm:$0xff] %v1358_v46  ;;  %1204 = vst [vmem:[%s170_s21 + $0x8] sm:$0xff] %v1359_v54 }
 0x1b4   : > { %v1170_v0 = vsel %vm1162_vm3, %v1125_v59, %v1549_v60  ;;  %v1169_v1 = vsel %vm1162_vm3, %v1124_v26, %v1548_v61 }
 0x1b5   : > { %v1360_v11 = vpack.c.bf16 %v1169_v1, %v1165_v63  ;;  %v1361_v2 = vpack.c.bf16 %v1170_v0, %v1166_v62 }
 0x1b7   : > { %1205 = vst [vmem:[%s170_s21 + $0x10] sm:$0xff] %v1360_v11  ;;  %1206 = vst [vmem:[%s170_s21 + $0x18] sm:$0xff] %v1361_v2 }
 0x1b8 PF: > { %s13_s12 = sadd.s32 1, %s1632_s12  }
 0x1b9   : > { %p10_p4 = scmp.ge.s32.totalorder %s13_s12, 6  }
 0x1bb   :  { %12 = sbr.rel (!%p10_p4) target bundleno = 1 (0x1), region = 62 }

// kernel: interpolation_model.11
= control target key start
LH: loop header
LB: loop body
LE: loop exit
PB: predicated region body
PF: predicated region fallthrough
CT: control target
= control target key end

     0   :  { %s2010_s12 = smov 0   ;;  %s2768_s0 = inlined_call_operand.vmem [shape: bf16[4,10,18,64], index: 0, kind: input, shape index: {}]   ;;  %s2769_s1 = inlined_call_operand.vmem [shape: bf16[576,3], index: 1, kind: input, shape index: {}]   ;;  %s2770_s2 = inlined_call_operand.vmem [shape: f32[1,3], index: 2, kind: input, shape index: {}]   ;;  %s2771_s3 = inlined_call_operand.vmem [shape: f32[4,3,128], index: 3, kind: output, shape index: {}]  }
   0x1 LB: > { %s1579_s13 = sadd.s32 4294967295, %s1987_s12   ;;  %p1583_p0 = scmp.ge.s32.totalorder %s1987_s12, 1  ;;  %s1987_s12 = sphi %s2010_s12, %s13_s12  }
   0x2   : > { %p137_p1 = scmp.lt.s32.totalorder %s1987_s12, 5 }
   0x4   : > { %p138_p2 = pnand %p1583_p0, %p137_p1 }
   0x6   : > { %141 = sbr.rel (%p138_p2) target bundleno = 568 (0x238), region = 32 }
   0xb   : > { %p160_p3 = scmp.lt.s32.totalorder %s1579_s13, 3  ;;  %v1879_v0 = vld [vmem:[%s2769_s1 + $0x78] sm:$0xff]   ;;  %v1881_v2 = vld [vmem:[%s2769_s1 + $0x70] sm:$0xff]   ;;  %vm200_vm0 = vsmask.f32 3328  ;;  %v1883_v4 = vld [vmem:[%s2769_s1 + $0x68] sm:$0xff]  }
   0xc   : > { %v1880_v1 = vld [vmem:[%s2769_s1 + $0x38] sm:$0xff]   ;;  %1689 = vmatprep.subr.bf16.mxu0 %v1879_v0  ;;  %vm201_vm1 = vsmask.f32 7440  ;;  %v1882_v3 = vld [vmem:[%s2769_s1 + $0x30] sm:$0xff]   ;;  %v1884_v13 = vld [vmem:[%s2769_s1 + $0x28] sm:$0xff]   ;;  %s1989_s5 = smov 64  }
   0xd   : > { %s2791_s13 = smov (!%p160_p3, %s1579_s13), 3  ;;  %1690 = vmatpush3.bf16.msra.mxu0 %v1880_v1  ;;  %v1885_v19 = vld [vmem:[%s2769_s1 + $0xf8] sm:$0xff]   ;;  %vm419_vm2 = vcmask 1042432   ;;  %vm420_vm3 = vcmask 1046532   ;;  %vm2108_vm4 = vmor %vm200_vm0, %vm201_vm1  ;;  %v1887_v60 = vld [vmem:[%s2769_s1 + $0x60] sm:$0xff]   ;;  %vm688_vm6 = vcmask 523264  }
   0xe   : > { %s1861_s18 = smul.u32 120, %s2791_s13  ;;  %1691 = vmatprep.subr.bf16.mxu0 %v1881_v2  ;;  %1753 = vmatprep.subr.bf16.mxu1 %v1885_v19  ;;  %v1886_v39 = vld [vmem:[%s2769_s1 + $0xb8] sm:$0xff]   ;;  %v1888_v1 = vld [vmem:[%s2769_s1 + $0x20] sm:$0xff]   ;;  %vm2143_vm5 = vmor %vm419_vm2, %vm420_vm3  ;;  %s1585_s20 = sshll.u32 %s2791_s13, 2 }
   0xf   : > { %1754 = vmatpush3.bf16.msra.mxu1 %v1886_v39  ;;  %v1892_v39 = vld [vmem:[%s2769_s1 + $0x18] sm:$0xff]   ;;  %s168_s23 = scalar_lea.vmem %s2771_s3, %s1585_s20 }
  0x10   : > { %s2036_s25 = scalar_lea.vmem %s2768_s0, %s1861_s18 }
  0x11   : > { %v2042_v5 = vld [vmem:[%s2036_s25 + $0xc] sm:$0xf]  ;;  %v2045_v6 = vld [vmem:[%s2036_s25 + $0x10] sm:$0xf]  ;;  %v2048_v7 = vld [vmem:[%s2036_s25 + $0x18] sm:$0xf]  ;;  %1692 = vmatpush3.bf16.msra.mxu0 %v1882_v3 }
  0x12   : > { %v237_v8 = vshll.u32 %v2045_v6, 16  ;;  %v241_v9 = vshrl.u32 %v2045_v6, 16  ;;  %v2054_v10 = vcombine.low %v2042_v5, %v2045_v6  ;;  %v228_v11 = vshrl.u32 %v2042_v5, 16  ;;  %v2058_v12 = vld [vmem:[%s2036_s25 + $0x1c] sm:$0xf]  ;;  %1693 = vmatprep.subr.bf16.mxu0 %v1883_v4 }
  0x13   : > { %v231_v14 = vshll.u32 %v2042_v5, 16  ;;  %v261_v15 = vshll.u32 %v2058_v12, 16  ;;  %v265_v16 = vshrl.u32 %v2058_v12, 16  ;;  %v2068_v17 = vcombine.low %v2048_v7, %v2058_v12  ;;  %v2071_v18 = vld [vmem:[%s2036_s25] sm:$0xf] }
  0x14   : > { %v243_v20 = vrot.slane %v241_v9, 4  ;;  %637 = vrot.lane.b32.xlu0 %v2054_v10, %s1989_s5  ;;  %v230_v21 = vrot.slane %v228_v11, 4  ;;  %v252_v22 = vshrl.u32 %v2048_v7, 16  ;;  %v255_v23 = vshll.u32 %v2048_v7, 16  ;;  %v2081_v24 = vld [vmem:[%s2036_s25 + $0x4] sm:$0xf] }
  0x15   : > { %v233_v25 = vrot.slane %v231_v14, 5  ;;  %v267_v26 = vrot.slane %v265_v16, 4  ;;  %639 = vrot.lane.b32.xlu1 %v2068_v17, %s1989_s5  ;;  %v2086_v27 = vld [vmem:[%s2036_s25 + $0x8] sm:$0x1]  ;;  %v204_v28 = vshrl.u32 %v2071_v18, 16  ;;  %v207_v29 = vshll.u32 %v2071_v18, 16  ;;  %1694 = vmatpush3.bf16.msra.mxu0 %v1884_v13 }
  0x16   : > { %v254_v30 = vrot.slane %v252_v22, 4  ;;  %v257_v31 = vrot.slane %v255_v23, 5  ;;  %v213_v32 = vshll.u32 %v2081_v24, 16  ;;  %v217_v33 = vshrl.u32 %v2081_v24, 16  ;;  %v2093_v34 = vld [vmem:[%s2036_s25 + $0x14] sm:$0x1]  ;;  %1695 = vmatprep.subr.bf16.mxu0 %v1887_v60 }
  0x17   : > { %v206_v35 = vrot.slane %v204_v28, 4  ;;  %v209_v36 = vrot.slane %v207_v29, 5  ;;  %v223_v37 = vshll.u32 %v2086_v27, 16  ;;  %v234_v38 = vor.u32 %v233_v25, %v230_v21  ;;  %v2101_v44 = vld [vmem:[%s2036_s25 + $0x20] sm:$0x1]  ;;  %v1889_v23 = vld [vmem:[%s2769_s1 + $0xf0] sm:$0xff]  }
  0x18   : > { %v215_v40 = vrot.slane %v213_v32, 5  ;;  %v219_v41 = vrot.slane %v217_v33, 4  ;;  %v239_v42 = vrot.slane %v237_v8, 5  ;;  %v247_v43 = vshll.u32 %v2093_v34, 16  ;;  %v2104_v49 = vld [vmem:[%s2036_s25 + $0x24] sm:$0xf]  ;;  %1755 = vmatprep.subr.bf16.mxu1 %v1889_v23 }
  0x19   : > { %v210_v45 = vor.u32 %v209_v36, %v206_v35  ;;  %v225_v46 = vrot.slane %v223_v37, 5  ;;  %v235_v47 = vrot.slane %v234_v38, 4  ;;  %v258_v48 = vor.u32 %v257_v31, %v254_v30  ;;  %v2116_v59 = vld [vmem:[%s2036_s25 + $0x28] sm:$0xf]  ;;  %1696 = vmatpush3.bf16.msra.mxu0 %v1888_v1  ;;  %v2149_v22 = vld [vmem:[%s2036_s25 + $0x2c] sm:$0x1] }
  0x1a   : > { %v220_v51 = vor.u32 %v219_v41, %v215_v40  ;;  %v244_v52 = vor.u32 %v243_v20, %v239_v42  ;;  %v249_v53 = vrot.slane %v247_v43, 5  ;;  %v263_v54 = vrot.slane %v261_v15, 5  ;;  %v1890_v30 = vld [vmem:[%s2769_s1 + $0xb0] sm:$0xff]  }
  0x1b   : > { %v211_v55 = vrot.slane %v210_v45, 4  ;;  %v240_v56 = vsel %vm2108_vm4, %v235_v47, %v239_v42  ;;  %v259_v57 = vrot.slane %v258_v48, 4  ;;  %v271_v58 = vshll.u32 %v2101_v44, 16  ;;  %v2183_v45 = vld [vmem:[%s2036_s25 + $0x34] sm:$0xf]  ;;  %1756 = vmatpush3.bf16.msra.mxu1 %v1890_v30 }
  0x1c   : > { %v221_v61 = vrot.slane %v220_v51, 4  ;;  %v245_v62 = vrot.slane %v244_v52, 4  ;;  %v268_v63 = vor.u32 %v267_v26, %v263_v54  ;;  %v276_v0 = vshrl.u32 %v2104_v49, 16  ;;  %v1913_v20 = vld [vmem:[%s2769_s1 + $0x110] sm:$0xff]  }
  0x1d   : > { %v216_v2 = vsel %vm2108_vm4, %v211_v55, %v215_v40  ;;  %v264_v3 = vsel %vm2108_vm4, %v259_v57, %v263_v54  ;;  %v273_v4 = vrot.slane %v271_v58, 5  ;;  %v279_v8 = vshll.u32 %v2104_v49, 16  ;;  %v2204_v55 = vld [vmem:[%s2036_s25 + $0x38] sm:$0x1] }
  0x1e   : > { %v226_v9 = vsel %vm2108_vm4, %v221_v61, %v225_v46  ;;  %v250_v11 = vsel %vm2108_vm4, %v245_v62, %v249_v53  ;;  %v269_v13 = vrot.slane %v268_v63, 4  ;;  %v289_v14 = vshrl.u32 %v2116_v59, 16  ;;  %v2215_v62 = vld [vmem:[%s2036_s25 + $0x40] sm:$0xf]  ;;  %v1895_v63 = vld [vmem:[%s2769_s1 + $0x50] sm:$0xff]  }
  0x1f   : > { %v1604_v15 = vcombine.low %v216_v2, %v226_v9  ;;  %v2135_v16 = vcombine.low %v240_v56, %v250_v11  ;;  %v2139_v19 = vcombine.low %v2104_v49, %v2116_v59  ;;  %v1587_v21 = vrot.slane %v2042_v5, 9  ;;  %v2207_v56 = vld [vmem:[%s2036_s25 + $0x3c] sm:$0xf] }
  0x20   : > { %v274_v25 = vsel %vm2108_vm4, %v269_v13, %v273_v4  ;;  %v431_v26 = vrot.slane %v2045_v6, 5  ;;  %v434_v28 = vrot.slane %v2093_v34, 5  ;;  %v278_v29 = vrot.slane %v276_v0, 4  ;;  %v2168_v6 = vld [vmem:[%s2036_s25 + $0x30] sm:$0xf]  ;;  %v1891_v34 = vld [vmem:[%s2769_s1 + $0x58] sm:$0xff]  }
  0x21   : > { %594 = vrot.lane.b32.xlu0 %v1604_v15, %s1989_s5  ;;  %596 = vrot.lane.b32.xlu1 %v2135_v16, %s1989_s5  ;;  %v2164_v5 = vcombine.low %v264_v3, %v274_v25  ;;  %v281_v31 = vrot.slane %v279_v8, 5  ;;  %v285_v32 = vshll.u32 %v2116_v59, 16  ;;  %v291_v33 = vrot.slane %v289_v14, 4  ;;  %v1896_v4 = vld [vmem:[%s2769_s1 + $0x10] sm:$0xff]   ;;  %v1897_v14 = vld [vmem:[%s2769_s1 + $0xe0] sm:$0xff]  }
  0x22   : > { %v432_v35 = vsel %vm2143_vm5, %v1587_v21, %v431_v26  ;;  %v433_v36 = vrot.slane %v431_v26, 4  ;;  %v295_v37 = vshll.u32 %v2149_v22, 16  ;;  %v1588_v38 = vrot.slane %v2048_v7, 9  ;;  %1697 = vmatprep.subr.bf16.mxu0 %v1891_v34  ;;  %v1893_v7 = vld [vmem:[%s2769_s1 + $0xe8] sm:$0xff]   ;;  %v2240_v26 = vld [vmem:[%s2036_s25 + $0x44] sm:$0x1] }
  0x23   : > { %v282_v40 = vor.u32 %v281_v31, %v278_v29  ;;  %v287_v41 = vrot.slane %v285_v32, 5  ;;  %v438_v42 = vrot.slane %v2058_v12, 5  ;;  %v441_v43 = vrot.slane %v2101_v44, 5  ;;  %1698 = vmatpush3.bf16.msra.mxu0 %v1892_v39  ;;  %v1894_v44 = vld [vmem:[%s2769_s1 + $0xa8] sm:$0xff]   ;;  %1757 = vmatprep.subr.bf16.mxu1 %v1893_v7 }
  0x24   : > { %v435_v46 = vsel %vm2143_vm5, %v433_v36, %v434_v28  ;;  %v297_v47 = vrot.slane %v295_v37, 5  ;;  %v300_v48 = vshrl.u32 %v2168_v6, 16  ;;  %v303_v12 = vshll.u32 %v2168_v6, 16  ;;  %1758 = vmatpush3.bf16.msra.mxu1 %v1894_v44  ;;  %1699 = vmatprep.subr.bf16.mxu0 %v1895_v63  ;;  %v1898_v28 = vld [vmem:[%s2769_s1 + $0xa0] sm:$0xff]   ;;  %v2276_v44 = vld [vmem:[%s2036_s25 + $0x4c] sm:$0xf] }
  0x25   : > { %598 = vrot.lane.b32.xlu0 %v2164_v5, %s1989_s5  ;;  %641 = vrot.lane.b32.xlu1 %v2139_v19, %s1989_s5  ;;  %v2199_v51 = vcombine.low %v432_v35, %v435_v46  ;;  %v283_v52 = vrot.slane %v282_v40, 4  ;;  %v292_v53 = vor.u32 %v291_v33, %v287_v41  ;;  %v439_v54 = vsel %vm2143_vm5, %v1588_v38, %v438_v42  ;;  %v1899_v33 = vld [vmem:[%s2769_s1 + $0x48] sm:$0xff]  }
  0x26   : > { %v440_v57 = vrot.slane %v438_v42, 4  ;;  %v313_v58 = vshrl.u32 %v2183_v45, 16  ;;  %v2212_v60 = vcombine.low %v2168_v6, %v2183_v45  ;;  %v302_v61 = vrot.slane %v300_v48, 4  ;;  %1759 = vmatprep.subr.bf16.mxu1 %v1897_v14  ;;  %v2267_v46 = vld [vmem:[%s2036_s25 + $0x48] sm:$0xf] }
  0x27   : > { %v288_v0 = vsel %vm2108_vm4, %v283_v52, %v287_v41  ;;  %v293_v1 = vrot.slane %v292_v53, 4  ;;  %v305_v2 = vrot.slane %v303_v12, 5  ;;  %v309_v3 = vshll.u32 %v2183_v45, 16  ;;  %1700 = vmatpush3.bf16.msra.mxu0 %v1896_v4 }
  0x28   : > { %v442_v8 = vsel %vm2143_vm5, %v440_v57, %v441_v43  ;;  %v315_v9 = vrot.slane %v313_v58, 4  ;;  %v319_v11 = vshll.u32 %v2204_v55, 16  ;;  %v324_v13 = vshrl.u32 %v2207_v56, 16  ;;  %1760 = vmatpush3.bf16.msra.mxu1 %v1898_v28  ;;  %1701 = vmatprep.subr.bf16.mxu0 %v1899_v33  ;;  %v2283_v58 = vld [vmem:[%s2036_s25 + $0x50] sm:$0x1] }
  0x29   : > { %659 = vrot.lane.b32.xlu0 %v2199_v51, %s1989_s5  ;;  %v298_v15 = vsel %vm2108_vm4, %v293_v1, %v297_v47  ;;  %v2237_v21 = vcombine.low %v439_v54, %v442_v8  ;;  %v306_v23 = vor.u32 %v305_v2, %v302_v61  ;;  %v311_v25 = vrot.slane %v309_v3, 5  ;;  %v1901_v61 = vld [vmem:[%s2769_s1 + $0xd8] sm:$0xff]   ;;  %v2299_v8 = vld [vmem:[%s2036_s25 + $0x54] sm:$0xf] }
  0x2a   : > { %v2245_v29 = vcombine.low %v288_v0, %v298_v15  ;;  %v321_v30 = vrot.slane %v319_v11, 5  ;;  %v327_v31 = vshll.u32 %v2207_v56, 16  ;;  %v337_v32 = vshrl.u32 %v2215_v62, 16  ;;  %1761 = vmatprep.subr.bf16.mxu1 %v1901_v61 }
  0x2b   : > { %v307_v34 = vrot.slane %v306_v23, 4  ;;  %v316_v35 = vor.u32 %v315_v9, %v311_v25  ;;  %v2254_v36 = vcombine.low %v2207_v56, %v2215_v62  ;;  %v1589_v37 = vrot.slane %v2104_v49, 9  ;;  %v1902_v9 = vld [vmem:[%s2769_s1 + $0x98] sm:$0xff]  }
  0x2c   : > { %600 = vrot.lane.b32.xlu1 %v2245_v29, %s1989_s5  ;;  %v445_v38 = vrot.slane %v2116_v59, 5  ;;  %v448_v39 = vrot.slane %v2149_v22, 5  ;;  %v326_v40 = vrot.slane %v324_v13, 4  ;;  %v329_v41 = vrot.slane %v327_v31, 5  ;;  %v1900_v59 = vld [vmem:[%s2769_s1 + $0x8] sm:$0xff]   ;;  %1762 = vmatpush3.bf16.msra.mxu1 %v1902_v9 }
  0x2d   : > { %643 = vrot.lane.b32.xlu0 %v2212_v60, %s1989_s5  ;;  %v312_v42 = vsel %vm2108_vm4, %v307_v34, %v311_v25  ;;  %v317_v49 = vrot.slane %v316_v35, 4  ;;  %v333_v43 = vshll.u32 %v2215_v62, 16  ;;  %v339_v7 = vrot.slane %v337_v32, 4  ;;  %1702 = vmatpush3.bf16.msra.mxu0 %v1900_v59  ;;  %v2312_v23 = vld [vmem:[%s2036_s25 + $0x58] sm:$0xf]  ;;  %v1903_v25 = vld [vmem:[%s2769_s1 + $0x40] sm:$0xff]  }
  0x2e   : > { %v446_v22 = vsel %vm2143_vm5, %v1589_v37, %v445_v38  ;;  %v447_v47 = vrot.slane %v445_v38, 4  ;;  %v330_v48 = vor.u32 %v329_v41, %v326_v40  ;;  %v343_v12 = vshll.u32 %v2240_v26, 16  ;;  %1703 = vmatprep.subr.bf16.mxu0 %v1903_v25  ;;  %v1905_v38 = vld [vmem:[%s2769_s1 + $0xd0] sm:$0xff]  }
  0x2f   : > { %v322_v52 = vsel %vm2108_vm4, %v317_v49, %v321_v30  ;;  %v335_v53 = vrot.slane %v333_v43, 5  ;;  %v1590_v54 = vrot.slane %v2168_v6, 9  ;;  %v452_v57 = vrot.slane %v2183_v45, 5  ;;  %1763 = vmatprep.subr.bf16.mxu1 %v1905_v38 }
  0x30   : > { %661 = vrot.lane.b32.xlu1 %v2237_v21, %s1989_s5  ;;  %v2290_v63 = vcombine.low %v312_v42, %v322_v52  ;;  %v449_v0 = vsel %vm2143_vm5, %v447_v47, %v448_v39  ;;  %v331_v1 = vrot.slane %v330_v48, 4  ;;  %v345_v6 = vrot.slane %v343_v12, 5 }
  0x31   : > { %v2294_v2 = vcombine.low %v446_v22, %v449_v0  ;;  %v340_v45 = vor.u32 %v339_v7, %v335_v53  ;;  %v453_v3 = vsel %vm2143_vm5, %v1590_v54, %v452_v57  ;;  %v454_v4 = vrot.slane %v452_v57, 4  ;;  %v2344_v22 = vld [vmem:[%s2036_s25 + $0x5c] sm:$0x1] }
  0x32   : > { %602 = vrot.lane.b32.xlu0 %v2290_v63, %s1989_s5  ;;  %v336_v11 = vsel %vm2108_vm4, %v331_v1, %v335_v53  ;;  %v455_v13 = vrot.slane %v2204_v55, 5  ;;  %v348_v14 = vshrl.u32 %v2267_v46, 16  ;;  %v351_v15 = vshll.u32 %v2267_v46, 16  ;;  %v1904_v55 = vld [vmem:[%s2769_s1] sm:$0xff]  }
  0x33   : > { %v341_v28 = vrot.slane %v340_v45, 4  ;;  %v361_v30 = vshrl.u32 %v2276_v44, 16  ;;  %v2320_v31 = vcombine.low %v2267_v46, %v2276_v44  ;;  %v357_v32 = vshll.u32 %v2276_v44, 16  ;;  %1704 = vmatpush3.bf16.msra.mxu0 %v1904_v55 }
  0x34   : > { %645 = vrot.lane.b32.xlu1 %v2254_v36, %s1989_s5  ;;  %v456_v33 = vsel %vm2143_vm5, %v454_v4, %v455_v13  ;;  %v350_v34 = vrot.slane %v348_v14, 4  ;;  %v353_v35 = vrot.slane %v351_v15, 5  ;;  %v367_v37 = vshll.u32 %v2283_v58, 16 }
  0x35   : > { %v346_v39 = vsel %vm2108_vm4, %v341_v28, %v345_v6  ;;  %v2336_v40 = vcombine.low %v453_v3, %v456_v33  ;;  %v359_v41 = vrot.slane %v357_v32, 5  ;;  %v363_v42 = vrot.slane %v361_v30, 4  ;;  %v2359_v3 = vld [vmem:[%s2036_s25 + $0x60] sm:$0xf] }
  0x36   : > { %663 = vrot.lane.b32.xlu0 %v2294_v2, %s1989_s5  ;;  %v2340_v49 = vcombine.low %v336_v11, %v346_v39  ;;  %v354_v43 = vor.u32 %v353_v35, %v350_v34  ;;  %v369_v7 = vrot.slane %v367_v37, 5  ;;  %v372_v59 = vshrl.u32 %v2299_v8, 16  ;;  %v2384_v37 = vld [vmem:[%s2036_s25 + $0x68] sm:$0x1] }
  0x37   : > { %v364_v47 = vor.u32 %v363_v42, %v359_v41  ;;  %v375_v48 = vshll.u32 %v2299_v8, 16  ;;  %v385_v12 = vshrl.u32 %v2312_v23, 16  ;;  %v2350_v52 = vcombine.low %v2299_v8, %v2312_v23  ;;  %v1906_v42 = vld [vmem:[%s2769_s1 + $0x90] sm:$0xff]  }
  0x38   : > { %604 = vrot.lane.b32.xlu1 %v2340_v49, %s1989_s5  ;;  %v355_v53 = vrot.slane %v354_v43, 4  ;;  %v1591_v54 = vrot.slane %v2207_v56, 9  ;;  %v459_v57 = vrot.slane %v2215_v62, 5  ;;  %v462_v61 = vrot.slane %v2240_v26, 5  ;;  %v2368_v26 = vld [vmem:[%s2036_s25 + $0x64] sm:$0xf]  ;;  %1764 = vmatpush3.bf16.msra.mxu1 %v1906_v42 }
  0x39   : > { %v365_v0 = vrot.slane %v364_v47, 4  ;;  %v374_v1 = vrot.slane %v372_v59, 4  ;;  %v377_v6 = vrot.slane %v375_v48, 5  ;;  %v381_v45 = vshll.u32 %v2312_v23, 16  ;;  %v2403_v48 = vld [vmem:[%s2036_s25 + $0x70] sm:$0xf] }
  0x3a   : > { %647 = vrot.lane.b32.xlu0 %v2320_v31, %s1989_s5  ;;  %v360_v4 = vsel %vm2108_vm4, %v355_v53, %v359_v41  ;;  %v460_v56 = vsel %vm2143_vm5, %v1591_v54, %v459_v57  ;;  %v461_v9 = vrot.slane %v459_v57, 4  ;;  %v387_v62 = vrot.slane %v385_v12, 4 }
  0x3b   : > { %v370_v11 = vsel %vm2108_vm4, %v365_v0, %v369_v7  ;;  %v378_v13 = vor.u32 %v377_v6, %v374_v1  ;;  %v383_v14 = vrot.slane %v381_v45, 5  ;;  %v391_v15 = vshll.u32 %v2344_v22, 16 }
  0x3c   : > { %665 = vrot.lane.b32.xlu1 %v2336_v40, %s1989_s5  ;;  %v2375_v25 = vcombine.low %v360_v4, %v370_v11  ;;  %v463_v28 = vsel %vm2143_vm5, %v461_v9, %v462_v61  ;;  %v1592_v30 = vrot.slane %v2267_v46, 9  ;;  %v466_v32 = vrot.slane %v2276_v44, 5  ;;  %v2393_v44 = vld [vmem:[%s2036_s25 + $0x6c] sm:$0xf] }
  0x3d   : > { %v2381_v55 = vcombine.low %v460_v56, %v463_v28  ;;  %v379_v33 = vrot.slane %v378_v13, 4  ;;  %v388_v34 = vor.u32 %v387_v62, %v383_v14  ;;  %v393_v35 = vrot.slane %v391_v15, 5  ;;  %v2431_v62 = vld [vmem:[%s2036_s25 + $0x74] sm:$0x1]  ;;  %v1909_v11 = vld [vmem:[%s2769_s1 + $0xc8] sm:$0xff]  }
  0x3e   : > { %606 = vrot.lane.b32.xlu0 %v2375_v25, %s1989_s5  ;;  %v467_v38 = vsel %vm2143_vm5, %v1592_v30, %v466_v32  ;;  %v468_v39 = vrot.slane %v466_v32, 4  ;;  %v469_v41 = vrot.slane %v2283_v58, 5  ;;  %v479_v46 = vshrl.u32 %v2359_v3, 16  ;;  %v2408_v58 = vld [vmem:[%s2769_s1 + $0x118] sm:$0xff]   ;;  %v1910_v30 = vld [vmem:[%s2769_s1 + $0x88] sm:$0xff]   ;;  %1765 = vmatprep.subr.bf16.mxu1 %v1909_v11 }
  0x3f   : > { %v384_v43 = vsel %vm2108_vm4, %v379_v33, %v383_v14  ;;  %v389_v7 = vrot.slane %v388_v34, 4  ;;  %v482_v59 = vshll.u32 %v2359_v3, 16  ;;  %v492_v47 = vshrl.u32 %v2368_v26, 16  ;;  %1829 = vmatprep.subr.bf16.mxu0 %v2408_v58  ;;  %1766 = vmatpush3.bf16.msra.mxu1 %v1910_v30 }
  0x40   : > { %649 = vrot.lane.b32.xlu1 %v2350_v52, %s1989_s5  ;;  %v470_v12 = vsel %vm2143_vm5, %v468_v39, %v469_v41  ;;  %v2416_v53 = vcombine.low %v2359_v3, %v2368_v26  ;;  %v481_v54 = vrot.slane %v479_v46, 4  ;;  %v488_v57 = vshll.u32 %v2368_v26, 16  ;;  %v1912_v41 = vld [vmem:[%s2769_s1 + $0x80] sm:$0xff]  }
  0x41   : > { %v394_v61 = vsel %vm2108_vm4, %v389_v7, %v393_v35  ;;  %v2421_v0 = vcombine.low %v467_v38, %v470_v12  ;;  %v484_v1 = vrot.slane %v482_v59, 5  ;;  %v494_v6 = vrot.slane %v492_v47, 4 }
  0x42   : > { %667 = vrot.lane.b32.xlu0 %v2381_v55, %s1989_s5  ;;  %v2426_v45 = vcombine.low %v384_v43, %v394_v61  ;;  %v490_v4 = vrot.slane %v488_v57, 5  ;;  %v498_v56 = vshll.u32 %v2384_v37, 16  ;;  %v1593_v9 = vrot.slane %v2299_v8, 9 }
  0x43   : > { %v485_v13 = vor.u32 %v484_v1, %v481_v54  ;;  %v473_v14 = vrot.slane %v2312_v23, 5  ;;  %v476_v15 = vrot.slane %v2344_v22, 5  ;;  %v513_v28 = vshrl.u32 %v2393_v44, 16  ;;  %v1911_v23 = vld [vmem:[%s2769_s1 + $0xc0] sm:$0xff]  }
  0x44   : > { %608 = vrot.lane.b32.xlu1 %v2426_v45, %s1989_s5  ;;  %v495_v8 = vor.u32 %v494_v6, %v490_v4  ;;  %v500_v32 = vrot.slane %v498_v56, 5  ;;  %v516_v33 = vshll.u32 %v2393_v44, 16  ;;  %v522_v34 = vshll.u32 %v2403_v48, 16  ;;  %1767 = vmatprep.subr.bf16.mxu1 %v1911_v23 }
  0x45   : > { %v486_v22 = vrot.slane %v485_v13, 4  ;;  %v474_v35 = vsel %vm2143_vm5, %v1593_v9, %v473_v14  ;;  %v475_v38 = vrot.slane %v473_v14, 4  ;;  %v515_v39 = vrot.slane %v513_v28, 4  ;;  %1768 = vmatpush3.bf16.msra.mxu1 %v1912_v41 }
  0x46   : > { %651 = vrot.lane.b32.xlu0 %v2416_v53, %s1989_s5  ;;  %v496_v46 = vrot.slane %v495_v8, 4  ;;  %v518_v42 = vrot.slane %v516_v33, 5  ;;  %v524_v43 = vrot.slane %v522_v34, 5  ;;  %v526_v7 = vshrl.u32 %v2403_v48, 16  ;;  %1853 = vmatprep.subr.bf16.mxu1 %v2408_v58 }
  0x47   : > { %v491_v59 = vsel %vm2108_vm4, %v486_v22, %v490_v4  ;;  %v477_v47 = vsel %vm2143_vm5, %v475_v38, %v476_v15  ;;  %v532_v12 = vshll.u32 %v2431_v62, 16  ;;  %v1594_v4 = vrot.slane %v2359_v3, 9 }
  0x48   : > { %669 = vrot.lane.b32.xlu1 %v2421_v0, %s1989_s5  ;;  %v501_v54 = vsel %vm2108_vm4, %v496_v46, %v500_v32  ;;  %v2466_v57 = vcombine.low %v474_v35, %v477_v47  ;;  %v519_v61 = vor.u32 %v518_v42, %v515_v39  ;;  %v528_v1 = vrot.slane %v526_v7, 4 }
  0x49   : > { %v2468_v6 = vcombine.low %v491_v59, %v501_v54  ;;  %v534_v56 = vrot.slane %v532_v12, 5  ;;  %v507_v9 = vrot.slane %v2368_v26, 5  ;;  %v510_v14 = vrot.slane %v2384_v37, 5 }
  0x4a   : > { %v520_v11 = vrot.slane %v519_v61, 4  ;;  %v529_v13 = vor.u32 %v528_v1, %v524_v43  ;;  %v1586_v15 = vrot.slane %v2071_v18, 9  ;;  %v424_v3 = vrot.slane %v2081_v24, 5 }
  0x4b   : > { %681 = vrot.lane.b32.xlu0 %v2468_v6, %s1989_s5  ;;  %v508_v28 = vsel %vm2143_vm5, %v1594_v4, %v507_v9  ;;  %v509_v30 = vrot.slane %v507_v9, 4  ;;  %v427_v26 = vrot.slane %v2086_v27, 5  ;;  %v1596_v32 = vcombine.low %v2071_v18, %v2081_v24  ;;  %v1914_v4 = vld [vmem:[%s2769_s1 + $0x108] sm:$0xff]  }
  0x4c   : > { %671 = vrot.lane.b32.xlu1 %v2466_v57, %s1989_s5  ;;  %v525_v37 = vsel %vm2108_vm4, %v520_v11, %v524_v43  ;;  %v530_v8 = vrot.slane %v529_v13, 4  ;;  %v425_v34 = vsel %vm2143_vm5, %v1586_v15, %v424_v3  ;;  %v426_v23 = vrot.slane %v424_v3, 4 }
  0x4d   : > { %v511_v33 = vsel %vm2143_vm5, %v509_v30, %v510_v14  ;;  %v1623_v27 = vcombine.low %v2393_v44, %v2403_v48  ;;  %v544_v24 = vrot.slane %v2431_v62, 5  ;;  %v1595_v41 = vrot.slane %v2393_v44, 9 }
  0x4e   : > { %v535_v22 = vsel %vm2108_vm4, %v530_v8, %v534_v56  ;;  %v2495_v35 = vcombine.low %v508_v28, %v511_v33  ;;  %v428_v39 = vsel %vm2143_vm5, %v426_v23, %v427_v26  ;;  %v541_v46 = vrot.slane %v2403_v48, 5  ;;  %v1915_v28 = vld [vmem:[%s2769_s1 + $0x100] sm:$0xff]  }
  0x4f   : > { %v1624_v38 = vcombine.low %v525_v37, %v535_v22  ;;  %v1612_v18 = vcombine.low %v425_v34, %v428_v39 }
  0x50   : > { %673 = vrot.lane.b32.xlu1 %v2495_v35, %s1989_s5  ;;  %v2507_v50 = vsel %vm2143_vm5, %v1595_v41, %v541_v46  ;;  %v543_v42 = vrot.slane %v541_v46, 4 }
  0x51   : > { %683 = vrot.lane.b32.xlu0 %v1624_v38, %s1989_s5 }
  0x52   : > { %v2511_v43 = vsel %vm2143_vm5, %v543_v42, %v544_v24 }
  0x53   : > { %v1625_v7 = vcombine.low %v2507_v50, %v2511_v43 }
  0x86   : > { %v638_v59 = vpop.permute.xlu0 %637 }
  0x87   : > { %v723_v62 = vsel %vm688_vm6, %v1612_v18, %v638_v59  ;;  %v640_v47 = vpop.permute.xlu1 %639 }
  0x88   : > { %1138 = vmatprep.mubr.bf16.mxu0 %v723_v62  ;;  %v727_v61 = vsel %vm688_vm6, %v2199_v51, %v640_v47 }
  0x93   : > { %v595_v12 = vpop.permute.xlu0 %594  ;;  %v597_v54 = vpop.permute.xlu1 %596 }
  0x94   : > { %v691_v1 = vsel %vm688_vm6, %v1596_v32, %v595_v12  ;;  %v695_v11 = vsel %vm688_vm6, %v2054_v10, %v597_v54 }
  0x95   : > { %1139 = vmatmul.mubr.bf16.vlgmr.msra.gmra.mxu0 %v691_v1 }
  0x96   : > { %1830 = vmatpush3.bf16.msra.mxu0 %v2408_v58  ;;  %1146 = vmatprep.mubr.bf16.mxu0 %v727_v61 }
  0x97   : > { %v599_v56 = vpop.permute.xlu0 %598  ;;  %1831 = vmatprep.subr.bf16.mxu0 %v1913_v20  ;;  %v642_v9 = vpop.permute.xlu1 %641 }
  0x98   : > { %v699_v51 = vsel %vm688_vm6, %v2068_v17, %v599_v56  ;;  %v731_v14 = vsel %vm688_vm6, %v2237_v21, %v642_v9 }
  0x99   : > { %1235 = vmatprep.mubr.bf16.mxu1 %v699_v51 }
  0x9a   : > { %1832 = vmatpush3.bf16.msra.mxu0 %v1913_v20 }
  0x9b   : > { %v660_v13 = vpop.permute.xlu0 %659  ;;  %1833 = vmatprep.subr.bf16.mxu0 %v1914_v4 }
  0x9c   : > { %v755_v15 = vsel %vm688_vm6, %v2135_v16, %v660_v13 }
  0x9d   : > { %1147 = vmatmul.mubr.bf16.gmra.mxu0 %v695_v11  ;;  %1236 = vmatmul.mubr.bf16.vlgmr.msra.gmra.mxu1 %v755_v15 }
  0x9e   : > { %v601_v17 = vpop.permute.xlu1 %600  ;;  %1154 = vmatprep.mubr.bf16.mxu0 %v731_v14  ;;  %1857 = vmatpush3.bf16.msra.mxu1 %v2408_v58 }
  0x9f   : > { %v644_v10 = vpop.permute.xlu0 %643  ;;  %v703_v30 = vsel %vm688_vm6, %v2139_v19, %v601_v17  ;;  %1834 = vmatpush3.bf16.msra.mxu0 %v1914_v4  ;;  %1854 = vmatprep.subr.bf16.mxu1 %v1913_v20 }
  0xa0   : > { %1243 = vmatprep.mubr.bf16.mxu1 %v703_v30  ;;  %1835 = vmatprep.subr.bf16.mxu0 %v1915_v28  ;;  %v735_v26 = vsel %vm688_vm6, %v2294_v2, %v644_v10 }
  0xa2   : > { %v662_v3 = vpop.permute.xlu1 %661  ;;  %1858 = vmatpush3.bf16.msra.mxu1 %v1913_v20 }
  0xa3   : > { %v759_v16 = vsel %vm688_vm6, %v2164_v5, %v662_v3  ;;  %1836 = vmatpush3.bf16.msra.mxu0 %v1915_v28  ;;  %1855 = vmatprep.subr.bf16.mxu1 %v1914_v4 }
  0xa4   : > { %v603_v37 = vpop.permute.xlu0 %602 }
  0xa5   : > { %1155 = vmatmul.mubr.bf16.gmra.mxu0 %v699_v51  ;;  %1244 = vmatmul.mubr.bf16.gmra.mxu1 %v759_v16  ;;  %v707_v19 = vsel %vm688_vm6, %v2212_v60, %v603_v37 }
  0xa6   : > { %v646_v58 = vpop.permute.xlu1 %645  ;;  %1162 = vmatprep.mubr.bf16.mxu0 %v735_v26  ;;  %1251 = vmatprep.mubr.bf16.mxu1 %v707_v19 }
  0xa7   : > { %1859 = vmatpush3.bf16.msra.mxu1 %v1914_v4  ;;  %v739_v33 = vsel %vm688_vm6, %v2336_v40, %v646_v58 }
  0xa8   : > { %v664_v8 = vpop.permute.xlu0 %663  ;;  %1856 = vmatprep.subr.bf16.mxu1 %v1915_v28 }
  0xa9   : > { %v763_v5 = vsel %vm688_vm6, %v2245_v29, %v664_v8 }
  0xaa   : > { %v605_v32 = vpop.permute.xlu1 %604 }
  0xab   : > { %v711_v34 = vsel %vm688_vm6, %v2254_v36, %v605_v32  ;;  %1860 = vmatpush3.bf16.msra.mxu1 %v1915_v28 }
  0xac   : > { %v648_v23 = vpop.permute.xlu0 %647 }
  0xad   : > { %1163 = vmatmul.mubr.bf16.gmra.mxu0 %v703_v30  ;;  %1252 = vmatmul.mubr.bf16.gmra.mxu1 %v763_v5  ;;  %v743_v29 = vsel %vm688_vm6, %v2381_v55, %v648_v23 }
  0xae   : > { %1170 = vmatprep.mubr.bf16.mxu0 %v739_v33  ;;  %1259 = vmatprep.mubr.bf16.mxu1 %v711_v34  ;;  %v666_v60 = vpop.permute.xlu1 %665 }
  0xaf   : > { %v767_v38 = vsel %vm688_vm6, %v2290_v63, %v666_v60 }
  0xb0   : > { %v607_v22 = vpop.permute.xlu0 %606 }
  0xb1   : > { %v715_v18 = vsel %vm688_vm6, %v2320_v31, %v607_v22 }
  0xb2   : > { %v650_v39 = vpop.permute.xlu1 %649 }
  0xb3   : > { %v747_v63 = vsel %vm688_vm6, %v2421_v0, %v650_v39 }
  0xb4   : > { %v668_v36 = vpop.permute.xlu0 %667 }
  0xb5   : > { %1171 = vmatmul.mubr.bf16.gmra.mxu0 %v707_v19  ;;  %1260 = vmatmul.mubr.bf16.gmra.mxu1 %v767_v38  ;;  %v771_v41 = vsel %vm688_vm6, %v2340_v49, %v668_v36 }
  0xb6   : > { %1178 = vmatprep.mubr.bf16.mxu0 %v743_v29  ;;  %1267 = vmatprep.mubr.bf16.mxu1 %v715_v18  ;;  %v609_v24 = vpop.permute.xlu1 %608 }
  0xb7   : > { %v719_v42 = vsel %vm688_vm6, %v2350_v52, %v609_v24 }
  0xb8   : > { %v652_v46 = vpop.permute.xlu0 %651 }
  0xb9   : > { %v751_v47 = vsel %vm688_vm6, %v2466_v57, %v652_v46 }
  0xba   : > { %v670_v31 = vpop.permute.xlu1 %669 }
  0xbb   : > { %v775_v62 = vsel %vm688_vm6, %v2375_v25, %v670_v31 }
  0xbd   : > { %1179 = vmatmul.mubr.bf16.gmra.mxu0 %v711_v34  ;;  %1268 = vmatmul.mubr.bf16.gmra.mxu1 %v771_v41  ;;  %v682_v59 = vpop.permute.xlu0 %681 }
  0xbe   : > { %1186 = vmatprep.mubr.bf16.mxu0 %v747_v63  ;;  %1275 = vmatprep.mubr.bf16.mxu1 %v719_v42  ;;  %v787_v49 = vsel %vm688_vm6, %v2416_v53, %v682_v59  ;;  %v672_v52 = vpop.permute.xlu1 %671 }
  0xbf   : > { %v779_v54 = vsel %vm688_vm6, %v2426_v45, %v672_v52  ;;  %v2679_v52 = vld [vmem:[%s2770_s2] ss:$0 sm:$0xff] }
  0xc2   : > { %v674_v53 = vpop.permute.xlu1 %673 }
  0xc3   : > { %v684_v12 = vpop.permute.xlu0 %683  ;;  %v783_v61 = vsel %vm688_vm6, %v2468_v6, %v674_v53 }
  0xc4   : > { %v791_v25 = vsel %vm688_vm6, %v1623_v27, %v684_v12 }
  0xc5   : > { %1187 = vmatmul.mubr.bf16.gmra.mxu0 %v715_v18  ;;  %1276 = vmatmul.mubr.bf16.gmra.mxu1 %v775_v62 }
  0xc6   : > { %1194 = vmatprep.mubr.bf16.mxu0 %v751_v47  ;;  %1283 = vmatprep.mubr.bf16.mxu1 %v787_v49 }
  0xcd   : > { %1195 = vmatmul.mubr.bf16.gmra.mxu0 %v719_v42  ;;  %1284 = vmatmul.mubr.bf16.gmra.mxu1 %v779_v54 }
  0xce   : > { %1291 = vmatprep.mubr.bf16.mxu1 %v791_v25  ;;  %1837 = vmatprep.mubr.msk.bf16.mxu0 %vm688_vm6, %v2237_v21 }
  0xd5   : > { %1292 = vmatmul.mubr.bf16.gmra.mxu1 %v783_v61  ;;  %1838 = vmatmul.mubr.msk.bf16.vlgmr.msra.gmra.mxu0 %vm688_vm6, %v2294_v2 }
  0xd6   : > { %1841 = vmatprep.mubr.msk.bf16.mxu0 %vm688_vm6, %v2336_v40  ;;  %1845 = vmatprep.mubr.msk.bf16.mxu1 %vm688_vm6, %v2421_v0 }
  0xdd   : > { %1842 = vmatmul.mubr.msk.bf16.gmra.mxu0 %vm688_vm6, %v2381_v55  ;;  %1846 = vmatmul.mubr.msk.bf16.vlgmr.msra.gmra.mxu1 %vm688_vm6, %v2466_v57 }
  0xde   : > { %1849 = vmatprep.mubr.msk.bf16.mxu1 %vm688_vm6, %v2495_v35 }
  0xe5   : > { %1850 = vmatmul.mubr.msk.bf16.gmra.mxu1 %vm688_vm6, %v1625_v7 }
 0x155   : > { %v1705_v21 = vpop.f32.mrf.mxu0 }
 0x157   : > { %v1706_v2 = vpop.f32.mrf.mxu0 }
 0x158   : > { %v1707_v49 = vadd.f32 %v1706_v2, %v1705_v21 }
 0x159   : > { %v2596_v40 = vpop.f32.mrf.mxu0 }
 0x15b   : > { %v2598_v44 = vpop.f32.mrf.mxu0 }
 0x15c   : > { %v1710_v21 = vadd.f32 %v2598_v44, %v2596_v40 }
 0x15d   : > { %v1711_v48 = vpop.f32.mrf.mxu0  ;;  %v1769_v0 = vpop.f32.mrf.mxu1 }
 0x15f   : > { %v1712_v55 = vpop.f32.mrf.mxu0  ;;  %v1770_v45 = vpop.f32.mrf.mxu1 }
 0x160   : > { %v1713_v59 = vadd.f32 %v1712_v55, %v1711_v48  ;;  %v1771_v53 = vadd.f32 %v1770_v45, %v1769_v0  ;;  %v1141_v55 = vadd.f32 %v1707_v49, %v2679_v52 }
 0x161   : > { %v1714_v6 = vpop.f32.mrf.mxu0  ;;  %v2600_v57 = vpop.f32.mrf.mxu1 }
 0x162   : > { %v1149_v61 = vadd.f32 %v1713_v59, %v2679_v52  ;;  %v1238_v0 = vadd.f32 %v1771_v53, %v1141_v55 }
 0x163   : > { %v1715_v27 = vpop.f32.mrf.mxu0  ;;  %v1773_v35 = vpop.f32.mrf.mxu1 }
 0x164   : > { %v1716_v2 = vadd.f32 %v1715_v27, %v1714_v6 }
 0x165   : > { %v2602_v20 = vpop.f32.mrf.mxu0  ;;  %v1775_v50 = vpop.f32.mrf.mxu1 }
 0x166   : > { %v1152_v49 = vadd.f32 %v1716_v2, %v2679_v52 }
 0x167   : > { %v1718_v43 = vpop.f32.mrf.mxu0  ;;  %v1776_v7 = vpop.f32.mrf.mxu1 }
 0x168   : > { %v1777_v12 = vadd.f32 %v1776_v7, %v1775_v50  ;;  %v1719_v45 = vadd.f32 %v1718_v43, %v2602_v20 }
 0x169   : > { %v2604_v1 = vpop.f32.mrf.mxu0  ;;  %v1778_v56 = vpop.f32.mrf.mxu1 }
 0x16a   : > { %v1246_v50 = vadd.f32 %v1777_v12, %v1149_v61 }
 0x16b   : > { %v2606_v4 = vpop.f32.mrf.mxu0  ;;  %v1779_v9 = vpop.f32.mrf.mxu1 }
 0x16c   : > { %v1722_v20 = vadd.f32 %v2606_v4, %v2604_v1 }
 0x16d   : > { %v2608_v51 = vpop.f32.mrf.mxu0  ;;  %v1781_v11 = vpop.f32.mrf.mxu1 }
 0x16f   : > { %v2610_v13 = vpop.f32.mrf.mxu0  ;;  %v1782_v14 = vpop.f32.mrf.mxu1 }
 0x170   : > { %v1783_v6 = vadd.f32 %v1782_v14, %v1781_v11 }
 0x171   : > { %v2612_v15 = vpop.f32.mrf.mxu0  ;;  %v2614_v28 = vpop.f32.mrf.mxu1 }
 0x173   : > { %v2616_v17 = vpop.f32.mrf.mxu0  ;;  %v2618_v10 = vpop.f32.mrf.mxu1 }
 0x175   : > { %v2620_v30 = vpop.f32.mrf.mxu0  ;;  %v2622_v3 = vpop.f32.mrf.mxu1 }
 0x177   : > { %v2624_v16 = vpop.f32.mrf.mxu0  ;;  %v2626_v26 = vpop.f32.mrf.mxu1 }
 0x178   : > { %v1789_v2 = vadd.f32 %v2626_v26, %v2622_v3 }
 0x179   : > { %v2628_v37 = vpop.f32.mrf.mxu0  ;;  %v2630_v19 = vpop.f32.mrf.mxu1 }
 0x17b   : > { %v2632_v58 = vpop.f32.mrf.mxu0  ;;  %v2634_v8 = vpop.f32.mrf.mxu1 }
 0x17d   : > { %v2636_v5 = vpop.f32.mrf.mxu0  ;;  %v2638_v32 = vpop.f32.mrf.mxu1 }
 0x17f   : > { %v2640_v33 = vpop.f32.mrf.mxu0  ;;  %v2642_v34 = vpop.f32.mrf.mxu1 }
 0x181   : > { %v2644_v23 = vpop.f32.mrf.mxu0  ;;  %v2646_v60 = vpop.f32.mrf.mxu1 }
 0x183   : > { %v2648_v22 = vpop.f32.mrf.mxu0  ;;  %v2650_v38 = vpop.f32.mrf.mxu1 }
 0x185   : > { %v2652_v39 = vpop.f32.mrf.mxu0  ;;  %v2654_v29 = vpop.f32.mrf.mxu1 }
 0x187   : > { %v2656_v18 = vpop.f32.mrf.mxu0  ;;  %v2658_v36 = vpop.f32.mrf.mxu1 }
 0x189   : > { %v2660_v24 = vpop.f32.mrf.mxu0  ;;  %v2662_v41 = vpop.f32.mrf.mxu1 }
 0x18b   : > { %v2664_v46 = vpop.f32.mrf.mxu0  ;;  %v2666_v63 = vpop.f32.mrf.mxu1 }
 0x18c   : > { %2776 = vst [vmem:[#allocation2_spill] sm:$0xff] %v2664_v46 }
 0x18d   : > { %v2668_v42 = vpop.f32.mrf.mxu0  ;;  %v2670_v31 = vpop.f32.mrf.mxu1 }
 0x18e   : > { %2777 = vst [vmem:[#allocation3_spill] sm:$0xff] %v2668_v42 }
 0x18f   : > { %v2672_v62 = vpop.f32.mrf.mxu0  ;;  %v2674_v47 = vpop.f32.mrf.mxu1 }
 0x190   : > { %2778 = vst [vmem:[#allocation4_spill] sm:$0xff] %v2672_v62 }
 0x191   : > { %v2681_v54 = vpop.f32.mrf.mxu0  ;;  %v2683_v25 = vpop.f32.mrf.mxu1 }
 0x192   : > { %2779 = vst [vmem:[#allocation5_spill] sm:$0xff] %v2681_v54  ;;  %2780 = vst [vmem:[#allocation6_spill] sm:$0xff] %v2683_v25  ;;  %v1774_v54 = vadd.f32 %v1773_v35, %v2600_v57  ;;  %v1780_v25 = vadd.f32 %v1779_v9, %v1778_v56  ;;  %v1157_v57 = vadd.f32 %v1719_v45, %v2679_v52 }
 0x193   : > { %v2686_v42 = vpop.f32.mrf.mxu0  ;;  %v2688_v48 = vpop.f32.mrf.mxu1 }
 0x194   : > { %2781 = vst [vmem:[#allocation7_spill] sm:$0xff] %v2686_v42  ;;  %2782 = vst [vmem:[#allocation8_spill] sm:$0xff] %v2688_v48  ;;  %v1144_v48 = vadd.f32 %v1710_v21, %v2679_v52  ;;  %v1249_v12 = vadd.f32 %v1780_v25, %v1152_v49  ;;  %v1254_v14 = vadd.f32 %v1783_v6, %v1157_v57 }
 0x195   : > { %v2693_v62 = vpop.f32.mrf.mxu1  ;;  %v1839_v7 = vpop.f32.mrf.mxu0 }
 0x196   : > { %v1343_v59 = vadd.f32 %v1839_v7, %v1246_v50  ;;  %v1241_v61 = vadd.f32 %v1774_v54, %v1144_v48  ;;  %v1725_v54 = vadd.f32 %v2610_v13, %v2608_v51  ;;  %v1160_v48 = vadd.f32 %v1722_v20, %v2679_v52 }
 0x197   : > { %v1334_v42 = vpop.f32.mrf.mxu0  ;;  %v2699_v46 = vpop.f32.mrf.mxu1 }
 0x198   : > { %v1335_v40 = vadd.f32 %v1334_v42, %v1238_v0  ;;  %v1673_v35 = vmul.f32 -1.442695, %v1343_v59  ;;  %v1786_v42 = vadd.f32 %v2618_v10, %v2614_v28  ;;  %v1165_v28 = vadd.f32 %v1725_v54, %v2679_v52 }
 0x199   : > { %v1840_v44 = vpop.f32.mrf.mxu0  ;;  %v2704_v43 = vpop.f32.mrf.mxu1  ;;  %v1728_v10 = vadd.f32 %v2616_v17, %v2612_v15  ;;  %v1792_v59 = vadd.f32 %v2634_v8, %v2630_v19  ;;  %v1795_v15 = vadd.f32 %v2642_v34, %v2638_v32  ;;  %v1734_v19 = vadd.f32 %v2632_v58, %v2628_v37 }
 0x19a   : > { %v1671_v27 = vmul.f32 -1.442695, %v1335_v40  ;;  %v1346_v9 = vadd.f32 %v1840_v44, %v1249_v12  ;;  %v1257_v7 = vadd.f32 %v1786_v42, %v1160_v48  ;;  %v1262_v49 = vadd.f32 %v1789_v2, %v1165_v28 }
 0x19b   : > { %v1337_v56 = vpop.f32.mrf.mxu0  ;;  %v2711_v1 = vpop.f32.mrf.mxu1  ;;  %v1731_v40 = vadd.f32 %v2624_v16, %v2620_v30  ;;  %v1168_v3 = vadd.f32 %v1728_v10, %v2679_v52  ;;  %v1737_v32 = vadd.f32 %v2640_v33, %v2636_v5  ;;  %v1807_v10 = vadd.f32 %v2674_v47, %v2670_v31  ;;  %v2786_v31 = vld [vmem:[#allocation3_spill] sm:$0xff]  ;;  %v2787_v47 = vld [vmem:[#allocation4_spill] sm:$0xff] }
 0x19c   : > { %1917 = vpow2.f32 %v1671_v27  ;;  %v1338_v53 = vadd.f32 %v1337_v56, %v1241_v61  ;;  %v1674_v21 = vmul.f32 -1.442695, %v1346_v9  ;;  %v1798_v56 = vadd.f32 %v2650_v38, %v2646_v60 }
 0x19d   : > { %v1843_v55 = vpop.f32.mrf.mxu0  ;;  %1919 = vpow2.f32 %v1673_v35  ;;  %v1847_v13 = vpop.f32.mrf.mxu1  ;;  %v1265_v17 = vadd.f32 %v1792_v59, %v1168_v3  ;;  %v1173_v12 = vadd.f32 %v1731_v40, %v2679_v52  ;;  %v1176_v9 = vadd.f32 %v1734_v19, %v2679_v52  ;;  %v2784_v40 = vld [vmem:[#allocation6_spill] sm:$0xff]  ;;  %v2785_v3 = vld [vmem:[#allocation8_spill] sm:$0xff] }
 0x19e   : > { %v1672_v11 = vmul.f32 -1.442695, %v1338_v53  ;;  %v1359_v26 = vadd.f32 %v1843_v55, %v1262_v49  ;;  %v1181_v60 = vadd.f32 %v1737_v32, %v2679_v52  ;;  %v1740_v38 = vadd.f32 %v2648_v22, %v2644_v23 }
 0x19f   : > { %v1350_v25 = vpop.f32.mrf.mxu0  ;;  %v1366_v6 = vpop.f32.mrf.mxu1  ;;  %v1270_v20 = vadd.f32 %v1795_v15, %v1173_v12 }
 0x1a0   : > { %1921 = vpow2.f32 %v1672_v11  ;;  %v1351_v4 = vadd.f32 %v1350_v25, %v1254_v14  ;;  %v1677_v8 = vmul.f32 -1.442695, %v1359_v26  ;;  %v1801_v11 = vadd.f32 %v2658_v36, %v2654_v29 }
 0x1a1   : > { %v1844_v50 = vpop.f32.mrf.mxu0  ;;  %1923 = vpow2.f32 %v1674_v21  ;;  %v1848_v16 = vpop.f32.mrf.mxu1  ;;  %v1367_v53 = vadd.f32 %v1366_v6, %v1270_v20  ;;  %v1273_v14 = vadd.f32 %v1798_v56, %v1176_v9  ;;  %v1804_v21 = vadd.f32 %v2666_v63, %v2662_v41  ;;  %v2783_v63 = vld [vmem:[#allocation2_spill] sm:$0xff] }
 0x1a2   : > { %v1675_v0 = vmul.f32 -1.442695, %v1351_v4  ;;  %v1362_v57 = vadd.f32 %v1844_v50, %v1265_v17  ;;  %v1278_v4 = vadd.f32 %v1801_v11, %v1181_v60  ;;  %v1743_v29 = vadd.f32 %v2656_v18, %v2652_v39 }
 0x1a3   : > { %v1353_v51 = vpop.f32.mrf.mxu0  ;;  %v1369_v55 = vpop.f32.mrf.mxu1  ;;  %v1679_v5 = vmul.f32 -1.442695, %v1367_v53  ;;  %v1184_v36 = vadd.f32 %v1740_v38, %v2679_v52  ;;  %v1746_v39 = vadd.f32 %v2783_v63, %v2660_v24  ;;  %v1810_v26 = vadd.f32 %v2785_v3, %v2784_v40 }
 0x1a4   : > { %v1354_v45 = vadd.f32 %v1353_v51, %v1257_v7  ;;  %1925 = vpow2.f32 %v1675_v0  ;;  %v1678_v37 = vmul.f32 -1.442695, %v1362_v57  ;;  %v1370_v33 = vadd.f32 %v1369_v55, %v1273_v14 }
 0x1a5   : > { %v1851_v25 = vpop.f32.mrf.mxu1  ;;  %v1375_v2 = vadd.f32 %v1847_v13, %v1278_v4  ;;  %v1281_v51 = vadd.f32 %v1804_v21, %v1184_v36  ;;  %v1189_v41 = vadd.f32 %v1743_v29, %v2679_v52  ;;  %v1749_v6 = vadd.f32 %v2787_v47, %v2786_v31 }
 0x1a6   : > { %v1676_v44 = vmul.f32 -1.442695, %v1354_v45  ;;  %v1680_v50 = vmul.f32 -1.442695, %v1370_v33 }
 0x1a7   : > { %v1382_v7 = vpop.f32.mrf.mxu1  ;;  %v1681_v18 = vmul.f32 -1.442695, %v1375_v2  ;;  %v1378_v0 = vadd.f32 %v1848_v16, %v1281_v51  ;;  %v2788_v16 = vld [vmem:[#allocation5_spill] sm:$0xff] }
 0x1a8   : > { %1927 = vpow2.f32 %v1676_v44  ;;  %v1286_v44 = vadd.f32 %v1807_v10, %v1189_v41 }
 0x1a9   : > { %v1918_v27 = vpop.eup %1917  ;;  %v1852_v59 = vpop.f32.mrf.mxu1  ;;  %v1682_v24 = vmul.f32 -1.442695, %v1378_v0 }
 0x1aa   : > { %v1445_v61 = vadd.f32 1.0, %v1918_v27  ;;  %v1920_v30 = vpop.eup %1919  ;;  %v1192_v27 = vadd.f32 %v1746_v39, %v2679_v52  ;;  %v1383_v15 = vadd.f32 %v1382_v7, %v1286_v44 }
 0x1ab   : > { %v1447_v58 = vadd.f32 1.0, %v1920_v30  ;;  %v1197_v30 = vadd.f32 %v1749_v6, %v2679_v52 }
 0x1ac   : > { %1929 = vrcp.f32 %v1445_v61  ;;  %v1385_v61 = vpop.f32.mrf.mxu1  ;;  %v1289_v57 = vadd.f32 %v1810_v26, %v1192_v27  ;;  %v1683_v20 = vmul.f32 -1.442695, %v1383_v15 }
 0x1ad   : > { %v1922_v35 = vpop.eup %1921  ;;  %1931 = vpow2.f32 %v1677_v8  ;;  %v1813_v8 = vadd.f32 %v2699_v46, %v2693_v62 }
 0x1ae   : > { %v1446_v34 = vadd.f32 1.0, %v1922_v35  ;;  %v1924_v42 = vpop.eup %1923  ;;  %v2789_v35 = vld [vmem:[#allocation7_spill] sm:$0xff]  ;;  %v1386_v32 = vadd.f32 %v1385_v61, %v1289_v57 }
 0x1af   : > { %v1448_v54 = vadd.f32 1.0, %v1924_v42  ;;  %v1752_v56 = vadd.f32 %v2789_v35, %v2788_v16 }
 0x1b0   : > { %1933 = vrcp.f32 %v1446_v34  ;;  %v1684_v55 = vmul.f32 -1.442695, %v1386_v32 }
 0x1b1   : > { %1935 = vpow2.f32 %v1678_v37  ;;  %v1926_v48 = vpop.eup %1925  ;;  %v1816_v37 = vadd.f32 %v2711_v1, %v2704_v43  ;;  %v1200_v46 = vadd.f32 %v1752_v56, %v2679_v52 }
 0x1b2   : > { %1937 = vrcp.f32 %v1447_v58  ;;  %v1449_v22 = vadd.f32 1.0, %v1926_v48  ;;  %v1294_v58 = vadd.f32 %v1813_v8, %v1197_v30 }
 0x1b3   : > { %1939 = vpow2.f32 %v1679_v5  ;;  %v1297_v60 = vadd.f32 %v1816_v37, %v1200_v46 }
 0x1b4   : > { %1941 = vrcp.f32 %v1448_v54  ;;  %v1391_v62 = vadd.f32 %v1851_v25, %v1294_v58 }
 0x1b5   : > { %v1928_v23 = vpop.eup %1927  ;;  %1943 = vpow2.f32 %v1680_v50  ;;  %v1394_v5 = vadd.f32 %v1852_v59, %v1297_v60 }
 0x1b6   : > { %1945 = vrcp.f32 %v1449_v22  ;;  %v1450_v45 = vadd.f32 1.0, %v1928_v23  ;;  %v1685_v38 = vmul.f32 -1.442695, %v1391_v62 }
 0x1b7   : > { %1947 = vpow2.f32 %v1681_v18  ;;  %v1686_v1 = vmul.f32 -1.442695, %v1394_v5 }
 0x1b8   : > { %1949 = vrcp.f32 %v1450_v45 }
 0x1b9   : > { %v1930_v28 = vpop.eup %1929  ;;  %1951 = vpow2.f32 %v1682_v24 }
 0x1ba   : > { %1493 = vxpose.xlu0.b32.start [1/16] (narrow) %v1930_v28, 8  ;;  %v1932_v13 = vpop.eup %1931 }
 0x1bb   : > { %v1451_v12 = vadd.f32 1.0, %v1932_v13 }
 0x1bd   : > { %v1934_v49 = vpop.eup %1933  ;;  %1953 = vrcp.f32 %v1451_v12 }
 0x1be   : > { %1494 = vxpose.xlu0.b32.cont [2/16] (narrow) %v1934_v49, 8  ;;  %v1936_v17 = vpop.eup %1935  ;;  %1955 = vpow2.f32 %v1683_v20 }
 0x1bf   : > { %v1938_v19 = vpop.eup %1937  ;;  %v1452_v9 = vadd.f32 1.0, %v1936_v17 }
 0x1c0   : > { %v1940_v34 = vpop.eup %1939 }
 0x1c1   : > { %v1942_v53 = vpop.eup %1941  ;;  %v1453_v11 = vadd.f32 1.0, %v1940_v34  ;;  %1957 = vrcp.f32 %v1452_v9 }
 0x1c2   : > { %1495 = vxpose.xlu0.b32.cont [3/16] (narrow) %v1938_v19, 8  ;;  %v1944_v42 = vpop.eup %1943  ;;  %1959 = vpow2.f32 %v1684_v55 }
 0x1c3   : > { %v1946_v14 = vpop.eup %1945  ;;  %1961 = vrcp.f32 %v1453_v11  ;;  %v1454_v54 = vadd.f32 1.0, %v1944_v42 }
 0x1c4   : > { %v1948_v33 = vpop.eup %1947  ;;  %1963 = vpow2.f32 %v1685_v38 }
 0x1c5   : > { %v1950_v43 = vpop.eup %1949  ;;  %v1455_v25 = vadd.f32 1.0, %v1948_v33  ;;  %1965 = vrcp.f32 %v1454_v54 }
 0x1c6   : > { %1496 = vxpose.xlu0.b32.cont [4/16] (narrow) %v1942_v53, 8  ;;  %v1952_v52 = vpop.eup %1951  ;;  %1967 = vpow2.f32 %v1686_v1 }
 0x1c7   : > { %1969 = vrcp.f32 %v1455_v25  ;;  %v1456_v4 = vadd.f32 1.0, %v1952_v52 }
 0x1c9   : > { %1971 = vrcp.f32 %v1456_v4 }
 0x1ca   : > { %1497 = vxpose.xlu0.b32.cont [5/16] (narrow) %v1946_v14, 8  ;;  %v1954_v48 = vpop.eup %1953 }
 0x1cb   : > { %v1956_v21 = vpop.eup %1955 }
 0x1cc   : > { %v1457_v2 = vadd.f32 1.0, %v1956_v21 }
 0x1ce   : > { %1498 = vxpose.xlu0.b32.cont [6/16] (narrow) %v1950_v43, 8  ;;  %v1958_v29 = vpop.eup %1957  ;;  %1973 = vrcp.f32 %v1457_v2 }
 0x1cf   : > { %v1960_v36 = vpop.eup %1959 }
 0x1d0   : > { %v1962_v50 = vpop.eup %1961  ;;  %v1458_v22 = vadd.f32 1.0, %v1960_v36 }
 0x1d1   : > { %v1964_v23 = vpop.eup %1963 }
 0x1d2   : > { %1499 = vxpose.xlu0.b32.cont [7/16] (narrow) %v1954_v48, 8  ;;  %v1966_v7 = vpop.eup %1965  ;;  %v1459_v10 = vadd.f32 1.0, %v1964_v23  ;;  %1975 = vrcp.f32 %v1458_v22 }
 0x1d3   : > { %v1968_v28 = vpop.eup %1967 }
 0x1d4   : > { %v1970_v51 = vpop.eup %1969  ;;  %1977 = vrcp.f32 %v1459_v10  ;;  %v1460_v41 = vadd.f32 1.0, %v1968_v28 }
 0x1d6   : > { %1500 = vxpose.xlu0.b32.cont [8/16] (narrow) %v1958_v29, 8  ;;  %v1972_v63 = vpop.eup %1971  ;;  %1979 = vrcp.f32 %v1460_v41 }
 0x1da   : > { %1501 = vxpose.xlu0.b32.cont [9/16] (narrow) %v1962_v50, 8 }
 0x1db   : > { %v1974_v39 = vpop.eup %1973 }
 0x1de   : > { %1502 = vxpose.xlu0.b32.cont [10/16] (narrow) %v1966_v7, 8 }
 0x1df   : > { %v1976_v18 = vpop.eup %1975 }
 0x1e1   : > { %v1978_v0 = vpop.eup %1977 }
 0x1e2   : > { %1503 = vxpose.xlu0.b32.cont [11/16] (narrow) %v1970_v51, 8 }
 0x1e3   : > { %v1980_v13 = vpop.eup %1979 }
 0x1e6   : > { %1504 = vxpose.xlu0.b32.cont [12/16] (narrow) %v1972_v63, 8 }
 0x1ea   : > { %1505 = vxpose.xlu0.b32.cont [13/16] (narrow) %v1974_v39, 8 }
 0x1ee   : > { %1506 = vxpose.xlu0.b32.cont [14/16] (narrow) %v1976_v18, 8 }
 0x1f2   : > { %1507 = vxpose.xlu0.b32.cont [15/16] (narrow) %v1978_v0, 8 }
 0x1f6   : > { %1508 = vxpose.xlu0.b32.end [16/16] (narrow) %v1980_v13, 8 }
 0x236   : > { %v1509_v45 = vpop.trf.xlu0 }
 0x237   : > { %1525 = vst [vmem:[%s168_s23] sm:$0x7] %v1509_v45 }
 0x238 PF: > { %s13_s12 = sadd.s32 1, %s1987_s12  }
 0x239   : > { %p10_p4 = scmp.ge.s32.totalorder %s13_s12, 6  }
 0x23b   :  { %12 = sbr.rel (!%p10_p4) target bundleno = 1 (0x1), region = 62 }

</bundles_post_ra>
